<compile_context>
chip_gen: v6e
topology: v6e:2x2x1
jax: 0.10.0
libtpu: 0.0.40
codegen_flags: <defaults>
</compile_context>

<pallas_src>
import functools

import numpy as np
import jax
import jax.numpy as jnp
from jax import lax
from jax.experimental import pallas as pl
from jax.experimental.pallas import tpu as pltpu


# -----------------------------------------------------------------------------
# The fused DualGCN kernel (one batch element per grid step)
# -----------------------------------------------------------------------------
def _dualgcn_kernel(x_ref, t1_ref, t2_ref, t3_ref,
                    wl1_ref, sl1_ref, wl2_ref, sl2_ref, wl3_ref, sl3_ref,
                    wkvq_ref, bkvq_ref, wwgs_ref, swgs_ref, wouts_ref, souts_ref,
                    a2d_ref, wpt_ref, spt_ref, wadjT_ref, sadj_ref,
                    wwg_ref, swg_ref, wc3_ref, sc3_ref,
                    wfa_ref, wfb_ref, sfin_ref,
                    o_ref, *, inter, p2):
    x = x_ref[0]                                                          # (C, HW)

    # ---- local branch: 3x (depthwise 3x3, stride 2, pad 1) + folded BN.
    # Each depthwise conv is 9 tap-selection matmuls:  out = sum_t w[:, t] * (x @ T_t) + s.
    def dw_stage(xc, t_ref, w_ref, s_ref):
        acc = w_ref[0] * jnp.dot(xc, t_ref[0], preferred_element_type=jnp.float32)
        for t in range(1, 9):
            acc = acc + w_ref[t] * jnp.dot(xc, t_ref[t],
                                           preferred_element_type=jnp.float32)
        return acc + s_ref[...]

    loc = dw_stage(x, t1_ref, wl1_ref, sl1_ref)
    loc = dw_stage(loc, t2_ref, wl2_ref, sl2_ref)
    loc = dw_stage(loc, t3_ref, wl3_ref, sl3_ref)                         # (C, Nl)

    # ---- SpatialGCN on the local feature: fused QKV projection, both bmms + softmax,
    #      conv_wg + bn_wg, out conv + bn, residual, ReLU.
    kvq = jnp.dot(wkvq_ref[...], loc, preferred_element_type=jnp.float32) + bkvq_ref[...]
    k = kvq[0:inter]
    v = kvq[inter:2 * inter]
    q = kvq[2 * inter:3 * inter]
    # at[j, i] = sum_n v[j, n] * q[i, n]  ==  A[i, j]  with  A = node_q @ node_v (reference)
    at = lax.dot_general(v, q, (((1,), (1,)), ((), ())),
                         preferred_element_type=jnp.float32)              # (inter, inter)
    # reference softmax is over dim=2 of A (index j) -> softmax over axis 0 of `at`
    at = at - jnp.max(at, axis=0, keepdims=True)
    e = jnp.exp(at)
    at = e / jnp.sum(e, axis=0, keepdims=True)
    av = jnp.dot(at, k, preferred_element_type=jnp.float32)               # (inter, Nl)
    avw = jnp.dot(wwgs_ref[...], av, preferred_element_type=jnp.float32) + swgs_ref[...]
    loc = jnp.maximum(jnp.dot(wouts_ref[...], avw, preferred_element_type=jnp.float32)
                      + souts_ref[...] + loc, 0.0)                        # (C, Nl)

    # ---- bilinear upsample (align_corners=True) fused with x*local + x
    up = jnp.dot(loc, a2d_ref[...], preferred_element_type=jnp.float32)   # (C, HW)
    slf = x * up + x

    # ---- graph-reasoning branch (phi/theta fused into one projection)
    pt = jnp.dot(wpt_ref[...], x, preferred_element_type=jnp.float32) + spt_ref[...]
    xs = pt[0:p2]                                                         # bn_phi(phi(x))   (P2, HW)
    bm = pt[p2:]                                                          # bn_theta(theta(x)) (P1, HW)
    z_idt = lax.dot_general(xs, bm, (((1,), (1,)), ((), ())),
                            preferred_element_type=jnp.float32)           # (P2, P1)
    # conv_adj + bn_adj + residual, evaluated transposed:  (Wadj @ z^T)^T == z @ Wadj^T
    z = jnp.dot(z_idt, wadjT_ref[...], preferred_element_type=jnp.float32) + sadj_ref[...] + z_idt
    zw = jnp.dot(wwg_ref[...], z, preferred_element_type=jnp.float32) + swg_ref[...]      # (P2, P1)
    y = jnp.dot(zw, bm, preferred_element_type=jnp.float32)               # (P2, HW)
    g = jnp.maximum(jnp.dot(wc3_ref[...], y, preferred_element_type=jnp.float32)
                    + sc3_ref[...] + x, 0.0)                              # (C, HW)

    # ---- final 1x1 conv + BN over concat(slf, g) without materializing the concat
    o_ref[0] = (jnp.dot(wfa_ref[...], slf, preferred_element_type=jnp.float32)
                + jnp.dot(wfb_ref[...], g, preferred_element_type=jnp.float32)
                + sfin_ref[...])


# -----------------------------------------------------------------------------
# Host-side helpers: BN folding, selection / interpolation matrices, param prep
# -----------------------------------------------------------------------------
def bn_fold(gamma, beta, mean, var, eps=1e-5):
    scale = gamma / jnp.sqrt(var + eps)
    shift = beta - mean * scale
    return scale, shift


def _dw_selection(H, W):
    """9 tap-selection matrices for a 3x3 / stride-2 / pad-1 depthwise conv.

    T[t, ii*W+jj, oi*Wo+oj] = 1  iff  input (ii, jj) feeds output (oi, oj) for tap t."""
    Ho = (H - 1) // 2 + 1
    Wo = (W - 1) // 2 + 1
    T = np.zeros((9, H * W, Ho * Wo), np.float32)
    for di in range(3):
        for dj in range(3):
            t = di * 3 + dj
            for oi in range(Ho):
                ii = oi * 2 + di - 1
                if not (0 <= ii < H):
                    continue
                for oj in range(Wo):
                    jj = oj * 2 + dj - 1
                    if 0 <= jj < W:
                        T[t, ii * W + jj, oi * Wo + oj] = 1.0
    return jnp.asarray(T)


def interp_matrix(out_size, in_size):
    """1-D bilinear interpolation matrix, align_corners=True."""
    if in_size == 1:
        return jnp.ones((out_size, 1), jnp.float32)
    src = jnp.arange(out_size, dtype=jnp.float32) * (in_size - 1) / max(out_size - 1, 1)
    i0 = jnp.clip(jnp.floor(src).astype(jnp.int32), 0, in_size - 2)
    frac = src - i0.astype(jnp.float32)
    cols = jnp.arange(in_size)[None, :]
    m = ((cols == i0[:, None]) * (1.0 - frac[:, None])
         + (cols == (i0[:, None] + 1)) * frac[:, None])
    return m.astype(jnp.float32)


def fold_params(p, planes, H, W):
    """Fold eval-mode BN into weights/shifts, fuse projections, and pre-build the
    depthwise tap-selection and bilinear-upsample matrices, all in the layout the
    kernel consumes.  Constant-folded under jit (raw params are closure constants)."""
    fp = {}
    # --- local branch: tap matrices + BN-scaled depthwise weights
    h, w = H, W
    Ts, ws, ss = [], [], []
    for i in range(3):
        Ts.append(_dw_selection(h, w))                                    # (9, h*w, ho*wo)
        wsc = p['local_w'][i].reshape(planes, 9) * p['local_scale'][i][:, None]
        ws.append(jnp.transpose(wsc, (1, 0))[:, :, None])                 # (9, C, 1)
        ss.append(p['local_shift'][i][:, None])                           # (C, 1)
        h, w = (h - 1) // 2 + 1, (w - 1) // 2 + 1
    fp['T1'], fp['T2'], fp['T3'] = Ts
    fp['local_w'], fp['local_shift'] = ws, ss
    Hl, Wl = h, w

    # --- SpatialGCN
    sg = p['sgcn']
    fp['Wkvq'] = jnp.concatenate([sg['Wk'], sg['Wv'], sg['Wq']], axis=0)   # (3*inter, C)
    fp['bkvq'] = jnp.concatenate([sg['bk'], sg['bv'], sg['bq']], axis=0)[:, None]
    fp['Wwg_sg'] = sg['Wwg'] * sg['wg_scale'][:, None]
    fp['swg_sg'] = sg['wg_shift'][:, None]
    fp['Wout_sg'] = sg['Wout'] * sg['out_scale'][:, None]
    fp['sout_sg'] = sg['out_shift'][:, None]           # out-conv bias folded at init

    # --- graph-reasoning branch: phi/theta fused into one projection
    Wphi_s = p['W_phi'] * p['phi_scale'][:, None]
    Wtheta_s = p['W_theta'] * p['theta_scale'][:, None]
    fp['Wpt'] = jnp.concatenate([Wphi_s, Wtheta_s], axis=0)                # (P2+P1, C)
    fp['spt'] = jnp.concatenate([p['phi_shift'], p['theta_shift']], axis=0)[:, None]
    fp['WadjT'] = jnp.transpose(p['W_adj'] * p['adj_scale'][:, None], (1, 0))   # (P1, P1)
    fp['sadj'] = p['adj_shift'][None, :]                                   # (1, P1)
    fp['Wwg_s'] = p['W_wg'] * p['wg_scale'][:, None]                       # (P2, P2)
    fp['swg'] = p['wg_shift'][:, None]
    fp['Wc3_s'] = p['W_c3'] * p['c3_scale'][:, None]                       # (C, P2)
    fp['sc3'] = p['c3_shift'][:, None]

    # --- final 1x1 conv over concat(slf, g) -> two (C, C) halves, BN scale folded
    fp['Wfa_s'] = p['W_fin'][:, :planes] * p['fin_scale'][:, None]
    fp['Wfb_s'] = p['W_fin'][:, planes:] * p['fin_scale'][:, None]
    fp['sfin'] = p['fin_shift'][:, None]

    # --- bilinear upsample (align_corners=True) as one (Hl*Wl, H*W) matrix
    Ah = interp_matrix(H, Hl)
    Aw = interp_matrix(W, Wl)
    fp['A2d'] = jnp.transpose(jnp.kron(Ah, Aw), (1, 0))
    return fp


# -----------------------------------------------------------------------------
# DualGCN forward — ONE pallas_call
# -----------------------------------------------------------------------------
def dual_gcn(feat, p):
    B, C, H, W = feat.shape
    HW = H * W
    inter = C // 2
    fp = fold_params(p, C, H, W)
    P1 = fp['WadjT'].shape[0]
    P2 = fp['Wwg_s'].shape[0]
    Nl = fp['T3'].shape[2]

    specs = [
        pl.BlockSpec((1, C, HW), lambda b: (b, 0, 0)),                    # x
        pl.BlockSpec(fp['T1'].shape, lambda b: (0, 0, 0)),
        pl.BlockSpec(fp['T2'].shape, lambda b: (0, 0, 0)),
        pl.BlockSpec(fp['T3'].shape, lambda b: (0, 0, 0)),
    ]
    for _ in range(3):
        specs.append(pl.BlockSpec((9, C, 1), lambda b: (0, 0, 0)))        # dw weights
        specs.append(pl.BlockSpec((C, 1), lambda b: (0, 0)))              # dw shift
    specs += [
        pl.BlockSpec((3 * inter, C), lambda b: (0, 0)),                   # Wkvq
        pl.BlockSpec((3 * inter, 1), lambda b: (0, 0)),
        pl.BlockSpec((inter, inter), lambda b: (0, 0)),                   # Wwg (sgcn)
        pl.BlockSpec((inter, 1), lambda b: (0, 0)),
        pl.BlockSpec((C, inter), lambda b: (0, 0)),                       # Wout (sgcn)
        pl.BlockSpec((C, 1), lambda b: (0, 0)),
        pl.BlockSpec((Nl, HW), lambda b: (0, 0)),                         # A2d
        pl.BlockSpec((P2 + P1, C), lambda b: (0, 0)),                     # Wpt
        pl.BlockSpec((P2 + P1, 1), lambda b: (0, 0)),
        pl.BlockSpec((P1, P1), lambda b: (0, 0)),                         # WadjT
        pl.BlockSpec((1, P1), lambda b: (0, 0)),
        pl.BlockSpec((P2, P2), lambda b: (0, 0)),                         # Wwg (graph)
        pl.BlockSpec((P2, 1), lambda b: (0, 0)),
        pl.BlockSpec((C, P2), lambda b: (0, 0)),                          # Wc3
        pl.BlockSpec((C, 1), lambda b: (0, 0)),
        pl.BlockSpec((C, C), lambda b: (0, 0)),                           # Wfa
        pl.BlockSpec((C, C), lambda b: (0, 0)),                           # Wfb
        pl.BlockSpec((C, 1), lambda b: (0, 0)),
    ]

    out = pl.pallas_call(
        functools.partial(_dualgcn_kernel, inter=inter, p2=P2),
        grid=(B,),
        in_specs=specs,
        out_specs=pl.BlockSpec((1, C, HW), lambda b: (b, 0, 0)),
        out_shape=jax.ShapeDtypeStruct((B, C, HW), jnp.float32),
        compiler_params=pltpu.CompilerParams(dimension_semantics=("parallel",)),
    )(feat.reshape(B, C, HW),
      fp['T1'], fp['T2'], fp['T3'],
      fp['local_w'][0], fp['local_shift'][0],
      fp['local_w'][1], fp['local_shift'][1],
      fp['local_w'][2], fp['local_shift'][2],
      fp['Wkvq'], fp['bkvq'], fp['Wwg_sg'], fp['swg_sg'], fp['Wout_sg'], fp['sout_sg'],
      fp['A2d'], fp['Wpt'], fp['spt'], fp['WadjT'], fp['sadj'],
      fp['Wwg_s'], fp['swg'], fp['Wc3_s'], fp['sc3'],
      fp['Wfa_s'], fp['Wfb_s'], fp['sfin'])
    return out.reshape(B, C, H, W)


# -----------------------------------------------------------------------------
# Pure-JAX reference (follows the PyTorch op order; used only for the self-check)
# -----------------------------------------------------------------------------
def _bilinear_ac(x, H, W):
    B, C, Hl, Wl = x.shape
    ys = jnp.arange(H, dtype=jnp.float32) * (Hl - 1) / max(H - 1, 1)
    xs = jnp.arange(W, dtype=jnp.float32) * (Wl - 1) / max(W - 1, 1)
    y0 = jnp.clip(jnp.floor(ys).astype(jnp.int32), 0, max(Hl - 2, 0))
    x0 = jnp.clip(jnp.floor(xs).astype(jnp.int32), 0, max(Wl - 2, 0))
    fy = (ys - y0.astype(jnp.float32))[None, None, :, None]
    fx = (xs - x0.astype(jnp.float32))[None, None, None, :]
    y1 = jnp.minimum(y0 + 1, Hl - 1)
    x1 = jnp.minimum(x0 + 1, Wl - 1)

    def g(yy, xx):
        return x[:, :, yy, :][:, :, :, xx]

    return (g(y0, x0) * (1 - fy) * (1 - fx) + g(y0, x1) * (1 - fy) * fx
            + g(y1, x0) * fy * (1 - fx) + g(y1, x1) * fy * fx)


def dual_gcn_reference(feat, p):
    B, C, H, W = feat.shape

    def bn(x, scale, shift):
        shp = (1, -1) + (1,) * (x.ndim - 2)
        return x * scale.reshape(shp) + shift.reshape(shp)

    def conv1x1(x, w, b=None):
        y = jnp.einsum('oc,bc...->bo...', w, x)
        if b is not None:
            y = y + b.reshape((1, -1) + (1,) * (y.ndim - 2))
        return y

    # local branch
    loc = feat
    for i in range(3):
        loc = lax.conv_general_dilated(
            loc, p['local_w'][i][:, None, :, :], (2, 2), ((1, 1), (1, 1)),
            dimension_numbers=('NCHW', 'OIHW', 'NCHW'), feature_group_count=C)
        loc = bn(loc, p['local_scale'][i], p['local_shift'][i])

    # SpatialGCN
    sg = p['sgcn']
    inter = C // 2
    _, _, h_, w_ = loc.shape
    N = h_ * w_
    nk = conv1x1(loc, sg['Wk'], sg['bk']).reshape(B, inter, N).transpose(0, 2, 1)
    nq = conv1x1(loc, sg['Wq'], sg['bq']).reshape(B, inter, N)
    nv = conv1x1(loc, sg['Wv'], sg['bv']).reshape(B, inter, N).transpose(0, 2, 1)
    AV = jnp.einsum('bcn,bnd->bcd', nq, nv)
    AV = jax.nn.softmax(AV, axis=2)
    AV = jnp.einsum('bnc,bcd->bnd', nk, AV).transpose(0, 2, 1)
    AVW = bn(jnp.einsum('oc,bcn->bon', sg['Wwg'], AV), sg['wg_scale'], sg['wg_shift'])
    AVW = AVW.reshape(B, inter, h_, w_)
    out_l = bn(conv1x1(AVW, sg['Wout']), sg['out_scale'], sg['out_shift'])
    loc = jax.nn.relu(out_l + loc)

    # upsample + spatial_local_feat
    local_up = _bilinear_ac(loc, H, W)
    slf = feat * local_up + feat

    # graph branch
    x_sqz = bn(conv1x1(feat, p['W_phi']), p['phi_scale'], p['phi_shift']).reshape(B, -1, H * W)
    bm = bn(conv1x1(feat, p['W_theta']), p['theta_scale'], p['theta_shift']).reshape(B, -1, H * W)
    z_idt = jnp.einsum('bin,bjn->bij', x_sqz, bm)
    z = z_idt.transpose(0, 2, 1)
    z = bn(jnp.einsum('ok,bkj->boj', p['W_adj'], z), p['adj_scale'], p['adj_shift'])
    z = z.transpose(0, 2, 1) + z_idt
    z = bn(jnp.einsum('ok,bkj->boj', p['W_wg'], z), p['wg_scale'], p['wg_shift'])
    y = jnp.einsum('bij,bjn->bin', z, bm).reshape(B, -1, H, W)
    y = bn(conv1x1(y, p['W_c3']), p['c3_scale'], p['c3_shift'])
    g_out = jax.nn.relu(feat + y)

    cat = jnp.concatenate([slf, g_out], axis=1)
    return bn(conv1x1(cat, p['W_fin']), p['fin_scale'], p['fin_shift'])


# -----------------------------------------------------------------------------
# Deterministic parameter initialization (same structure as the PyTorch module)
# -----------------------------------------------------------------------------
class PGen:
    def __init__(self, key):
        self.key = key

    def take(self, shape, scale=0.1):
        self.key, k = jax.random.split(self.key)
        return scale * jax.random.normal(k, shape, dtype=jnp.float32)

    def bn(self, c):
        self.key, k1, k2, k3, k4 = jax.random.split(self.key, 5)
        gamma = 1.0 + 0.1 * jax.random.normal(k1, (c,), jnp.float32)
        beta = 0.1 * jax.random.normal(k2, (c,), jnp.float32)
        mean = 0.1 * jax.random.normal(k3, (c,), jnp.float32)
        var = jax.random.uniform(k4, (c,), jnp.float32, minval=0.5, maxval=1.5)
        return bn_fold(gamma, beta, mean, var)


def init_params(key, planes=16, ratio=4):
    pg = PGen(key)
    P1 = planes // ratio
    P2 = P1 * 2
    inter = planes // 2
    p = {}
    p['W_phi'] = pg.take((P2, planes));   p['phi_scale'], p['phi_shift'] = pg.bn(P2)
    p['W_theta'] = pg.take((P1, planes)); p['theta_scale'], p['theta_shift'] = pg.bn(P1)
    p['W_adj'] = pg.take((P1, P1));       p['adj_scale'], p['adj_shift'] = pg.bn(P1)
    p['W_wg'] = pg.take((P2, P2));        p['wg_scale'], p['wg_shift'] = pg.bn(P2)
    p['W_c3'] = pg.take((planes, P2));    p['c3_scale'], p['c3_shift'] = pg.bn(planes)
    p['local_w'] = [pg.take((planes, 3, 3)) for _ in range(3)]
    lbn = [pg.bn(planes) for _ in range(3)]
    p['local_scale'] = [s for s, _ in lbn]
    p['local_shift'] = [b for _, b in lbn]
    sg = {}
    sg['Wk'] = pg.take((inter, planes)); sg['bk'] = pg.take((inter,))
    sg['Wv'] = pg.take((inter, planes)); sg['bv'] = pg.take((inter,))
    sg['Wq'] = pg.take((inter, planes)); sg['bq'] = pg.take((inter,))
    sg['Wwg'] = pg.take((inter, inter))
    sg['wg_scale'], sg['wg_shift'] = pg.bn(inter)
    sg['Wout'] = pg.take((planes, inter))
    b_out = pg.take((planes,))
    osc, osh = pg.bn(planes)
    sg['out_scale'] = osc
    sg['out_shift'] = osh + osc * b_out       # fold the out-conv bias through its BN
    p['sgcn'] = sg
    p['W_fin'] = pg.take((planes, planes * 2))
    p['fin_scale'], p['fin_shift'] = pg.bn(planes)
    return p


# -----------------------------------------------------------------------------
if __name__ == "__main__":
    key = jax.random.PRNGKey(0)
    kx, kp = jax.random.split(key)
    planes = 16
    feat = jax.random.normal(kx, (2, planes, 16, 16), dtype=jnp.float32)
    params = init_params(kp, planes=planes, ratio=4)

    fwd = jax.jit(lambda f: dual_gcn(f, params))
    out = fwd(feat)
    jax.block_until_ready(out)
    assert out.shape == (2, planes, 16, 16), out.shape

    # self-check against a pure-JAX reference that follows the PyTorch op order
    ref = jax.jit(lambda f: dual_gcn_reference(f, params))(feat)
    jax.block_until_ready(ref)
    err = float(jnp.max(jnp.abs(out - ref)) / (jnp.max(jnp.abs(ref)) + 1e-6))
    assert err < 5e-2, f"kernel/reference mismatch: normalized max err = {err:.3e}"

    print("KERNEL_OK")
</pallas_src>

<mosaic_0001>
module attributes {stable_mosaic.version = 11 : i64} {
  func.func @_dualgcn_kernel(%arg0: i32, %arg1: memref<1x16x256xf32, #tpu.memory_space<vmem>>, %arg2: memref<9x256x64xf32, #tpu.memory_space<vmem>>, %arg3: memref<9x64x16xf32, #tpu.memory_space<vmem>>, %arg4: memref<9x16x4xf32, #tpu.memory_space<vmem>>, %arg5: memref<9x16x1xf32, #tpu.memory_space<vmem>>, %arg6: memref<16x1xf32, #tpu.memory_space<vmem>>, %arg7: memref<9x16x1xf32, #tpu.memory_space<vmem>>, %arg8: memref<16x1xf32, #tpu.memory_space<vmem>>, %arg9: memref<9x16x1xf32, #tpu.memory_space<vmem>>, %arg10: memref<16x1xf32, #tpu.memory_space<vmem>>, %arg11: memref<24x16xf32, #tpu.memory_space<vmem>>, %arg12: memref<24x1xf32, #tpu.memory_space<vmem>>, %arg13: memref<8x8xf32, #tpu.memory_space<vmem>>, %arg14: memref<8x1xf32, #tpu.memory_space<vmem>>, %arg15: memref<16x8xf32, #tpu.memory_space<vmem>>, %arg16: memref<16x1xf32, #tpu.memory_space<vmem>>, %arg17: memref<4x256xf32, #tpu.memory_space<vmem>>, %arg18: memref<12x16xf32, #tpu.memory_space<vmem>>, %arg19: memref<12x1xf32, #tpu.memory_space<vmem>>, %arg20: memref<4x4xf32, #tpu.memory_space<vmem>>, %arg21: memref<1x4xf32, #tpu.memory_space<vmem>>, %arg22: memref<8x8xf32, #tpu.memory_space<vmem>>, %arg23: memref<8x1xf32, #tpu.memory_space<vmem>>, %arg24: memref<16x8xf32, #tpu.memory_space<vmem>>, %arg25: memref<16x1xf32, #tpu.memory_space<vmem>>, %arg26: memref<16x16xf32, #tpu.memory_space<vmem>>, %arg27: memref<16x16xf32, #tpu.memory_space<vmem>>, %arg28: memref<16x1xf32, #tpu.memory_space<vmem>>, %arg29: memref<1x16x256xf32, #tpu.memory_space<vmem>>) attributes {dimension_semantics = [#tpu.dimension_semantics<parallel>], iteration_bounds = array<i64: 2>, scalar_prefetch = 0 : i64, scratch_operands = 0 : i64, tpu.core_type = #tpu.core_type<tc>, window_params = [{transform_indices = @transform_0, window_bounds = array<i64: 1, 16, 256>}, {pipeline_mode = #tpu.pipeline_mode<synchronous>, transform_indices = @transform_1, window_bounds = array<i64: 9, 256, 64>}, {pipeline_mode = #tpu.pipeline_mode<synchronous>, transform_indices = @transform_2, window_bounds = array<i64: 9, 64, 16>}, {pipeline_mode = #tpu.pipeline_mode<synchronous>, transform_indices = @transform_3, window_bounds = array<i64: 9, 16, 4>}, {pipeline_mode = #tpu.pipeline_mode<synchronous>, transform_indices = @transform_4, window_bounds = array<i64: 9, 16, 1>}, {pipeline_mode = #tpu.pipeline_mode<synchronous>, transform_indices = @transform_5, window_bounds = array<i64: 16, 1>}, {pipeline_mode = #tpu.pipeline_mode<synchronous>, transform_indices = @transform_6, window_bounds = array<i64: 9, 16, 1>}, {pipeline_mode = #tpu.pipeline_mode<synchronous>, transform_indices = @transform_7, window_bounds = array<i64: 16, 1>}, {pipeline_mode = #tpu.pipeline_mode<synchronous>, transform_indices = @transform_8, window_bounds = array<i64: 9, 16, 1>}, {pipeline_mode = #tpu.pipeline_mode<synchronous>, transform_indices = @transform_9, window_bounds = array<i64: 16, 1>}, {pipeline_mode = #tpu.pipeline_mode<synchronous>, transform_indices = @transform_10, window_bounds = array<i64: 24, 16>}, {pipeline_mode = #tpu.pipeline_mode<synchronous>, transform_indices = @transform_11, window_bounds = array<i64: 24, 1>}, {pipeline_mode = #tpu.pipeline_mode<synchronous>, transform_indices = @transform_12, window_bounds = array<i64: 8, 8>}, {pipeline_mode = #tpu.pipeline_mode<synchronous>, transform_indices = @transform_13, window_bounds = array<i64: 8, 1>}, {pipeline_mode = #tpu.pipeline_mode<synchronous>, transform_indices = @transform_14, window_bounds = array<i64: 16, 8>}, {pipeline_mode = #tpu.pipeline_mode<synchronous>, transform_indices = @transform_15, window_bounds = array<i64: 16, 1>}, {pipeline_mode = #tpu.pipeline_mode<synchronous>, transform_indices = @transform_16, window_bounds = array<i64: 4, 256>}, {pipeline_mode = #tpu.pipeline_mode<synchronous>, transform_indices = @transform_17, window_bounds = array<i64: 12, 16>}, {pipeline_mode = #tpu.pipeline_mode<synchronous>, transform_indices = @transform_18, window_bounds = array<i64: 12, 1>}, {pipeline_mode = #tpu.pipeline_mode<synchronous>, transform_indices = @transform_19, window_bounds = array<i64: 4, 4>}, {pipeline_mode = #tpu.pipeline_mode<synchronous>, transform_indices = @transform_20, window_bounds = array<i64: 1, 4>}, {pipeline_mode = #tpu.pipeline_mode<synchronous>, transform_indices = @transform_21, window_bounds = array<i64: 8, 8>}, {pipeline_mode = #tpu.pipeline_mode<synchronous>, transform_indices = @transform_22, window_bounds = array<i64: 8, 1>}, {pipeline_mode = #tpu.pipeline_mode<synchronous>, transform_indices = @transform_23, window_bounds = array<i64: 16, 8>}, {pipeline_mode = #tpu.pipeline_mode<synchronous>, transform_indices = @transform_24, window_bounds = array<i64: 16, 1>}, {pipeline_mode = #tpu.pipeline_mode<synchronous>, transform_indices = @transform_25, window_bounds = array<i64: 16, 16>}, {pipeline_mode = #tpu.pipeline_mode<synchronous>, transform_indices = @transform_26, window_bounds = array<i64: 16, 16>}, {pipeline_mode = #tpu.pipeline_mode<synchronous>, transform_indices = @transform_27, window_bounds = array<i64: 16, 1>}, {transform_indices = @transform_28, window_bounds = array<i64: 1, 16, 256>}]} {
    %c0 = arith.constant 0 : index
    %c0_0 = arith.constant 0 : index
    %c0_1 = arith.constant 0 : index
    %0 = vector.load %arg1[%c0, %c0_0, %c0_1] : memref<1x16x256xf32, #tpu.memory_space<vmem>>, vector<1x16x256xf32>
    %1 = vector.shape_cast %0 : vector<1x16x256xf32> to vector<16x256xf32>
    %c0_2 = arith.constant 0 : index
    %c0_3 = arith.constant 0 : index
    %c0_4 = arith.constant 0 : index
    %2 = vector.load %arg5[%c0_2, %c0_3, %c0_4] : memref<9x16x1xf32, #tpu.memory_space<vmem>>, vector<1x16x1xf32>
    %3 = vector.shape_cast %2 : vector<1x16x1xf32> to vector<16x1xf32>
    %c0_5 = arith.constant 0 : index
    %c0_6 = arith.constant 0 : index
    %c0_7 = arith.constant 0 : index
    %4 = vector.load %arg2[%c0_5, %c0_6, %c0_7] : memref<9x256x64xf32, #tpu.memory_space<vmem>>, vector<1x256x64xf32>
    %5 = vector.shape_cast %4 : vector<1x256x64xf32> to vector<256x64xf32>
    %cst = arith.constant dense<0.000000e+00> : vector<16x64xf32>
    %6 = tpu.matmul %1, %5, %cst {dimension_numbers = #tpu.dot_dimension_numbers<[1], [0], [0], [1], [0, 0, 1, 1], [], []>} : vector<16x256xf32>, vector<256x64xf32>, vector<16x64xf32> -> vector<16x64xf32>
    %7 = vector.broadcast %3 : vector<16x1xf32> to vector<16x64xf32>
    %8 = arith.mulf %7, %6 : vector<16x64xf32>
    %c1 = arith.constant 1 : index
    %c0_8 = arith.constant 0 : index
    %c0_9 = arith.constant 0 : index
    %9 = vector.load %arg5[%c1, %c0_8, %c0_9] : memref<9x16x1xf32, #tpu.memory_space<vmem>>, vector<1x16x1xf32>
    %10 = vector.shape_cast %9 : vector<1x16x1xf32> to vector<16x1xf32>
    %c1_10 = arith.constant 1 : index
    %c0_11 = arith.constant 0 : index
    %c0_12 = arith.constant 0 : index
    %11 = vector.load %arg2[%c1_10, %c0_11, %c0_12] : memref<9x256x64xf32, #tpu.memory_space<vmem>>, vector<1x256x64xf32>
    %12 = vector.shape_cast %11 : vector<1x256x64xf32> to vector<256x64xf32>
    %cst_13 = arith.constant dense<0.000000e+00> : vector<16x64xf32>
    %13 = tpu.matmul %1, %12, %cst_13 {dimension_numbers = #tpu.dot_dimension_numbers<[1], [0], [0], [1], [0, 0, 1, 1], [], []>} : vector<16x256xf32>, vector<256x64xf32>, vector<16x64xf32> -> vector<16x64xf32>
    %14 = vector.broadcast %10 : vector<16x1xf32> to vector<16x64xf32>
    %15 = arith.mulf %14, %13 : vector<16x64xf32>
    %16 = arith.addf %8, %15 : vector<16x64xf32>
    %c2 = arith.constant 2 : index
    %c0_14 = arith.constant 0 : index
    %c0_15 = arith.constant 0 : index
    %17 = vector.load %arg5[%c2, %c0_14, %c0_15] : memref<9x16x1xf32, #tpu.memory_space<vmem>>, vector<1x16x1xf32>
    %18 = vector.shape_cast %17 : vector<1x16x1xf32> to vector<16x1xf32>
    %c2_16 = arith.constant 2 : index
    %c0_17 = arith.constant 0 : index
    %c0_18 = arith.constant 0 : index
    %19 = vector.load %arg2[%c2_16, %c0_17, %c0_18] : memref<9x256x64xf32, #tpu.memory_space<vmem>>, vector<1x256x64xf32>
    %20 = vector.shape_cast %19 : vector<1x256x64xf32> to vector<256x64xf32>
    %cst_19 = arith.constant dense<0.000000e+00> : vector<16x64xf32>
    %21 = tpu.matmul %1, %20, %cst_19 {dimension_numbers = #tpu.dot_dimension_numbers<[1], [0], [0], [1], [0, 0, 1, 1], [], []>} : vector<16x256xf32>, vector<256x64xf32>, vector<16x64xf32> -> vector<16x64xf32>
    %22 = vector.broadcast %18 : vector<16x1xf32> to vector<16x64xf32>
    %23 = arith.mulf %22, %21 : vector<16x64xf32>
    %24 = arith.addf %16, %23 : vector<16x64xf32>
    %c3 = arith.constant 3 : index
    %c0_20 = arith.constant 0 : index
    %c0_21 = arith.constant 0 : index
    %25 = vector.load %arg5[%c3, %c0_20, %c0_21] : memref<9x16x1xf32, #tpu.memory_space<vmem>>, vector<1x16x1xf32>
    %26 = vector.shape_cast %25 : vector<1x16x1xf32> to vector<16x1xf32>
    %c3_22 = arith.constant 3 : index
    %c0_23 = arith.constant 0 : index
    %c0_24 = arith.constant 0 : index
    %27 = vector.load %arg2[%c3_22, %c0_23, %c0_24] : memref<9x256x64xf32, #tpu.memory_space<vmem>>, vector<1x256x64xf32>
    %28 = vector.shape_cast %27 : vector<1x256x64xf32> to vector<256x64xf32>
    %cst_25 = arith.constant dense<0.000000e+00> : vector<16x64xf32>
    %29 = tpu.matmul %1, %28, %cst_25 {dimension_numbers = #tpu.dot_dimension_numbers<[1], [0], [0], [1], [0, 0, 1, 1], [], []>} : vector<16x256xf32>, vector<256x64xf32>, vector<16x64xf32> -> vector<16x64xf32>
    %30 = vector.broadcast %26 : vector<16x1xf32> to vector<16x64xf32>
    %31 = arith.mulf %30, %29 : vector<16x64xf32>
    %32 = arith.addf %24, %31 : vector<16x64xf32>
    %c4 = arith.constant 4 : index
    %c0_26 = arith.constant 0 : index
    %c0_27 = arith.constant 0 : index
    %33 = vector.load %arg5[%c4, %c0_26, %c0_27] : memref<9x16x1xf32, #tpu.memory_space<vmem>>, vector<1x16x1xf32>
    %34 = vector.shape_cast %33 : vector<1x16x1xf32> to vector<16x1xf32>
    %c4_28 = arith.constant 4 : index
    %c0_29 = arith.constant 0 : index
    %c0_30 = arith.constant 0 : index
    %35 = vector.load %arg2[%c4_28, %c0_29, %c0_30] : memref<9x256x64xf32, #tpu.memory_space<vmem>>, vector<1x256x64xf32>
    %36 = vector.shape_cast %35 : vector<1x256x64xf32> to vector<256x64xf32>
    %cst_31 = arith.constant dense<0.000000e+00> : vector<16x64xf32>
    %37 = tpu.matmul %1, %36, %cst_31 {dimension_numbers = #tpu.dot_dimension_numbers<[1], [0], [0], [1], [0, 0, 1, 1], [], []>} : vector<16x256xf32>, vector<256x64xf32>, vector<16x64xf32> -> vector<16x64xf32>
    %38 = vector.broadcast %34 : vector<16x1xf32> to vector<16x64xf32>
    %39 = arith.mulf %38, %37 : vector<16x64xf32>
    %40 = arith.addf %32, %39 : vector<16x64xf32>
    %c5 = arith.constant 5 : index
    %c0_32 = arith.constant 0 : index
    %c0_33 = arith.constant 0 : index
    %41 = vector.load %arg5[%c5, %c0_32, %c0_33] : memref<9x16x1xf32, #tpu.memory_space<vmem>>, vector<1x16x1xf32>
    %42 = vector.shape_cast %41 : vector<1x16x1xf32> to vector<16x1xf32>
    %c5_34 = arith.constant 5 : index
    %c0_35 = arith.constant 0 : index
    %c0_36 = arith.constant 0 : index
    %43 = vector.load %arg2[%c5_34, %c0_35, %c0_36] : memref<9x256x64xf32, #tpu.memory_space<vmem>>, vector<1x256x64xf32>
    %44 = vector.shape_cast %43 : vector<1x256x64xf32> to vector<256x64xf32>
    %cst_37 = arith.constant dense<0.000000e+00> : vector<16x64xf32>
    %45 = tpu.matmul %1, %44, %cst_37 {dimension_numbers = #tpu.dot_dimension_numbers<[1], [0], [0], [1], [0, 0, 1, 1], [], []>} : vector<16x256xf32>, vector<256x64xf32>, vector<16x64xf32> -> vector<16x64xf32>
    %46 = vector.broadcast %42 : vector<16x1xf32> to vector<16x64xf32>
    %47 = arith.mulf %46, %45 : vector<16x64xf32>
    %48 = arith.addf %40, %47 : vector<16x64xf32>
    %c6 = arith.constant 6 : index
    %c0_38 = arith.constant 0 : index
    %c0_39 = arith.constant 0 : index
    %49 = vector.load %arg5[%c6, %c0_38, %c0_39] : memref<9x16x1xf32, #tpu.memory_space<vmem>>, vector<1x16x1xf32>
    %50 = vector.shape_cast %49 : vector<1x16x1xf32> to vector<16x1xf32>
    %c6_40 = arith.constant 6 : index
    %c0_41 = arith.constant 0 : index
    %c0_42 = arith.constant 0 : index
    %51 = vector.load %arg2[%c6_40, %c0_41, %c0_42] : memref<9x256x64xf32, #tpu.memory_space<vmem>>, vector<1x256x64xf32>
    %52 = vector.shape_cast %51 : vector<1x256x64xf32> to vector<256x64xf32>
    %cst_43 = arith.constant dense<0.000000e+00> : vector<16x64xf32>
    %53 = tpu.matmul %1, %52, %cst_43 {dimension_numbers = #tpu.dot_dimension_numbers<[1], [0], [0], [1], [0, 0, 1, 1], [], []>} : vector<16x256xf32>, vector<256x64xf32>, vector<16x64xf32> -> vector<16x64xf32>
    %54 = vector.broadcast %50 : vector<16x1xf32> to vector<16x64xf32>
    %55 = arith.mulf %54, %53 : vector<16x64xf32>
    %56 = arith.addf %48, %55 : vector<16x64xf32>
    %c7 = arith.constant 7 : index
    %c0_44 = arith.constant 0 : index
    %c0_45 = arith.constant 0 : index
    %57 = vector.load %arg5[%c7, %c0_44, %c0_45] : memref<9x16x1xf32, #tpu.memory_space<vmem>>, vector<1x16x1xf32>
    %58 = vector.shape_cast %57 : vector<1x16x1xf32> to vector<16x1xf32>
    %c7_46 = arith.constant 7 : index
    %c0_47 = arith.constant 0 : index
    %c0_48 = arith.constant 0 : index
    %59 = vector.load %arg2[%c7_46, %c0_47, %c0_48] : memref<9x256x64xf32, #tpu.memory_space<vmem>>, vector<1x256x64xf32>
    %60 = vector.shape_cast %59 : vector<1x256x64xf32> to vector<256x64xf32>
    %cst_49 = arith.constant dense<0.000000e+00> : vector<16x64xf32>
    %61 = tpu.matmul %1, %60, %cst_49 {dimension_numbers = #tpu.dot_dimension_numbers<[1], [0], [0], [1], [0, 0, 1, 1], [], []>} : vector<16x256xf32>, vector<256x64xf32>, vector<16x64xf32> -> vector<16x64xf32>
    %62 = vector.broadcast %58 : vector<16x1xf32> to vector<16x64xf32>
    %63 = arith.mulf %62, %61 : vector<16x64xf32>
    %64 = arith.addf %56, %63 : vector<16x64xf32>
    %c8 = arith.constant 8 : index
    %c0_50 = arith.constant 0 : index
    %c0_51 = arith.constant 0 : index
    %65 = vector.load %arg5[%c8, %c0_50, %c0_51] : memref<9x16x1xf32, #tpu.memory_space<vmem>>, vector<1x16x1xf32>
    %66 = vector.shape_cast %65 : vector<1x16x1xf32> to vector<16x1xf32>
    %c8_52 = arith.constant 8 : index
    %c0_53 = arith.constant 0 : index
    %c0_54 = arith.constant 0 : index
    %67 = vector.load %arg2[%c8_52, %c0_53, %c0_54] : memref<9x256x64xf32, #tpu.memory_space<vmem>>, vector<1x256x64xf32>
    %68 = vector.shape_cast %67 : vector<1x256x64xf32> to vector<256x64xf32>
    %cst_55 = arith.constant dense<0.000000e+00> : vector<16x64xf32>
    %69 = tpu.matmul %1, %68, %cst_55 {dimension_numbers = #tpu.dot_dimension_numbers<[1], [0], [0], [1], [0, 0, 1, 1], [], []>} : vector<16x256xf32>, vector<256x64xf32>, vector<16x64xf32> -> vector<16x64xf32>
    %70 = vector.broadcast %66 : vector<16x1xf32> to vector<16x64xf32>
    %71 = arith.mulf %70, %69 : vector<16x64xf32>
    %72 = arith.addf %64, %71 : vector<16x64xf32>
    %c0_56 = arith.constant 0 : index
    %c0_57 = arith.constant 0 : index
    %73 = vector.load %arg6[%c0_56, %c0_57] : memref<16x1xf32, #tpu.memory_space<vmem>>, vector<16x1xf32>
    %74 = vector.broadcast %73 : vector<16x1xf32> to vector<16x64xf32>
    %75 = arith.addf %72, %74 : vector<16x64xf32>
    %c0_58 = arith.constant 0 : index
    %c0_59 = arith.constant 0 : index
    %c0_60 = arith.constant 0 : index
    %76 = vector.load %arg7[%c0_58, %c0_59, %c0_60] : memref<9x16x1xf32, #tpu.memory_space<vmem>>, vector<1x16x1xf32>
    %77 = vector.shape_cast %76 : vector<1x16x1xf32> to vector<16x1xf32>
    %c0_61 = arith.constant 0 : index
    %c0_62 = arith.constant 0 : index
    %c0_63 = arith.constant 0 : index
    %78 = vector.load %arg3[%c0_61, %c0_62, %c0_63] : memref<9x64x16xf32, #tpu.memory_space<vmem>>, vector<1x64x16xf32>
    %79 = vector.shape_cast %78 : vector<1x64x16xf32> to vector<64x16xf32>
    %cst_64 = arith.constant dense<0.000000e+00> : vector<16x16xf32>
    %80 = tpu.matmul %75, %79, %cst_64 {dimension_numbers = #tpu.dot_dimension_numbers<[1], [0], [0], [1], [0, 0, 1, 1], [], []>} : vector<16x64xf32>, vector<64x16xf32>, vector<16x16xf32> -> vector<16x16xf32>
    %81 = vector.broadcast %77 : vector<16x1xf32> to vector<16x16xf32>
    %82 = arith.mulf %81, %80 : vector<16x16xf32>
    %c1_65 = arith.constant 1 : index
    %c0_66 = arith.constant 0 : index
    %c0_67 = arith.constant 0 : index
    %83 = vector.load %arg7[%c1_65, %c0_66, %c0_67] : memref<9x16x1xf32, #tpu.memory_space<vmem>>, vector<1x16x1xf32>
    %84 = vector.shape_cast %83 : vector<1x16x1xf32> to vector<16x1xf32>
    %c1_68 = arith.constant 1 : index
    %c0_69 = arith.constant 0 : index
    %c0_70 = arith.constant 0 : index
    %85 = vector.load %arg3[%c1_68, %c0_69, %c0_70] : memref<9x64x16xf32, #tpu.memory_space<vmem>>, vector<1x64x16xf32>
    %86 = vector.shape_cast %85 : vector<1x64x16xf32> to vector<64x16xf32>
    %cst_71 = arith.constant dense<0.000000e+00> : vector<16x16xf32>
    %87 = tpu.matmul %75, %86, %cst_71 {dimension_numbers = #tpu.dot_dimension_numbers<[1], [0], [0], [1], [0, 0, 1, 1], [], []>} : vector<16x64xf32>, vector<64x16xf32>, vector<16x16xf32> -> vector<16x16xf32>
    %88 = vector.broadcast %84 : vector<16x1xf32> to vector<16x16xf32>
    %89 = arith.mulf %88, %87 : vector<16x16xf32>
    %90 = arith.addf %82, %89 : vector<16x16xf32>
    %c2_72 = arith.constant 2 : index
    %c0_73 = arith.constant 0 : index
    %c0_74 = arith.constant 0 : index
    %91 = vector.load %arg7[%c2_72, %c0_73, %c0_74] : memref<9x16x1xf32, #tpu.memory_space<vmem>>, vector<1x16x1xf32>
    %92 = vector.shape_cast %91 : vector<1x16x1xf32> to vector<16x1xf32>
    %c2_75 = arith.constant 2 : index
    %c0_76 = arith.constant 0 : index
    %c0_77 = arith.constant 0 : index
    %93 = vector.load %arg3[%c2_75, %c0_76, %c0_77] : memref<9x64x16xf32, #tpu.memory_space<vmem>>, vector<1x64x16xf32>
    %94 = vector.shape_cast %93 : vector<1x64x16xf32> to vector<64x16xf32>
    %cst_78 = arith.constant dense<0.000000e+00> : vector<16x16xf32>
    %95 = tpu.matmul %75, %94, %cst_78 {dimension_numbers = #tpu.dot_dimension_numbers<[1], [0], [0], [1], [0, 0, 1, 1], [], []>} : vector<16x64xf32>, vector<64x16xf32>, vector<16x16xf32> -> vector<16x16xf32>
    %96 = vector.broadcast %92 : vector<16x1xf32> to vector<16x16xf32>
    %97 = arith.mulf %96, %95 : vector<16x16xf32>
    %98 = arith.addf %90, %97 : vector<16x16xf32>
    %c3_79 = arith.constant 3 : index
    %c0_80 = arith.constant 0 : index
    %c0_81 = arith.constant 0 : index
    %99 = vector.load %arg7[%c3_79, %c0_80, %c0_81] : memref<9x16x1xf32, #tpu.memory_space<vmem>>, vector<1x16x1xf32>
    %100 = vector.shape_cast %99 : vector<1x16x1xf32> to vector<16x1xf32>
    %c3_82 = arith.constant 3 : index
    %c0_83 = arith.constant 0 : index
    %c0_84 = arith.constant 0 : index
    %101 = vector.load %arg3[%c3_82, %c0_83, %c0_84] : memref<9x64x16xf32, #tpu.memory_space<vmem>>, vector<1x64x16xf32>
    %102 = vector.shape_cast %101 : vector<1x64x16xf32> to vector<64x16xf32>
    %cst_85 = arith.constant dense<0.000000e+00> : vector<16x16xf32>
    %103 = tpu.matmul %75, %102, %cst_85 {dimension_numbers = #tpu.dot_dimension_numbers<[1], [0], [0], [1], [0, 0, 1, 1], [], []>} : vector<16x64xf32>, vector<64x16xf32>, vector<16x16xf32> -> vector<16x16xf32>
    %104 = vector.broadcast %100 : vector<16x1xf32> to vector<16x16xf32>
    %105 = arith.mulf %104, %103 : vector<16x16xf32>
    %106 = arith.addf %98, %105 : vector<16x16xf32>
    %c4_86 = arith.constant 4 : index
    %c0_87 = arith.constant 0 : index
    %c0_88 = arith.constant 0 : index
    %107 = vector.load %arg7[%c4_86, %c0_87, %c0_88] : memref<9x16x1xf32, #tpu.memory_space<vmem>>, vector<1x16x1xf32>
    %108 = vector.shape_cast %107 : vector<1x16x1xf32> to vector<16x1xf32>
    %c4_89 = arith.constant 4 : index
    %c0_90 = arith.constant 0 : index
    %c0_91 = arith.constant 0 : index
    %109 = vector.load %arg3[%c4_89, %c0_90, %c0_91] : memref<9x64x16xf32, #tpu.memory_space<vmem>>, vector<1x64x16xf32>
    %110 = vector.shape_cast %109 : vector<1x64x16xf32> to vector<64x16xf32>
    %cst_92 = arith.constant dense<0.000000e+00> : vector<16x16xf32>
    %111 = tpu.matmul %75, %110, %cst_92 {dimension_numbers = #tpu.dot_dimension_numbers<[1], [0], [0], [1], [0, 0, 1, 1], [], []>} : vector<16x64xf32>, vector<64x16xf32>, vector<16x16xf32> -> vector<16x16xf32>
    %112 = vector.broadcast %108 : vector<16x1xf32> to vector<16x16xf32>
    %113 = arith.mulf %112, %111 : vector<16x16xf32>
    %114 = arith.addf %106, %113 : vector<16x16xf32>
    %c5_93 = arith.constant 5 : index
    %c0_94 = arith.constant 0 : index
    %c0_95 = arith.constant 0 : index
    %115 = vector.load %arg7[%c5_93, %c0_94, %c0_95] : memref<9x16x1xf32, #tpu.memory_space<vmem>>, vector<1x16x1xf32>
    %116 = vector.shape_cast %115 : vector<1x16x1xf32> to vector<16x1xf32>
    %c5_96 = arith.constant 5 : index
    %c0_97 = arith.constant 0 : index
    %c0_98 = arith.constant 0 : index
    %117 = vector.load %arg3[%c5_96, %c0_97, %c0_98] : memref<9x64x16xf32, #tpu.memory_space<vmem>>, vector<1x64x16xf32>
    %118 = vector.shape_cast %117 : vector<1x64x16xf32> to vector<64x16xf32>
    %cst_99 = arith.constant dense<0.000000e+00> : vector<16x16xf32>
    %119 = tpu.matmul %75, %118, %cst_99 {dimension_numbers = #tpu.dot_dimension_numbers<[1], [0], [0], [1], [0, 0, 1, 1], [], []>} : vector<16x64xf32>, vector<64x16xf32>, vector<16x16xf32> -> vector<16x16xf32>
    %120 = vector.broadcast %116 : vector<16x1xf32> to vector<16x16xf32>
    %121 = arith.mulf %120, %119 : vector<16x16xf32>
    %122 = arith.addf %114, %121 : vector<16x16xf32>
    %c6_100 = arith.constant 6 : index
    %c0_101 = arith.constant 0 : index
    %c0_102 = arith.constant 0 : index
    %123 = vector.load %arg7[%c6_100, %c0_101, %c0_102] : memref<9x16x1xf32, #tpu.memory_space<vmem>>, vector<1x16x1xf32>
    %124 = vector.shape_cast %123 : vector<1x16x1xf32> to vector<16x1xf32>
    %c6_103 = arith.constant 6 : index
    %c0_104 = arith.constant 0 : index
    %c0_105 = arith.constant 0 : index
    %125 = vector.load %arg3[%c6_103, %c0_104, %c0_105] : memref<9x64x16xf32, #tpu.memory_space<vmem>>, vector<1x64x16xf32>
    %126 = vector.shape_cast %125 : vector<1x64x16xf32> to vector<64x16xf32>
    %cst_106 = arith.constant dense<0.000000e+00> : vector<16x16xf32>
    %127 = tpu.matmul %75, %126, %cst_106 {dimension_numbers = #tpu.dot_dimension_numbers<[1], [0], [0], [1], [0, 0, 1, 1], [], []>} : vector<16x64xf32>, vector<64x16xf32>, vector<16x16xf32> -> vector<16x16xf32>
    %128 = vector.broadcast %124 : vector<16x1xf32> to vector<16x16xf32>
    %129 = arith.mulf %128, %127 : vector<16x16xf32>
    %130 = arith.addf %122, %129 : vector<16x16xf32>
    %c7_107 = arith.constant 7 : index
    %c0_108 = arith.constant 0 : index
    %c0_109 = arith.constant 0 : index
    %131 = vector.load %arg7[%c7_107, %c0_108, %c0_109] : memref<9x16x1xf32, #tpu.memory_space<vmem>>, vector<1x16x1xf32>
    %132 = vector.shape_cast %131 : vector<1x16x1xf32> to vector<16x1xf32>
    %c7_110 = arith.constant 7 : index
    %c0_111 = arith.constant 0 : index
    %c0_112 = arith.constant 0 : index
    %133 = vector.load %arg3[%c7_110, %c0_111, %c0_112] : memref<9x64x16xf32, #tpu.memory_space<vmem>>, vector<1x64x16xf32>
    %134 = vector.shape_cast %133 : vector<1x64x16xf32> to vector<64x16xf32>
    %cst_113 = arith.constant dense<0.000000e+00> : vector<16x16xf32>
    %135 = tpu.matmul %75, %134, %cst_113 {dimension_numbers = #tpu.dot_dimension_numbers<[1], [0], [0], [1], [0, 0, 1, 1], [], []>} : vector<16x64xf32>, vector<64x16xf32>, vector<16x16xf32> -> vector<16x16xf32>
    %136 = vector.broadcast %132 : vector<16x1xf32> to vector<16x16xf32>
    %137 = arith.mulf %136, %135 : vector<16x16xf32>
    %138 = arith.addf %130, %137 : vector<16x16xf32>
    %c8_114 = arith.constant 8 : index
    %c0_115 = arith.constant 0 : index
    %c0_116 = arith.constant 0 : index
    %139 = vector.load %arg7[%c8_114, %c0_115, %c0_116] : memref<9x16x1xf32, #tpu.memory_space<vmem>>, vector<1x16x1xf32>
    %140 = vector.shape_cast %139 : vector<1x16x1xf32> to vector<16x1xf32>
    %c8_117 = arith.constant 8 : index
    %c0_118 = arith.constant 0 : index
    %c0_119 = arith.constant 0 : index
    %141 = vector.load %arg3[%c8_117, %c0_118, %c0_119] : memref<9x64x16xf32, #tpu.memory_space<vmem>>, vector<1x64x16xf32>
    %142 = vector.shape_cast %141 : vector<1x64x16xf32> to vector<64x16xf32>
    %cst_120 = arith.constant dense<0.000000e+00> : vector<16x16xf32>
    %143 = tpu.matmul %75, %142, %cst_120 {dimension_numbers = #tpu.dot_dimension_numbers<[1], [0], [0], [1], [0, 0, 1, 1], [], []>} : vector<16x64xf32>, vector<64x16xf32>, vector<16x16xf32> -> vector<16x16xf32>
    %144 = vector.broadcast %140 : vector<16x1xf32> to vector<16x16xf32>
    %145 = arith.mulf %144, %143 : vector<16x16xf32>
    %146 = arith.addf %138, %145 : vector<16x16xf32>
    %c0_121 = arith.constant 0 : index
    %c0_122 = arith.constant 0 : index
    %147 = vector.load %arg8[%c0_121, %c0_122] : memref<16x1xf32, #tpu.memory_space<vmem>>, vector<16x1xf32>
    %148 = vector.broadcast %147 : vector<16x1xf32> to vector<16x16xf32>
    %149 = arith.addf %146, %148 : vector<16x16xf32>
    %c0_123 = arith.constant 0 : index
    %c0_124 = arith.constant 0 : index
    %c0_125 = arith.constant 0 : index
    %150 = vector.load %arg9[%c0_123, %c0_124, %c0_125] : memref<9x16x1xf32, #tpu.memory_space<vmem>>, vector<1x16x1xf32>
    %151 = vector.shape_cast %150 : vector<1x16x1xf32> to vector<16x1xf32>
    %c0_126 = arith.constant 0 : index
    %c0_127 = arith.constant 0 : index
    %c0_128 = arith.constant 0 : index
    %152 = vector.load %arg4[%c0_126, %c0_127, %c0_128] : memref<9x16x4xf32, #tpu.memory_space<vmem>>, vector<1x16x4xf32>
    %153 = vector.shape_cast %152 : vector<1x16x4xf32> to vector<16x4xf32>
    %cst_129 = arith.constant dense<0.000000e+00> : vector<16x4xf32>
    %154 = tpu.matmul %149, %153, %cst_129 {dimension_numbers = #tpu.dot_dimension_numbers<[1], [0], [0], [1], [0, 0, 1, 1], [], []>} : vector<16x16xf32>, vector<16x4xf32>, vector<16x4xf32> -> vector<16x4xf32>
    %155 = vector.broadcast %151 : vector<16x1xf32> to vector<16x4xf32>
    %156 = arith.mulf %155, %154 : vector<16x4xf32>
    %c1_130 = arith.constant 1 : index
    %c0_131 = arith.constant 0 : index
    %c0_132 = arith.constant 0 : index
    %157 = vector.load %arg9[%c1_130, %c0_131, %c0_132] : memref<9x16x1xf32, #tpu.memory_space<vmem>>, vector<1x16x1xf32>
    %158 = vector.shape_cast %157 : vector<1x16x1xf32> to vector<16x1xf32>
    %c1_133 = arith.constant 1 : index
    %c0_134 = arith.constant 0 : index
    %c0_135 = arith.constant 0 : index
    %159 = vector.load %arg4[%c1_133, %c0_134, %c0_135] : memref<9x16x4xf32, #tpu.memory_space<vmem>>, vector<1x16x4xf32>
    %160 = vector.shape_cast %159 : vector<1x16x4xf32> to vector<16x4xf32>
    %cst_136 = arith.constant dense<0.000000e+00> : vector<16x4xf32>
    %161 = tpu.matmul %149, %160, %cst_136 {dimension_numbers = #tpu.dot_dimension_numbers<[1], [0], [0], [1], [0, 0, 1, 1], [], []>} : vector<16x16xf32>, vector<16x4xf32>, vector<16x4xf32> -> vector<16x4xf32>
    %162 = vector.broadcast %158 : vector<16x1xf32> to vector<16x4xf32>
    %163 = arith.mulf %162, %161 : vector<16x4xf32>
    %164 = arith.addf %156, %163 : vector<16x4xf32>
    %c2_137 = arith.constant 2 : index
    %c0_138 = arith.constant 0 : index
    %c0_139 = arith.constant 0 : index
    %165 = vector.load %arg9[%c2_137, %c0_138, %c0_139] : memref<9x16x1xf32, #tpu.memory_space<vmem>>, vector<1x16x1xf32>
    %166 = vector.shape_cast %165 : vector<1x16x1xf32> to vector<16x1xf32>
    %c2_140 = arith.constant 2 : index
    %c0_141 = arith.constant 0 : index
    %c0_142 = arith.constant 0 : index
    %167 = vector.load %arg4[%c2_140, %c0_141, %c0_142] : memref<9x16x4xf32, #tpu.memory_space<vmem>>, vector<1x16x4xf32>
    %168 = vector.shape_cast %167 : vector<1x16x4xf32> to vector<16x4xf32>
    %cst_143 = arith.constant dense<0.000000e+00> : vector<16x4xf32>
    %169 = tpu.matmul %149, %168, %cst_143 {dimension_numbers = #tpu.dot_dimension_numbers<[1], [0], [0], [1], [0, 0, 1, 1], [], []>} : vector<16x16xf32>, vector<16x4xf32>, vector<16x4xf32> -> vector<16x4xf32>
    %170 = vector.broadcast %166 : vector<16x1xf32> to vector<16x4xf32>
    %171 = arith.mulf %170, %169 : vector<16x4xf32>
    %172 = arith.addf %164, %171 : vector<16x4xf32>
    %c3_144 = arith.constant 3 : index
    %c0_145 = arith.constant 0 : index
    %c0_146 = arith.constant 0 : index
    %173 = vector.load %arg9[%c3_144, %c0_145, %c0_146] : memref<9x16x1xf32, #tpu.memory_space<vmem>>, vector<1x16x1xf32>
    %174 = vector.shape_cast %173 : vector<1x16x1xf32> to vector<16x1xf32>
    %c3_147 = arith.constant 3 : index
    %c0_148 = arith.constant 0 : index
    %c0_149 = arith.constant 0 : index
    %175 = vector.load %arg4[%c3_147, %c0_148, %c0_149] : memref<9x16x4xf32, #tpu.memory_space<vmem>>, vector<1x16x4xf32>
    %176 = vector.shape_cast %175 : vector<1x16x4xf32> to vector<16x4xf32>
    %cst_150 = arith.constant dense<0.000000e+00> : vector<16x4xf32>
    %177 = tpu.matmul %149, %176, %cst_150 {dimension_numbers = #tpu.dot_dimension_numbers<[1], [0], [0], [1], [0, 0, 1, 1], [], []>} : vector<16x16xf32>, vector<16x4xf32>, vector<16x4xf32> -> vector<16x4xf32>
    %178 = vector.broadcast %174 : vector<16x1xf32> to vector<16x4xf32>
    %179 = arith.mulf %178, %177 : vector<16x4xf32>
    %180 = arith.addf %172, %179 : vector<16x4xf32>
    %c4_151 = arith.constant 4 : index
    %c0_152 = arith.constant 0 : index
    %c0_153 = arith.constant 0 : index
    %181 = vector.load %arg9[%c4_151, %c0_152, %c0_153] : memref<9x16x1xf32, #tpu.memory_space<vmem>>, vector<1x16x1xf32>
    %182 = vector.shape_cast %181 : vector<1x16x1xf32> to vector<16x1xf32>
    %c4_154 = arith.constant 4 : index
    %c0_155 = arith.constant 0 : index
    %c0_156 = arith.constant 0 : index
    %183 = vector.load %arg4[%c4_154, %c0_155, %c0_156] : memref<9x16x4xf32, #tpu.memory_space<vmem>>, vector<1x16x4xf32>
    %184 = vector.shape_cast %183 : vector<1x16x4xf32> to vector<16x4xf32>
    %cst_157 = arith.constant dense<0.000000e+00> : vector<16x4xf32>
    %185 = tpu.matmul %149, %184, %cst_157 {dimension_numbers = #tpu.dot_dimension_numbers<[1], [0], [0], [1], [0, 0, 1, 1], [], []>} : vector<16x16xf32>, vector<16x4xf32>, vector<16x4xf32> -> vector<16x4xf32>
    %186 = vector.broadcast %182 : vector<16x1xf32> to vector<16x4xf32>
    %187 = arith.mulf %186, %185 : vector<16x4xf32>
    %188 = arith.addf %180, %187 : vector<16x4xf32>
    %c5_158 = arith.constant 5 : index
    %c0_159 = arith.constant 0 : index
    %c0_160 = arith.constant 0 : index
    %189 = vector.load %arg9[%c5_158, %c0_159, %c0_160] : memref<9x16x1xf32, #tpu.memory_space<vmem>>, vector<1x16x1xf32>
    %190 = vector.shape_cast %189 : vector<1x16x1xf32> to vector<16x1xf32>
    %c5_161 = arith.constant 5 : index
    %c0_162 = arith.constant 0 : index
    %c0_163 = arith.constant 0 : index
    %191 = vector.load %arg4[%c5_161, %c0_162, %c0_163] : memref<9x16x4xf32, #tpu.memory_space<vmem>>, vector<1x16x4xf32>
    %192 = vector.shape_cast %191 : vector<1x16x4xf32> to vector<16x4xf32>
    %cst_164 = arith.constant dense<0.000000e+00> : vector<16x4xf32>
    %193 = tpu.matmul %149, %192, %cst_164 {dimension_numbers = #tpu.dot_dimension_numbers<[1], [0], [0], [1], [0, 0, 1, 1], [], []>} : vector<16x16xf32>, vector<16x4xf32>, vector<16x4xf32> -> vector<16x4xf32>
    %194 = vector.broadcast %190 : vector<16x1xf32> to vector<16x4xf32>
    %195 = arith.mulf %194, %193 : vector<16x4xf32>
    %196 = arith.addf %188, %195 : vector<16x4xf32>
    %c6_165 = arith.constant 6 : index
    %c0_166 = arith.constant 0 : index
    %c0_167 = arith.constant 0 : index
    %197 = vector.load %arg9[%c6_165, %c0_166, %c0_167] : memref<9x16x1xf32, #tpu.memory_space<vmem>>, vector<1x16x1xf32>
    %198 = vector.shape_cast %197 : vector<1x16x1xf32> to vector<16x1xf32>
    %c6_168 = arith.constant 6 : index
    %c0_169 = arith.constant 0 : index
    %c0_170 = arith.constant 0 : index
    %199 = vector.load %arg4[%c6_168, %c0_169, %c0_170] : memref<9x16x4xf32, #tpu.memory_space<vmem>>, vector<1x16x4xf32>
    %200 = vector.shape_cast %199 : vector<1x16x4xf32> to vector<16x4xf32>
    %cst_171 = arith.constant dense<0.000000e+00> : vector<16x4xf32>
    %201 = tpu.matmul %149, %200, %cst_171 {dimension_numbers = #tpu.dot_dimension_numbers<[1], [0], [0], [1], [0, 0, 1, 1], [], []>} : vector<16x16xf32>, vector<16x4xf32>, vector<16x4xf32> -> vector<16x4xf32>
    %202 = vector.broadcast %198 : vector<16x1xf32> to vector<16x4xf32>
    %203 = arith.mulf %202, %201 : vector<16x4xf32>
    %204 = arith.addf %196, %203 : vector<16x4xf32>
    %c7_172 = arith.constant 7 : index
    %c0_173 = arith.constant 0 : index
    %c0_174 = arith.constant 0 : index
    %205 = vector.load %arg9[%c7_172, %c0_173, %c0_174] : memref<9x16x1xf32, #tpu.memory_space<vmem>>, vector<1x16x1xf32>
    %206 = vector.shape_cast %205 : vector<1x16x1xf32> to vector<16x1xf32>
    %c7_175 = arith.constant 7 : index
    %c0_176 = arith.constant 0 : index
    %c0_177 = arith.constant 0 : index
    %207 = vector.load %arg4[%c7_175, %c0_176, %c0_177] : memref<9x16x4xf32, #tpu.memory_space<vmem>>, vector<1x16x4xf32>
    %208 = vector.shape_cast %207 : vector<1x16x4xf32> to vector<16x4xf32>
    %cst_178 = arith.constant dense<0.000000e+00> : vector<16x4xf32>
    %209 = tpu.matmul %149, %208, %cst_178 {dimension_numbers = #tpu.dot_dimension_numbers<[1], [0], [0], [1], [0, 0, 1, 1], [], []>} : vector<16x16xf32>, vector<16x4xf32>, vector<16x4xf32> -> vector<16x4xf32>
    %210 = vector.broadcast %206 : vector<16x1xf32> to vector<16x4xf32>
    %211 = arith.mulf %210, %209 : vector<16x4xf32>
    %212 = arith.addf %204, %211 : vector<16x4xf32>
    %c8_179 = arith.constant 8 : index
    %c0_180 = arith.constant 0 : index
    %c0_181 = arith.constant 0 : index
    %213 = vector.load %arg9[%c8_179, %c0_180, %c0_181] : memref<9x16x1xf32, #tpu.memory_space<vmem>>, vector<1x16x1xf32>
    %214 = vector.shape_cast %213 : vector<1x16x1xf32> to vector<16x1xf32>
    %c8_182 = arith.constant 8 : index
    %c0_183 = arith.constant 0 : index
    %c0_184 = arith.constant 0 : index
    %215 = vector.load %arg4[%c8_182, %c0_183, %c0_184] : memref<9x16x4xf32, #tpu.memory_space<vmem>>, vector<1x16x4xf32>
    %216 = vector.shape_cast %215 : vector<1x16x4xf32> to vector<16x4xf32>
    %cst_185 = arith.constant dense<0.000000e+00> : vector<16x4xf32>
    %217 = tpu.matmul %149, %216, %cst_185 {dimension_numbers = #tpu.dot_dimension_numbers<[1], [0], [0], [1], [0, 0, 1, 1], [], []>} : vector<16x16xf32>, vector<16x4xf32>, vector<16x4xf32> -> vector<16x4xf32>
    %218 = vector.broadcast %214 : vector<16x1xf32> to vector<16x4xf32>
    %219 = arith.mulf %218, %217 : vector<16x4xf32>
    %220 = arith.addf %212, %219 : vector<16x4xf32>
    %c0_186 = arith.constant 0 : index
    %c0_187 = arith.constant 0 : index
    %221 = vector.load %arg10[%c0_186, %c0_187] : memref<16x1xf32, #tpu.memory_space<vmem>>, vector<16x1xf32>
    %222 = vector.broadcast %221 : vector<16x1xf32> to vector<16x4xf32>
    %223 = arith.addf %220, %222 : vector<16x4xf32>
    %c0_188 = arith.constant 0 : index
    %c0_189 = arith.constant 0 : index
    %224 = vector.load %arg11[%c0_188, %c0_189] : memref<24x16xf32, #tpu.memory_space<vmem>>, vector<24x16xf32>
    %cst_190 = arith.constant dense<0.000000e+00> : vector<24x4xf32>
    %225 = tpu.matmul %224, %223, %cst_190 {dimension_numbers = #tpu.dot_dimension_numbers<[1], [0], [0], [1], [0, 0, 1, 1], [], []>} : vector<24x16xf32>, vector<16x4xf32>, vector<24x4xf32> -> vector<24x4xf32>
    %c0_191 = arith.constant 0 : index
    %c0_192 = arith.constant 0 : index
    %226 = vector.load %arg12[%c0_191, %c0_192] : memref<24x1xf32, #tpu.memory_space<vmem>>, vector<24x1xf32>
    %227 = vector.broadcast %226 : vector<24x1xf32> to vector<24x4xf32>
    %228 = arith.addf %225, %227 : vector<24x4xf32>
    %229 = vector.extract_strided_slice %228 {offsets = [0, 0], sizes = [8, 4], strides = [1, 1]} : vector<24x4xf32> to vector<8x4xf32>
    %230 = vector.extract_strided_slice %228 {offsets = [8, 0], sizes = [8, 4], strides = [1, 1]} : vector<24x4xf32> to vector<8x4xf32>
    %231 = vector.extract_strided_slice %228 {offsets = [16, 0], sizes = [8, 4], strides = [1, 1]} : vector<24x4xf32> to vector<8x4xf32>
    %cst_193 = arith.constant dense<0.000000e+00> : vector<8x8xf32>
    %232 = tpu.matmul %230, %231, %cst_193 {dimension_numbers = #tpu.dot_dimension_numbers<[1], [1], [0], [0], [0, 0, 1, 0], [], []>} : vector<8x4xf32>, vector<8x4xf32>, vector<8x8xf32> -> vector<8x8xf32>
    %cst_194 = arith.constant dense<0xFF800000> : vector<8xf32>
    %233 = vector.multi_reduction <maximumf>, %232, %cst_194 [0] : vector<8x8xf32> to vector<8xf32>
    %234 = vector.shape_cast %233 : vector<8xf32> to vector<1x8xf32>
    %235 = vector.broadcast %234 : vector<1x8xf32> to vector<8x8xf32>
    %236 = arith.subf %232, %235 : vector<8x8xf32>
    %237 = math.exp %236 : vector<8x8xf32>
    %cst_195 = arith.constant dense<0.000000e+00> : vector<8xf32>
    %238 = vector.multi_reduction <add>, %237, %cst_195 [0] : vector<8x8xf32> to vector<8xf32>
    %239 = vector.shape_cast %238 : vector<8xf32> to vector<1x8xf32>
    %240 = vector.broadcast %239 : vector<1x8xf32> to vector<8x8xf32>
    %241 = arith.divf %237, %240 : vector<8x8xf32>
    %cst_196 = arith.constant dense<0.000000e+00> : vector<8x4xf32>
    %242 = tpu.matmul %241, %229, %cst_196 {dimension_numbers = #tpu.dot_dimension_numbers<[1], [0], [0], [1], [0, 0, 1, 1], [], []>} : vector<8x8xf32>, vector<8x4xf32>, vector<8x4xf32> -> vector<8x4xf32>
    %c0_197 = arith.constant 0 : index
    %c0_198 = arith.constant 0 : index
    %243 = vector.load %arg13[%c0_197, %c0_198] : memref<8x8xf32, #tpu.memory_space<vmem>>, vector<8x8xf32>
    %cst_199 = arith.constant dense<0.000000e+00> : vector<8x4xf32>
    %244 = tpu.matmul %243, %242, %cst_199 {dimension_numbers = #tpu.dot_dimension_numbers<[1], [0], [0], [1], [0, 0, 1, 1], [], []>} : vector<8x8xf32>, vector<8x4xf32>, vector<8x4xf32> -> vector<8x4xf32>
    %c0_200 = arith.constant 0 : index
    %c0_201 = arith.constant 0 : index
    %245 = vector.load %arg14[%c0_200, %c0_201] : memref<8x1xf32, #tpu.memory_space<vmem>>, vector<8x1xf32>
    %246 = vector.broadcast %245 : vector<8x1xf32> to vector<8x4xf32>
    %247 = arith.addf %244, %246 : vector<8x4xf32>
    %c0_202 = arith.constant 0 : index
    %c0_203 = arith.constant 0 : index
    %248 = vector.load %arg15[%c0_202, %c0_203] : memref<16x8xf32, #tpu.memory_space<vmem>>, vector<16x8xf32>
    %cst_204 = arith.constant dense<0.000000e+00> : vector<16x4xf32>
    %249 = tpu.matmul %248, %247, %cst_204 {dimension_numbers = #tpu.dot_dimension_numbers<[1], [0], [0], [1], [0, 0, 1, 1], [], []>} : vector<16x8xf32>, vector<8x4xf32>, vector<16x4xf32> -> vector<16x4xf32>
    %c0_205 = arith.constant 0 : index
    %c0_206 = arith.constant 0 : index
    %250 = vector.load %arg16[%c0_205, %c0_206] : memref<16x1xf32, #tpu.memory_space<vmem>>, vector<16x1xf32>
    %251 = vector.broadcast %250 : vector<16x1xf32> to vector<16x4xf32>
    %252 = arith.addf %249, %251 : vector<16x4xf32>
    %253 = arith.addf %252, %223 : vector<16x4xf32>
    %cst_207 = arith.constant 0.000000e+00 : f32
    %254 = vector.broadcast %cst_207 : f32 to vector<16x4xf32>
    %255 = arith.maximumf %253, %254 : vector<16x4xf32>
    %c0_208 = arith.constant 0 : index
    %c0_209 = arith.constant 0 : index
    %256 = vector.load %arg17[%c0_208, %c0_209] : memref<4x256xf32, #tpu.memory_space<vmem>>, vector<4x256xf32>
    %cst_210 = arith.constant dense<0.000000e+00> : vector<16x256xf32>
    %257 = tpu.matmul %255, %256, %cst_210 {dimension_numbers = #tpu.dot_dimension_numbers<[1], [0], [0], [1], [0, 0, 1, 1], [], []>} : vector<16x4xf32>, vector<4x256xf32>, vector<16x256xf32> -> vector<16x256xf32>
    %258 = arith.mulf %1, %257 : vector<16x256xf32>
    %259 = arith.addf %258, %1 : vector<16x256xf32>
    %c0_211 = arith.constant 0 : index
    %c0_212 = arith.constant 0 : index
    %260 = vector.load %arg18[%c0_211, %c0_212] : memref<12x16xf32, #tpu.memory_space<vmem>>, vector<12x16xf32>
    %cst_213 = arith.constant dense<0.000000e+00> : vector<12x256xf32>
    %261 = tpu.matmul %260, %1, %cst_213 {dimension_numbers = #tpu.dot_dimension_numbers<[1], [0], [0], [1], [0, 0, 1, 1], [], []>} : vector<12x16xf32>, vector<16x256xf32>, vector<12x256xf32> -> vector<12x256xf32>
    %c0_214 = arith.constant 0 : index
    %c0_215 = arith.constant 0 : index
    %262 = vector.load %arg19[%c0_214, %c0_215] : memref<12x1xf32, #tpu.memory_space<vmem>>, vector<12x1xf32>
    %263 = vector.broadcast %262 : vector<12x1xf32> to vector<12x256xf32>
    %264 = arith.addf %261, %263 : vector<12x256xf32>
    %265 = vector.extract_strided_slice %264 {offsets = [0, 0], sizes = [8, 256], strides = [1, 1]} : vector<12x256xf32> to vector<8x256xf32>
    %266 = vector.extract_strided_slice %264 {offsets = [8, 0], sizes = [4, 256], strides = [1, 1]} : vector<12x256xf32> to vector<4x256xf32>
    %cst_216 = arith.constant dense<0.000000e+00> : vector<8x4xf32>
    %267 = tpu.matmul %265, %266, %cst_216 {dimension_numbers = #tpu.dot_dimension_numbers<[1], [1], [0], [0], [0, 0, 1, 0], [], []>} : vector<8x256xf32>, vector<4x256xf32>, vector<8x4xf32> -> vector<8x4xf32>
    %c0_217 = arith.constant 0 : index
    %c0_218 = arith.constant 0 : index
    %268 = vector.load %arg20[%c0_217, %c0_218] : memref<4x4xf32, #tpu.memory_space<vmem>>, vector<4x4xf32>
    %cst_219 = arith.constant dense<0.000000e+00> : vector<8x4xf32>
    %269 = tpu.matmul %267, %268, %cst_219 {dimension_numbers = #tpu.dot_dimension_numbers<[1], [0], [0], [1], [0, 0, 1, 1], [], []>} : vector<8x4xf32>, vector<4x4xf32>, vector<8x4xf32> -> vector<8x4xf32>
    %c0_220 = arith.constant 0 : index
    %c0_221 = arith.constant 0 : index
    %270 = vector.load %arg21[%c0_220, %c0_221] : memref<1x4xf32, #tpu.memory_space<vmem>>, vector<1x4xf32>
    %271 = vector.broadcast %270 : vector<1x4xf32> to vector<8x4xf32>
    %272 = arith.addf %269, %271 : vector<8x4xf32>
    %273 = arith.addf %272, %267 : vector<8x4xf32>
    %c0_222 = arith.constant 0 : index
    %c0_223 = arith.constant 0 : index
    %274 = vector.load %arg22[%c0_222, %c0_223] : memref<8x8xf32, #tpu.memory_space<vmem>>, vector<8x8xf32>
    %cst_224 = arith.constant dense<0.000000e+00> : vector<8x4xf32>
    %275 = tpu.matmul %274, %273, %cst_224 {dimension_numbers = #tpu.dot_dimension_numbers<[1], [0], [0], [1], [0, 0, 1, 1], [], []>} : vector<8x8xf32>, vector<8x4xf32>, vector<8x4xf32> -> vector<8x4xf32>
    %c0_225 = arith.constant 0 : index
    %c0_226 = arith.constant 0 : index
    %276 = vector.load %arg23[%c0_225, %c0_226] : memref<8x1xf32, #tpu.memory_space<vmem>>, vector<8x1xf32>
    %277 = vector.broadcast %276 : vector<8x1xf32> to vector<8x4xf32>
    %278 = arith.addf %275, %277 : vector<8x4xf32>
    %cst_227 = arith.constant dense<0.000000e+00> : vector<8x256xf32>
    %279 = tpu.matmul %278, %266, %cst_227 {dimension_numbers = #tpu.dot_dimension_numbers<[1], [0], [0], [1], [0, 0, 1, 1], [], []>} : vector<8x4xf32>, vector<4x256xf32>, vector<8x256xf32> -> vector<8x256xf32>
    %c0_228 = arith.constant 0 : index
    %c0_229 = arith.constant 0 : index
    %280 = vector.load %arg24[%c0_228, %c0_229] : memref<16x8xf32, #tpu.memory_space<vmem>>, vector<16x8xf32>
    %cst_230 = arith.constant dense<0.000000e+00> : vector<16x256xf32>
    %281 = tpu.matmul %280, %279, %cst_230 {dimension_numbers = #tpu.dot_dimension_numbers<[1], [0], [0], [1], [0, 0, 1, 1], [], []>} : vector<16x8xf32>, vector<8x256xf32>, vector<16x256xf32> -> vector<16x256xf32>
    %c0_231 = arith.constant 0 : index
    %c0_232 = arith.constant 0 : index
    %282 = vector.load %arg25[%c0_231, %c0_232] : memref<16x1xf32, #tpu.memory_space<vmem>>, vector<16x1xf32>
    %283 = vector.broadcast %282 : vector<16x1xf32> to vector<16x256xf32>
    %284 = arith.addf %281, %283 : vector<16x256xf32>
    %285 = arith.addf %284, %1 : vector<16x256xf32>
    %cst_233 = arith.constant 0.000000e+00 : f32
    %286 = vector.broadcast %cst_233 : f32 to vector<16x256xf32>
    %287 = arith.maximumf %285, %286 : vector<16x256xf32>
    %c0_234 = arith.constant 0 : index
    %c0_235 = arith.constant 0 : index
    %288 = vector.load %arg26[%c0_234, %c0_235] : memref<16x16xf32, #tpu.memory_space<vmem>>, vector<16x16xf32>
    %cst_236 = arith.constant dense<0.000000e+00> : vector<16x256xf32>
    %289 = tpu.matmul %288, %259, %cst_236 {dimension_numbers = #tpu.dot_dimension_numbers<[1], [0], [0], [1], [0, 0, 1, 1], [], []>} : vector<16x16xf32>, vector<16x256xf32>, vector<16x256xf32> -> vector<16x256xf32>
    %c0_237 = arith.constant 0 : index
    %c0_238 = arith.constant 0 : index
    %290 = vector.load %arg27[%c0_237, %c0_238] : memref<16x16xf32, #tpu.memory_space<vmem>>, vector<16x16xf32>
    %cst_239 = arith.constant dense<0.000000e+00> : vector<16x256xf32>
    %291 = tpu.matmul %290, %287, %cst_239 {dimension_numbers = #tpu.dot_dimension_numbers<[1], [0], [0], [1], [0, 0, 1, 1], [], []>} : vector<16x16xf32>, vector<16x256xf32>, vector<16x256xf32> -> vector<16x256xf32>
    %292 = arith.addf %289, %291 : vector<16x256xf32>
    %c0_240 = arith.constant 0 : index
    %c0_241 = arith.constant 0 : index
    %293 = vector.load %arg28[%c0_240, %c0_241] : memref<16x1xf32, #tpu.memory_space<vmem>>, vector<16x1xf32>
    %294 = vector.broadcast %293 : vector<16x1xf32> to vector<16x256xf32>
    %295 = arith.addf %292, %294 : vector<16x256xf32>
    %c0_242 = arith.constant 0 : index
    %c0_243 = arith.constant 0 : index
    %c0_244 = arith.constant 0 : index
    %296 = vector.load %arg29[%c0_242, %c0_243, %c0_244] : memref<1x16x256xf32, #tpu.memory_space<vmem>>, vector<1x16x256xf32>
    %297 = vector.shape_cast %296 : vector<1x16x256xf32> to vector<16x256xf32>
    %298 = vector.shape_cast %295 : vector<16x256xf32> to vector<1x16x256xf32>
    tpu.vector_store %arg29[%c0_242, %c0_243, %c0_244], %298 {strides = array<i32>} : memref<1x16x256xf32, #tpu.memory_space<vmem>>, vector<1x16x256xf32>,
    return
  }
  func.func @transform_0(%arg0: i32) -> (i32, i32, i32) {
    %c0_i32 = arith.constant 0 : i32
    %c0_i32_0 = arith.constant 0 : i32
    %c0_i32_1 = arith.constant 0 : i32
    return %arg0, %c0_i32, %c0_i32_0 : i32, i32, i32
  }
  func.func @transform_1(%arg0: i32) -> (i32, i32, i32) {
    %c0_i32 = arith.constant 0 : i32
    %c0_i32_0 = arith.constant 0 : i32
    %c0_i32_1 = arith.constant 0 : i32
    %c0_i32_2 = arith.constant 0 : i32
    return %c0_i32, %c0_i32_0, %c0_i32_1 : i32, i32, i32
  }
  func.func @transform_2(%arg0: i32) -> (i32, i32, i32) {
    %c0_i32 = arith.constant 0 : i32
    %c0_i32_0 = arith.constant 0 : i32
    %c0_i32_1 = arith.constant 0 : i32
    %c0_i32_2 = arith.constant 0 : i32
    return %c0_i32, %c0_i32_0, %c0_i32_1 : i32, i32, i32
  }
  func.func @transform_3(%arg0: i32) -> (i32, i32, i32) {
    %c0_i32 = arith.constant 0 : i32
    %c0_i32_0 = arith.constant 0 : i32
    %c0_i32_1 = arith.constant 0 : i32
    %c0_i32_2 = arith.constant 0 : i32
    return %c0_i32, %c0_i32_0, %c0_i32_1 : i32, i32, i32
  }
  func.func @transform_4(%arg0: i32) -> (i32, i32, i32) {
    %c0_i32 = arith.constant 0 : i32
    %c0_i32_0 = arith.constant 0 : i32
    %c0_i32_1 = arith.constant 0 : i32
    %c0_i32_2 = arith.constant 0 : i32
    return %c0_i32, %c0_i32_0, %c0_i32_1 : i32, i32, i32
  }
  func.func @transform_5(%arg0: i32) -> (i32, i32) {
    %c0_i32 = arith.constant 0 : i32
    %c0_i32_0 = arith.constant 0 : i32
    %c0_i32_1 = arith.constant 0 : i32
    return %c0_i32, %c0_i32_0 : i32, i32
  }
  func.func @transform_6(%arg0: i32) -> (i32, i32, i32) {
    %c0_i32 = arith.constant 0 : i32
    %c0_i32_0 = arith.constant 0 : i32
    %c0_i32_1 = arith.constant 0 : i32
    %c0_i32_2 = arith.constant 0 : i32
    return %c0_i32, %c0_i32_0, %c0_i32_1 : i32, i32, i32
  }
  func.func @transform_7(%arg0: i32) -> (i32, i32) {
    %c0_i32 = arith.constant 0 : i32
    %c0_i32_0 = arith.constant 0 : i32
    %c0_i32_1 = arith.constant 0 : i32
    return %c0_i32, %c0_i32_0 : i32, i32
  }
  func.func @transform_8(%arg0: i32) -> (i32, i32, i32) {
    %c0_i32 = arith.constant 0 : i32
    %c0_i32_0 = arith.constant 0 : i32
    %c0_i32_1 = arith.constant 0 : i32
    %c0_i32_2 = arith.constant 0 : i32
    return %c0_i32, %c0_i32_0, %c0_i32_1 : i32, i32, i32
  }
  func.func @transform_9(%arg0: i32) -> (i32, i32) {
    %c0_i32 = arith.constant 0 : i32
    %c0_i32_0 = arith.constant 0 : i32
    %c0_i32_1 = arith.constant 0 : i32
    return %c0_i32, %c0_i32_0 : i32, i32
  }
  func.func @transform_10(%arg0: i32) -> (i32, i32) {
    %c0_i32 = arith.constant 0 : i32
    %c0_i32_0 = arith.constant 0 : i32
    %c0_i32_1 = arith.constant 0 : i32
    return %c0_i32, %c0_i32_0 : i32, i32
  }
  func.func @transform_11(%arg0: i32) -> (i32, i32) {
    %c0_i32 = arith.constant 0 : i32
    %c0_i32_0 = arith.constant 0 : i32
    %c0_i32_1 = arith.constant 0 : i32
    return %c0_i32, %c0_i32_0 : i32, i32
  }
  func.func @transform_12(%arg0: i32) -> (i32, i32) {
    %c0_i32 = arith.constant 0 : i32
    %c0_i32_0 = arith.constant 0 : i32
    %c0_i32_1 = arith.constant 0 : i32
    return %c0_i32, %c0_i32_0 : i32, i32
  }
  func.func @transform_13(%arg0: i32) -> (i32, i32) {
    %c0_i32 = arith.constant 0 : i32
    %c0_i32_0 = arith.constant 0 : i32
    %c0_i32_1 = arith.constant 0 : i32
    return %c0_i32, %c0_i32_0 : i32, i32
  }
  func.func @transform_14(%arg0: i32) -> (i32, i32) {
    %c0_i32 = arith.constant 0 : i32
    %c0_i32_0 = arith.constant 0 : i32
    %c0_i32_1 = arith.constant 0 : i32
    return %c0_i32, %c0_i32_0 : i32, i32
  }
  func.func @transform_15(%arg0: i32) -> (i32, i32) {
    %c0_i32 = arith.constant 0 : i32
    %c0_i32_0 = arith.constant 0 : i32
    %c0_i32_1 = arith.constant 0 : i32
    return %c0_i32, %c0_i32_0 : i32, i32
  }
  func.func @transform_16(%arg0: i32) -> (i32, i32) {
    %c0_i32 = arith.constant 0 : i32
    %c0_i32_0 = arith.constant 0 : i32
    %c0_i32_1 = arith.constant 0 : i32
    return %c0_i32, %c0_i32_0 : i32, i32
  }
  func.func @transform_17(%arg0: i32) -> (i32, i32) {
    %c0_i32 = arith.constant 0 : i32
    %c0_i32_0 = arith.constant 0 : i32
    %c0_i32_1 = arith.constant 0 : i32
    return %c0_i32, %c0_i32_0 : i32, i32
  }
  func.func @transform_18(%arg0: i32) -> (i32, i32) {
    %c0_i32 = arith.constant 0 : i32
    %c0_i32_0 = arith.constant 0 : i32
    %c0_i32_1 = arith.constant 0 : i32
    return %c0_i32, %c0_i32_0 : i32, i32
  }
  func.func @transform_19(%arg0: i32) -> (i32, i32) {
    %c0_i32 = arith.constant 0 : i32
    %c0_i32_0 = arith.constant 0 : i32
    %c0_i32_1 = arith.constant 0 : i32
    return %c0_i32, %c0_i32_0 : i32, i32
  }
  func.func @transform_20(%arg0: i32) -> (i32, i32) {
    %c0_i32 = arith.constant 0 : i32
    %c0_i32_0 = arith.constant 0 : i32
    %c0_i32_1 = arith.constant 0 : i32
    return %c0_i32, %c0_i32_0 : i32, i32
  }
  func.func @transform_21(%arg0: i32) -> (i32, i32) {
    %c0_i32 = arith.constant 0 : i32
    %c0_i32_0 = arith.constant 0 : i32
    %c0_i32_1 = arith.constant 0 : i32
    return %c0_i32, %c0_i32_0 : i32, i32
  }
  func.func @transform_22(%arg0: i32) -> (i32, i32) {
    %c0_i32 = arith.constant 0 : i32
    %c0_i32_0 = arith.constant 0 : i32
    %c0_i32_1 = arith.constant 0 : i32
    return %c0_i32, %c0_i32_0 : i32, i32
  }
  func.func @transform_23(%arg0: i32) -> (i32, i32) {
    %c0_i32 = arith.constant 0 : i32
    %c0_i32_0 = arith.constant 0 : i32
    %c0_i32_1 = arith.constant 0 : i32
    return %c0_i32, %c0_i32_0 : i32, i32
  }
  func.func @transform_24(%arg0: i32) -> (i32, i32) {
    %c0_i32 = arith.constant 0 : i32
    %c0_i32_0 = arith.constant 0 : i32
    %c0_i32_1 = arith.constant 0 : i32
    return %c0_i32, %c0_i32_0 : i32, i32
  }
  func.func @transform_25(%arg0: i32) -> (i32, i32) {
    %c0_i32 = arith.constant 0 : i32
    %c0_i32_0 = arith.constant 0 : i32
    %c0_i32_1 = arith.constant 0 : i32
    return %c0_i32, %c0_i32_0 : i32, i32
  }
  func.func @transform_26(%arg0: i32) -> (i32, i32) {
    %c0_i32 = arith.constant 0 : i32
    %c0_i32_0 = arith.constant 0 : i32
    %c0_i32_1 = arith.constant 0 : i32
    return %c0_i32, %c0_i32_0 : i32, i32
  }
  func.func @transform_27(%arg0: i32) -> (i32, i32) {
    %c0_i32 = arith.constant 0 : i32
    %c0_i32_0 = arith.constant 0 : i32
    %c0_i32_1 = arith.constant 0 : i32
    return %c0_i32, %c0_i32_0 : i32, i32
  }
  func.func @transform_28(%arg0: i32) -> (i32, i32, i32) {
    %c0_i32 = arith.constant 0 : i32
    %c0_i32_0 = arith.constant 0 : i32
    %c0_i32_1 = arith.constant 0 : i32
    return %arg0, %c0_i32, %c0_i32_0 : i32, i32, i32
  }
}

</mosaic_0001>

<bundles_post_ra>
// kernel: _lambda_.1
= control target key start
LH: loop header
LB: loop body
LE: loop exit
PB: predicated region body
PF: predicated region fallthrough
CT: control target
= control target key end

     0   :  { %s8406_s0 = inlined_call_operand.vmem [shape: f32[2,16,256], index: 0, kind: input, shape index: {}]   ;;  %s8407_s1 = inlined_call_operand.hbm [shape: f32[9,256,64], index: 1, kind: input, shape index: {}]   ;;  %s8408_s2 = inlined_call_operand.hbm [shape: f32[9,64,16], index: 2, kind: input, shape index: {}]   ;;  %s8409_s3 = inlined_call_operand.hbm [shape: f32[9,16,4], index: 3, kind: input, shape index: {}]   ;;  %s8410_s4 = inlined_call_operand.hbm [shape: f32[9,16,1], index: 4, kind: input, shape index: {}]   ;;  %s8411_s5 = inlined_call_operand.hbm [shape: f32[16,1], index: 5, kind: input, shape index: {}]   ;;  %s8412_s6 = inlined_call_operand.hbm [shape: f32[9,16,1], index: 6, kind: input, shape index: {}]   ;;  %s8413_s7 = inlined_call_operand.hbm [shape: f32[16,1], index: 7, kind: input, shape index: {}]   ;;  %s8414_s8 = inlined_call_operand.hbm [shape: f32[9,16,1], index: 8, kind: input, shape index: {}]   ;;  %s8415_s9 = inlined_call_operand.hbm [shape: f32[16,1], index: 9, kind: input, shape index: {}]   ;;  %s8416_s10 = inlined_call_operand.hbm [shape: f32[24,16], index: 10, kind: input, shape index: {}]   ;;  %s8417_s11 = inlined_call_operand.hbm [shape: f32[24,1], index: 11, kind: input, shape index: {}]   ;;  %s8418_s12 = inlined_call_operand.hbm [shape: f32[8,8], index: 12, kind: input, shape index: {}]   ;;  %s8419_s13 = inlined_call_operand.hbm [shape: f32[8,1], index: 13, kind: input, shape index: {}]   ;;  %s8420_s14 = inlined_call_operand.hbm [shape: f32[16,8], index: 14, kind: input, shape index: {}]   ;;  %s8421_s15 = inlined_call_operand.hbm [shape: f32[16,1], index: 15, kind: input, shape index: {}]   ;;  %s8422_s16 = inlined_call_operand.vmem [shape: f32[4,256], index: 16, kind: input, shape index: {}]   ;;  %s8423_s17 = inlined_call_operand.hbm [shape: f32[12,16], index: 17, kind: input, shape index: {}]   ;;  %s8424_s18 = inlined_call_operand.hbm [shape: f32[12,1], index: 18, kind: input, shape index: {}]   ;;  %s8425_s19 = inlined_call_operand.hbm [shape: f32[4,4], index: 19, kind: input, shape index: {}]   ;;  %s8426_s20 = inlined_call_operand.hbm [shape: f32[1,4], index: 20, kind: input, shape index: {}]   ;;  %s8427_s21 = inlined_call_operand.hbm [shape: f32[8,8], index: 21, kind: input, shape index: {}]   ;;  %s8428_s22 = inlined_call_operand.hbm [shape: f32[8,1], index: 22, kind: input, shape index: {}]   ;;  %s8429_s23 = inlined_call_operand.hbm [shape: f32[16,8], index: 23, kind: input, shape index: {}]   ;;  %s8430_s24 = inlined_call_operand.hbm [shape: f32[16,1], index: 24, kind: input, shape index: {}]   ;;  %s8431_s25 = inlined_call_operand.hbm [shape: f32[16,16], index: 25, kind: input, shape index: {}]   ;;  %s8432_s26 = inlined_call_operand.hbm [shape: f32[16,16], index: 26, kind: input, shape index: {}]   ;;  %s8433_s27 = inlined_call_operand.hbm [shape: f32[16,1], index: 27, kind: input, shape index: {}]   ;;  %s8434_s28 = inlined_call_operand.vmem [shape: f32[2,16,256], index: 28, kind: output, shape index: {}]  }
   0x1   :  { %8438 = sst [smem:[#allocation57_spill]] %s8406_s0 }
   0x2   :  { %8439 = sst [smem:[#allocation58_spill]] %s8407_s1 }
   0x3   :  { %8440 = sst [smem:[#allocation59_spill]] %s8408_s2 }
   0x4   :  { %8441 = sst [smem:[#allocation60_spill]] %s8409_s3 }
   0x5   :  { %8442 = sst [smem:[#allocation61_spill]] %s8410_s4 }
   0x6   :  { %8443 = sst [smem:[#allocation62_spill]] %s8411_s5 }
   0x7   :  { %8444 = sst [smem:[#allocation63_spill]] %s8412_s6 }
   0x8   :  { %8445 = sst [smem:[#allocation64_spill]] %s8413_s7 }
   0x9   :  { %8446 = sst [smem:[#allocation65_spill]] %s8414_s8 }
   0xa   :  { %8447 = sst [smem:[#allocation66_spill]] %s8415_s9 }
   0xb   :  { %8448 = sst [smem:[#allocation67_spill]] %s8416_s10 }
   0xc   :  { %8449 = sst [smem:[#allocation68_spill]] %s8417_s11 }
   0xd   :  { %8450 = sst [smem:[#allocation69_spill]] %s8418_s12 }
   0xe   :  { %8451 = sst [smem:[#allocation70_spill]] %s8434_s28 }
   0xf   :  { %33 = vsyncpa [#allocation3], 0 }
  0x10   :  { %34 = vsyncpa [#allocation5], 0 }
  0x11   :  { %35 = vsyncpa [#allocation8], 0 }
  0x12   :  { %36 = vsyncpa [#allocation11], 0 }
  0x13   :  { %37 = vsyncpa [#allocation14], 0 }
  0x14   :  { %38 = vsyncpa [#allocation17], 0 }
  0x15   :  { %39 = vsyncpa [#allocation20], 0 }
  0x16   :  { %40 = vsyncpa [#allocation23], 0 }
  0x17   :  { %41 = vsyncpa [#allocation26], 0 }
  0x18   :  { %42 = vsyncpa [#allocation29], 0 }
  0x19   :  { %43 = vsyncpa [#allocation32], 0 }
  0x1a   :  { %44 = vsyncpa [#allocation35], 0 }
  0x1b   :  { %45 = vsyncpa [#allocation38], 0 }
  0x1c   :  { %46 = vsyncpa [#allocation41], 0  ;;  %s7814_s8 = smov 0  }
  0x1d LB: > { %8452 = sst [smem:[#allocation56_spill]] %s7636_s8  ;;  %s7820_s5 = sadd.s32 4294967295, %s7636_s8   ;;  %s7636_s8 = sphi %s7814_s8, %s52_s8  }
  0x1e   : > { %p5721_p0 = scmp.ge.s32.totalorder %s7636_s8, 1  ;;  %p676_p1 = scmp.lt.s32.totalorder %s7636_s8, 3 }
  0x1f   : > { %p8436_p2 = scmp.eq.s32.totalorder %s7820_s5, 0  ;;  %s7638_s30 = smov [#allocation4]  }
  0x20   : > { %p7825_p3 = pnand %p5721_p0, %p676_p1  ;;  %s701_s3 = sshll.u32 %s7638_s30, 4  ;;  %s702_s3 = int_to_ptr.vmem [resolvable:$true] %s701_s3 }
  0x21   : > { %s7639_s6 = smov [#allocation7]   ;;  %s7640_s11 = smov [#allocation10]  }
  0x22   : > { %s8453_s9 = scalar_select %p7825_p3, 1, 0 }
  0x23   : > { %p6715_p4 = pneg %p7825_p3  ;;  %s727_s10 = sshll.u32 %s7639_s6, 4  ;;  %s7831_s10 = int_to_ptr.vmem [resolvable:$true] %s727_s10 }
  0x24   : > { %s753_s29 = sshll.u32 %s7640_s11, 4  ;;  %s7641_s2 = smov [#allocation13]   ;;  %s7839_s29 = int_to_ptr.vmem [resolvable:$true] %s753_s29 }
  0x25   : > { %p7835_p5 = pnand %p8436_p2, %p6715_p4  ;;  %s7841_s7 = sshll.u32 %s7641_s2, 4  ;;  %s780_s7 = int_to_ptr.vmem [resolvable:$true] %s7841_s7 }
  0x26   : > { %s6909_s1 = scalar_lea.vmem %s702_s3, 9216  ;;  %p6917_p10 = scmp.lt.s32.totalorder %s702_s3, %s702_s3 }
  0x27   : > { %p7845_p6 = pneg %p7835_p5  ;;  %p6910_p7 = scmp.ne.s32.totalorder %s702_s3, %s6909_s1 }
  0x28   : > { %p6918_p11 = scmp.lt.s32.totalorder %s6909_s1, %s6909_s1 }
  0x29   : > { %p6912_p8 = pnand %p6910_p7, %p7845_p6 }
  0x2a   : > { %p6919_p12 = por %p6918_p11, %p6917_p10 }
  0x2b   : > { %p6913_p9 = pneg %p6912_p8 }
  0x2d   : > { %p6920_p13 = pnand %p6919_p12, %p6913_p9 }
  0x2f   : > { %6923 = shalt.err (!%p6920_p13)
}
  0x30   : > { %s7642_s4 = smov 128   ;;  %s7643_s30 = smov 8  }
  0x31   : > { %s8456_s2 = sld [smem:[#allocation59_spill]]  ;;  %s6935_s8 = scalar_lea.vmem %s7831_s10, 2304 }
  0x32   : > { %p6936_p0 = scmp.ne.s32.totalorder %s7831_s10, %s6935_s8  ;;  %p6943_p7 = scmp.lt.s32.totalorder %s7831_s10, %s7831_s10 }
  0x33   : > { %p6944_p8 = scmp.lt.s32.totalorder %s6935_s8, %s6935_s8 }
  0x34   : > { %p6938_p1 = pnand %p6936_p0, %p7845_p6 }
  0x35   : > { %p6945_p9 = por %p6944_p8, %p6943_p7 }
  0x36   : > { %p6939_p4 = pneg %p6938_p1 }
  0x37   : > { %6721 = dma.hbm_to_vmem [thread:$0]  (!%p7835_p5), %s8456_s2, 9216, %s702_s3, [#allocation5], %s7642_s4, %s7642_s4, %s7643_s30  }
  0x38   : > { %p6946_p10 = pnand %p6945_p9, %p6939_p4 }
  0x3a   : > { %6949 = shalt.err (!%p6946_p10)
}
  0x3b   : > { %s8457_s3 = sld [smem:[#allocation61_spill]]  ;;  %s6961_s11 = scalar_lea.vmem %s7839_s29, 2304 }
  0x3c   : > { %p6962_p11 = scmp.ne.s32.totalorder %s7839_s29, %s6961_s11  ;;  %p6969_p0 = scmp.lt.s32.totalorder %s7839_s29, %s7839_s29 }
  0x3d   : > { %p6970_p1 = scmp.lt.s32.totalorder %s6961_s11, %s6961_s11 }
  0x3e   : > { %p6964_p12 = pnand %p6962_p11, %p7845_p6 }
  0x3f   : > { %p6971_p4 = por %p6970_p1, %p6969_p0 }
  0x40   : > { %p6965_p13 = pneg %p6964_p12 }
  0x41   : > { %6727 = dma.hbm_to_vmem [thread:$0]  (!%p7835_p5), %s8457_s3, 2304, %s7831_s10, [#allocation8], %s7642_s4, %s7642_s4, %s7643_s30  }
  0x42   : > { %p6972_p7 = pnand %p6971_p4, %p6965_p13 }
  0x44   : > { %6975 = shalt.err (!%p6972_p7)
}
  0x45   : > { %s8458_s10 = sld [smem:[#allocation63_spill]]  ;;  %s6987_s1 = scalar_lea.vmem %s780_s7, 2304 }
  0x46   : > { %p6988_p8 = scmp.ne.s32.totalorder %s780_s7, %s6987_s1  ;;  %p6995_p11 = scmp.lt.s32.totalorder %s780_s7, %s780_s7 }
  0x47   : > { %p6996_p12 = scmp.lt.s32.totalorder %s6987_s1, %s6987_s1 }
  0x48   : > { %p6990_p9 = pnand %p6988_p8, %p7845_p6 }
  0x49   : > { %p6997_p13 = por %p6996_p12, %p6995_p11 }
  0x4a   : > { %p6991_p10 = pneg %p6990_p9 }
  0x4b   : > { %6733 = dma.hbm_to_vmem [thread:$0]  (!%p7835_p5), %s8458_s10, 2304, %s7839_s29, [#allocation11], %s7642_s4, %s7642_s4, %s7643_s30  }
  0x4c   : > { %p6998_p0 = pnand %p6997_p13, %p6991_p10 }
  0x4e   : > { %7001 = shalt.err (!%p6998_p0)
}
  0x4f   : > { %s8459_s11 = sld [smem:[#allocation65_spill]]  ;;  %s7644_s29 = smov [#allocation16]  }
  0x50   : > { %s805_s8 = sshll.u32 %s7644_s29, 4  ;;  %s7645_s2 = smov [#allocation19]   ;;  %s806_s8 = int_to_ptr.vmem [resolvable:$true] %s805_s8 }
  0x51   : > { %s832_s10 = sshll.u32 %s7645_s2, 4  ;;  %s7013_s28 = scalar_lea.vmem %s806_s8, 384  ;;  %s833_s10 = int_to_ptr.vmem [resolvable:$true] %s832_s10 }
  0x52   : > { %p7014_p1 = scmp.ne.s32.totalorder %s806_s8, %s7013_s28  ;;  %p7021_p8 = scmp.lt.s32.totalorder %s806_s8, %s806_s8 }
  0x53   : > { %p7022_p9 = scmp.lt.s32.totalorder %s7013_s28, %s7013_s28 }
  0x54   : > { %p7016_p4 = pnand %p7014_p1, %p7845_p6 }
  0x55   : > { %6739 = dma.hbm_to_vmem [thread:$0]  (!%p7835_p5), %s8459_s11, 2304, %s780_s7, [#allocation14], %s7642_s4, %s7642_s4, %s7643_s30  }
  0x56   : > { %p7017_p7 = pneg %p7016_p4  ;;  %p7023_p10 = por %p7022_p9, %p7021_p8 }
  0x58   : > { %p7024_p11 = pnand %p7023_p10, %p7017_p7 }
  0x5a   : > { %7027 = shalt.err (!%p7024_p11)
}
  0x5b   : > { %s8460_s6 = sld [smem:[#allocation67_spill]]  ;;  %s7039_s3 = scalar_lea.vmem %s833_s10, 128 }
  0x5c   : > { %p7040_p12 = scmp.ne.s32.totalorder %s833_s10, %s7039_s3  ;;  %p7047_p1 = scmp.lt.s32.totalorder %s833_s10, %s833_s10 }
  0x5d   : > { %p7048_p4 = scmp.lt.s32.totalorder %s7039_s3, %s7039_s3 }
  0x5e   : > { %p7042_p13 = pnand %p7040_p12, %p7845_p6 }
  0x5f   : > { %p7049_p7 = por %p7048_p4, %p7047_p1 }
  0x60   : > { %p7043_p0 = pneg %p7042_p13 }
  0x61   : > { %6745 = dma.hbm_to_vmem [thread:$0]  (!%p7835_p5), %s8460_s6, 384, %s806_s8, [#allocation17], %s7642_s4, %s7642_s4, %s7643_s30  }
  0x62   : > { %p7050_p8 = pnand %p7049_p7, %p7043_p0 }
  0x64   : > { %7053 = shalt.err (!%p7050_p8)
}
  0x65   : > { %s8461_s29 = sld [smem:[#allocation69_spill]]  ;;  %s7646_s2 = smov [#allocation22]  }
  0x66   : > { %s853_s8 = sshll.u32 %s7646_s2, 4  ;;  %s7647_s7 = smov [#allocation25]   ;;  %s854_s8 = int_to_ptr.vmem [resolvable:$true] %s853_s8 }
  0x67   : > { %s882_s1 = sshll.u32 %s7647_s7, 4  ;;  %s7065_s6 = scalar_lea.vmem %s854_s8, 256  ;;  %s883_s1 = int_to_ptr.vmem [resolvable:$true] %s882_s1 }
  0x68   : > { %p7066_p9 = scmp.ne.s32.totalorder %s854_s8, %s7065_s6  ;;  %p7073_p12 = scmp.lt.s32.totalorder %s854_s8, %s854_s8 }
  0x69   : > { %p7074_p13 = scmp.lt.s32.totalorder %s7065_s6, %s7065_s6 }
  0x6a   : > { %p7068_p10 = pnand %p7066_p9, %p7845_p6 }
  0x6b   : > { %6751 = dma.hbm_to_vmem [thread:$0]  (!%p7835_p5), %s8461_s29, 128, %s833_s10, [#allocation20]  }
  0x6c   : > { %p7069_p11 = pneg %p7068_p10  ;;  %p7075_p0 = por %p7074_p13, %p7073_p12 }
  0x6e   : > { %p7076_p1 = pnand %p7075_p0, %p7069_p11 }
  0x70   : > { %7079 = shalt.err (!%p7076_p1)
}
  0x71   : > { %6757 = dma.hbm_to_vmem [thread:$0]  (!%p7835_p5), %s8420_s14, 256, %s854_s8, [#allocation23], %s7642_s4, %s7642_s4, %s7643_s30  }
  0x72   : > { %s7091_s28 = scalar_lea.vmem %s883_s1, 256  ;;  %p7099_p9 = scmp.lt.s32.totalorder %s883_s1, %s883_s1 }
  0x73   : > { %p7092_p4 = scmp.ne.s32.totalorder %s883_s1, %s7091_s28  ;;  %p7100_p10 = scmp.lt.s32.totalorder %s7091_s28, %s7091_s28 }
  0x75   : > { %p7094_p7 = pnand %p7092_p4, %p7845_p6  ;;  %p7101_p11 = por %p7100_p10, %p7099_p9 }
  0x77   : > { %p7095_p8 = pneg %p7094_p7 }
  0x79   : > { %p7102_p12 = pnand %p7101_p11, %p7095_p8 }
  0x7b   : > { %7105 = shalt.err (!%p7102_p12)
}
  0x7c   : > { %6763 = dma.hbm_to_vmem [thread:$0]  (!%p7835_p5), %s8423_s17, 256, %s883_s1, [#allocation26], %s7642_s4, %s7642_s4, %s7643_s30  }
  0x7d   : > { %s7648_s2 = smov [#allocation28]   ;;  %s7649_s7 = smov [#allocation31]  }
  0x7e   : > { %s909_s8 = sshll.u32 %s7648_s2, 4  ;;  %s931_s6 = sshll.u32 %s7649_s7, 4  ;;  %s910_s8 = int_to_ptr.vmem [resolvable:$true] %s909_s8  ;;  %s932_s6 = int_to_ptr.vmem [resolvable:$true] %s931_s6 }
  0x7f   : > { %s7117_s10 = scalar_lea.vmem %s910_s8, 64  ;;  %p7125_p4 = scmp.lt.s32.totalorder %s910_s8, %s910_s8 }
  0x80   : > { %p7118_p13 = scmp.ne.s32.totalorder %s910_s8, %s7117_s10  ;;  %p7126_p7 = scmp.lt.s32.totalorder %s7117_s10, %s7117_s10 }
  0x82   : > { %p7120_p0 = pnand %p7118_p13, %p7845_p6  ;;  %p7127_p8 = por %p7126_p7, %p7125_p4 }
  0x84   : > { %p7121_p1 = pneg %p7120_p0 }
  0x86   : > { %p7128_p9 = pnand %p7127_p8, %p7121_p1 }
  0x88   : > { %7131 = shalt.err (!%p7128_p9)
}
  0x89   : > { %6769 = dma.hbm_to_vmem [thread:$0]  (!%p7835_p5), %s8425_s19, 64, %s910_s8, [#allocation29]  }
  0x8a   : > { %s7143_s1 = scalar_lea.vmem %s932_s6, 128  ;;  %p7151_p13 = scmp.lt.s32.totalorder %s932_s6, %s932_s6 }
  0x8b   : > { %p7144_p10 = scmp.ne.s32.totalorder %s932_s6, %s7143_s1  ;;  %p7152_p0 = scmp.lt.s32.totalorder %s7143_s1, %s7143_s1 }
  0x8d   : > { %p7146_p11 = pnand %p7144_p10, %p7845_p6  ;;  %p7153_p2 = por %p7152_p0, %p7151_p13 }
  0x8f   : > { %p7147_p12 = pneg %p7146_p11 }
  0x91   : > { %p7154_p3 = pnand %p7153_p2, %p7147_p12 }
  0x93   : > { %7157 = shalt.err (!%p7154_p3)
}
  0x94   : > { %6775 = dma.hbm_to_vmem [thread:$0]  (!%p7835_p5), %s8427_s21, 128, %s932_s6, [#allocation32]  }
  0x95   : > { %s7650_s2 = smov [#allocation34]   ;;  %s7651_s7 = smov [#allocation37]  }
  0x96   : > { %s952_s8 = sshll.u32 %s7650_s2, 4  ;;  %s978_s10 = sshll.u32 %s7651_s7, 4  ;;  %s953_s8 = int_to_ptr.vmem [resolvable:$true] %s952_s8  ;;  %s979_s10 = int_to_ptr.vmem [resolvable:$true] %s978_s10 }
  0x97   : > { %s7169_s3 = scalar_lea.vmem %s953_s8, 256  ;;  %p7177_p8 = scmp.lt.s32.totalorder %s953_s8, %s953_s8 }
  0x98   : > { %p7170_p1 = scmp.ne.s32.totalorder %s953_s8, %s7169_s3  ;;  %p7178_p2 = scmp.lt.s32.totalorder %s7169_s3, %s7169_s3 }
  0x9a   : > { %p7172_p4 = pnand %p7170_p1, %p7845_p6  ;;  %p7179_p3 = por %p7178_p2, %p7177_p8 }
  0x9c   : > { %p7173_p7 = pneg %p7172_p4 }
  0x9e   : > { %p7180_p9 = pnand %p7179_p3, %p7173_p7 }
  0xa0   : > { %7183 = shalt.err (!%p7180_p9)
}
  0xa1   : > { %6781 = dma.hbm_to_vmem [thread:$0]  (!%p7835_p5), %s8429_s23, 256, %s953_s8, [#allocation35], %s7642_s4, %s7642_s4, %s7643_s30  }
  0xa2   : > { %s7195_s1 = scalar_lea.vmem %s979_s10, 256  ;;  %p7203_p13 = scmp.lt.s32.totalorder %s979_s10, %s979_s10 }
  0xa3   : > { %p7196_p10 = scmp.ne.s32.totalorder %s979_s10, %s7195_s1  ;;  %p7204_p0 = scmp.lt.s32.totalorder %s7195_s1, %s7195_s1 }
  0xa5   : > { %p7198_p11 = pnand %p7196_p10, %p7845_p6  ;;  %p7205_p1 = por %p7204_p0, %p7203_p13 }
  0xa7   : > { %p7199_p12 = pneg %p7198_p11 }
  0xa9   : > { %p7206_p4 = pnand %p7205_p1, %p7199_p12 }
  0xab   : > { %7209 = shalt.err (!%p7206_p4)
}
  0xac   : > { %6787 = dma.hbm_to_vmem [thread:$0]  (!%p7835_p5), %s8431_s25, 256, %s979_s10, [#allocation38], %s7642_s4, %s7642_s4, %s7643_s30  }
  0xad   : > { %s7652_s2 = smov [#allocation2]   ;;  %s7653_s7 = smov [#allocation6]  }
  0xae   : > { %s688_s8 = sshll.u32 %s7652_s2, 4  ;;  %s714_s3 = sshll.u32 %s7653_s7, 4  ;;  %s689_s8 = int_to_ptr.vmem [resolvable:$true] %s688_s8  ;;  %s715_s3 = int_to_ptr.vmem [resolvable:$true] %s714_s3 }
  0xaf   : > { %s7221_s6 = scalar_lea.vmem %s689_s8, 36864  ;;  %p7229_p3 = scmp.lt.s32.totalorder %s689_s8, %s689_s8 }
  0xb0   : > { %p7222_p7 = scmp.ne.s32.totalorder %s689_s8, %s7221_s6  ;;  %p7230_p9 = scmp.lt.s32.totalorder %s7221_s6, %s7221_s6 }
  0xb2   : > { %p7224_p8 = pnand %p7222_p7, %p7845_p6  ;;  %p7231_p10 = por %p7230_p9, %p7229_p3 }
  0xb4   : > { %p7225_p2 = pneg %p7224_p8 }
  0xb6   : > { %p7232_p11 = pnand %p7231_p10, %p7225_p2 }
  0xb8   : > { %7235 = shalt.err (!%p7232_p11)
}
  0xb9   : > { %s8462_s1 = sld [smem:[#allocation58_spill]]  ;;  %s7247_s11 = scalar_lea.vmem %s715_s3, 2304 }
  0xba   : > { %p7248_p12 = scmp.ne.s32.totalorder %s715_s3, %s7247_s11  ;;  %p7255_p1 = scmp.lt.s32.totalorder %s715_s3, %s715_s3 }
  0xbb   : > { %p7256_p4 = scmp.lt.s32.totalorder %s7247_s11, %s7247_s11 }
  0xbc   : > { %p7250_p13 = pnand %p7248_p12, %p7845_p6 }
  0xbd   : > { %p7257_p7 = por %p7256_p4, %p7255_p1 }
  0xbe   : > { %p7251_p0 = pneg %p7250_p13 }
  0xbf   : > { %6718 = dma.hbm_to_vmem [thread:$0]  (!%p7835_p5), %s8462_s1, 36864, %s689_s8, [#allocation3], %s7642_s4, %s7642_s4, %s7643_s30  }
  0xc0   : > { %p7258_p8 = pnand %p7257_p7, %p7251_p0 }
  0xc2   : > { %7261 = shalt.err (!%p7258_p8)
}
  0xc3   : > { %s8463_s7 = sld [smem:[#allocation60_spill]]  ;;  %s7654_s8 = smov [#allocation9]  }
  0xc4   : > { %s740_s6 = sshll.u32 %s7654_s8, 4  ;;  %s7655_s10 = smov [#allocation12]   ;;  %s741_s6 = int_to_ptr.vmem [resolvable:$true] %s740_s6 }
  0xc5   : > { %s766_s28 = sshll.u32 %s7655_s10, 4  ;;  %s7273_s1 = scalar_lea.vmem %s741_s6, 256  ;;  %s767_s28 = int_to_ptr.vmem [resolvable:$true] %s766_s28 }
  0xc6   : > { %p7274_p2 = scmp.ne.s32.totalorder %s741_s6, %s7273_s1  ;;  %p7281_p10 = scmp.lt.s32.totalorder %s741_s6, %s741_s6 }
  0xc7   : > { %p7282_p11 = scmp.lt.s32.totalorder %s7273_s1, %s7273_s1 }
  0xc8   : > { %p7276_p3 = pnand %p7274_p2, %p7845_p6 }
  0xc9   : > { %6724 = dma.hbm_to_vmem [thread:$0]  (!%p7835_p5), %s8463_s7, 2304, %s715_s3, [#allocation5], %s7642_s4, %s7642_s4, %s7643_s30  }
  0xca   : > { %p7277_p9 = pneg %p7276_p3  ;;  %p7283_p12 = por %p7282_p11, %p7281_p10 }
  0xcc   : > { %p7284_p13 = pnand %p7283_p12, %p7277_p9 }
  0xce   : > { %7287 = shalt.err (!%p7284_p13)
}
  0xcf   : > { %s8464_s29 = sld [smem:[#allocation62_spill]]  ;;  %s7299_s2 = scalar_lea.vmem %s767_s28, 256 }
  0xd0   : > { %p7300_p0 = scmp.ne.s32.totalorder %s767_s28, %s7299_s2  ;;  %p7307_p7 = scmp.lt.s32.totalorder %s767_s28, %s767_s28 }
  0xd1   : > { %p7308_p8 = scmp.lt.s32.totalorder %s7299_s2, %s7299_s2 }
  0xd2   : > { %p7302_p1 = pnand %p7300_p0, %p7845_p6 }
  0xd3   : > { %p7309_p2 = por %p7308_p8, %p7307_p7 }
  0xd4   : > { %p7303_p4 = pneg %p7302_p1 }
  0xd5   : > { %6730 = dma.hbm_to_vmem [thread:$0]  (!%p7835_p5), %s8464_s29, 256, %s741_s6, [#allocation8], %s7642_s4, %s7642_s4, %s7643_s30  }
  0xd6   : > { %p7310_p3 = pnand %p7309_p2, %p7303_p4 }
  0xd8   : > { %7313 = shalt.err (!%p7310_p3)
}
  0xd9   : > { %s8465_s10 = sld [smem:[#allocation64_spill]]  ;;  %s7656_s6 = smov [#allocation15]  }
  0xda   : > { %s792_s1 = sshll.u32 %s7656_s6, 4  ;;  %s7657_s3 = smov [#allocation18]   ;;  %s793_s1 = int_to_ptr.vmem [resolvable:$true] %s792_s1 }
  0xdb   : > { %s818_s11 = sshll.u32 %s7657_s3, 4  ;;  %s7325_s29 = scalar_lea.vmem %s793_s1, 256  ;;  %s819_s11 = int_to_ptr.vmem [resolvable:$true] %s818_s11 }
  0xdc   : > { %p7326_p9 = scmp.ne.s32.totalorder %s793_s1, %s7325_s29  ;;  %p7333_p12 = scmp.lt.s32.totalorder %s793_s1, %s793_s1 }
  0xdd   : > { %p7334_p13 = scmp.lt.s32.totalorder %s7325_s29, %s7325_s29 }
  0xde   : > { %p7328_p10 = pnand %p7326_p9, %p7845_p6 }
  0xdf   : > { %6736 = dma.hbm_to_vmem [thread:$0]  (!%p7835_p5), %s8465_s10, 256, %s767_s28, [#allocation11], %s7642_s4, %s7642_s4, %s7643_s30  }
  0xe0   : > { %p7329_p11 = pneg %p7328_p10  ;;  %p7335_p0 = por %p7334_p13, %p7333_p12 }
  0xe2   : > { %p7336_p1 = pnand %p7335_p0, %p7329_p11 }
  0xe4   : > { %7339 = shalt.err (!%p7336_p1)
}
  0xe5   : > { %s8466_s7 = sld [smem:[#allocation66_spill]]  ;;  %s7351_s8 = scalar_lea.vmem %s819_s11, 384 }
  0xe6   : > { %p7352_p4 = scmp.ne.s32.totalorder %s819_s11, %s7351_s8  ;;  %p7359_p2 = scmp.lt.s32.totalorder %s819_s11, %s819_s11 }
  0xe7   : > { %p7360_p3 = scmp.lt.s32.totalorder %s7351_s8, %s7351_s8 }
  0xe8   : > { %p7354_p7 = pnand %p7352_p4, %p7845_p6 }
  0xe9   : > { %p7361_p9 = por %p7360_p3, %p7359_p2 }
  0xea   : > { %p7355_p8 = pneg %p7354_p7 }
  0xeb   : > { %6742 = dma.hbm_to_vmem [thread:$0]  (!%p7835_p5), %s8466_s7, 256, %s793_s1, [#allocation14], %s7642_s4, %s7642_s4, %s7643_s30  }
  0xec   : > { %p7362_p10 = pnand %p7361_p9, %p7355_p8 }
  0xee   : > { %7365 = shalt.err (!%p7362_p10)
}
  0xef   : > { %s8467_s3 = sld [smem:[#allocation68_spill]]  ;;  %s7658_s1 = smov [#allocation21]  }
  0xf0   : > { %s843_s29 = sshll.u32 %s7658_s1, 4  ;;  %s7659_s28 = smov [#allocation24]   ;;  %s844_s29 = int_to_ptr.vmem [resolvable:$true] %s843_s29 }
  0xf1   : > { %s866_s2 = sshll.u32 %s7659_s28, 4  ;;  %s7377_s7 = scalar_lea.vmem %s844_s29, 128  ;;  %s867_s2 = int_to_ptr.vmem [resolvable:$true] %s866_s2 }
  0xf2   : > { %p7378_p11 = scmp.ne.s32.totalorder %s844_s29, %s7377_s7  ;;  %p7385_p0 = scmp.lt.s32.totalorder %s844_s29, %s844_s29 }
  0xf3   : > { %p7386_p1 = scmp.lt.s32.totalorder %s7377_s7, %s7377_s7 }
  0xf4   : > { %p7380_p12 = pnand %p7378_p11, %p7845_p6 }
  0xf5   : > { %6748 = dma.hbm_to_vmem [thread:$0]  (!%p7835_p5), %s8467_s3, 384, %s819_s11, [#allocation17], %s7642_s4, %s7642_s4, %s7643_s30  }
  0xf6   : > { %p7381_p13 = pneg %p7380_p12  ;;  %p7387_p4 = por %p7386_p1, %p7385_p0 }
  0xf8   : > { %p7388_p7 = pnand %p7387_p4, %p7381_p13 }
  0xfa   : > { %7391 = shalt.err (!%p7388_p7)
}
  0xfb   : > { %6754 = dma.hbm_to_vmem [thread:$0]  (!%p7835_p5), %s8419_s13, 128, %s844_s29, [#allocation20]  }
  0xfc   : > { %s7403_s11 = scalar_lea.vmem %s867_s2, 256  ;;  %p7411_p9 = scmp.lt.s32.totalorder %s867_s2, %s867_s2 }
  0xfd   : > { %p7404_p8 = scmp.ne.s32.totalorder %s867_s2, %s7403_s11  ;;  %p7412_p10 = scmp.lt.s32.totalorder %s7403_s11, %s7403_s11 }
  0xff   : > { %p7406_p2 = pnand %p7404_p8, %p7845_p6  ;;  %p7413_p11 = por %p7412_p10, %p7411_p9 }
 0x101   : > { %p7407_p3 = pneg %p7406_p2 }
 0x103   : > { %p7414_p12 = pnand %p7413_p11, %p7407_p3 }
 0x105   : > { %7417 = shalt.err (!%p7414_p12)
}
 0x106   : > { %6760 = dma.hbm_to_vmem [thread:$0]  (!%p7835_p5), %s8421_s15, 256, %s867_s2, [#allocation23], %s7642_s4, %s7642_s4, %s7643_s30  }
 0x107   : > { %s7660_s1 = smov [#allocation27]   ;;  %s7661_s28 = smov [#allocation30]  }
 0x108   : > { %s895_s29 = sshll.u32 %s7660_s1, 4  ;;  %s920_s7 = sshll.u32 %s7661_s28, 4  ;;  %s896_s29 = int_to_ptr.vmem [resolvable:$true] %s895_s29  ;;  %s921_s7 = int_to_ptr.vmem [resolvable:$true] %s920_s7 }
 0x109   : > { %s7429_s8 = scalar_lea.vmem %s896_s29, 256  ;;  %p7437_p4 = scmp.lt.s32.totalorder %s896_s29, %s896_s29 }
 0x10a   : > { %p7430_p13 = scmp.ne.s32.totalorder %s896_s29, %s7429_s8  ;;  %p7438_p7 = scmp.lt.s32.totalorder %s7429_s8, %s7429_s8 }
 0x10c   : > { %p7432_p0 = pnand %p7430_p13, %p7845_p6  ;;  %p7439_p8 = por %p7438_p7, %p7437_p4 }
 0x10e   : > { %p7433_p1 = pneg %p7432_p0 }
 0x110   : > { %p7440_p2 = pnand %p7439_p8, %p7433_p1 }
 0x112   : > { %7443 = shalt.err (!%p7440_p2)
}
 0x113   : > { %6766 = dma.hbm_to_vmem [thread:$0]  (!%p7835_p5), %s8424_s18, 256, %s896_s29, [#allocation26], %s7642_s4, %s7642_s4, %s7643_s30  }
 0x114   : > { %s7455_s11 = scalar_lea.vmem %s921_s7, 16  ;;  %s7462_s6 = scalar_lea.vmem %s921_s7, 32 }
 0x115   : > { %p7456_p3 = scmp.ne.s32.totalorder %s921_s7, %s7455_s11  ;;  %p7463_p11 = scmp.lt.s32.totalorder %s921_s7, %s921_s7 }
 0x116   : > { %p7464_p12 = scmp.lt.s32.totalorder %s7462_s6, %s7455_s11 }
 0x117   : > { %p7458_p9 = pnand %p7456_p3, %p7845_p6 }
 0x118   : > { %p7465_p13 = por %p7464_p12, %p7463_p11 }
 0x119   : > { %p7459_p10 = pneg %p7458_p9 }
 0x11b   : > { %p7466_p0 = pnand %p7465_p13, %p7459_p10 }
 0x11d   : > { %7469 = shalt.err (!%p7466_p0)
}
 0x11e   : > { %6772 = dma.hbm_to_vmem [thread:$0]  (!%p7835_p5), %s8426_s20, 16, %s921_s7, [#allocation29]  }
 0x11f   : > { %s7662_s29 = smov [#allocation33]   ;;  %s7663_s8 = smov [#allocation36]  }
 0x120   : > { %s942_s28 = sshll.u32 %s7662_s29, 4  ;;  %s965_s2 = sshll.u32 %s7663_s8, 4  ;;  %s943_s28 = int_to_ptr.vmem [resolvable:$true] %s942_s28  ;;  %s966_s2 = int_to_ptr.vmem [resolvable:$true] %s965_s2 }
 0x121   : > { %s7481_s10 = scalar_lea.vmem %s943_s28, 128  ;;  %p7489_p8 = scmp.lt.s32.totalorder %s943_s28, %s943_s28 }
 0x122   : > { %p7482_p1 = scmp.ne.s32.totalorder %s943_s28, %s7481_s10  ;;  %p7490_p2 = scmp.lt.s32.totalorder %s7481_s10, %s7481_s10 }
 0x124   : > { %p7484_p4 = pnand %p7482_p1, %p7845_p6  ;;  %p7491_p3 = por %p7490_p2, %p7489_p8 }
 0x126   : > { %p7485_p7 = pneg %p7484_p4 }
 0x128   : > { %p7492_p9 = pnand %p7491_p3, %p7485_p7 }
 0x12a   : > { %7495 = shalt.err (!%p7492_p9)
}
 0x12b   : > { %6778 = dma.hbm_to_vmem [thread:$0]  (!%p7835_p5), %s8428_s22, 128, %s943_s28, [#allocation32]  }
 0x12c   : > { %s7507_s7 = scalar_lea.vmem %s966_s2, 256  ;;  %p7515_p13 = scmp.lt.s32.totalorder %s966_s2, %s966_s2 }
 0x12d   : > { %p7508_p10 = scmp.ne.s32.totalorder %s966_s2, %s7507_s7  ;;  %p7516_p0 = scmp.lt.s32.totalorder %s7507_s7, %s7507_s7 }
 0x12f   : > { %p7510_p11 = pnand %p7508_p10, %p7845_p6  ;;  %p7517_p1 = por %p7516_p0, %p7515_p13 }
 0x131   : > { %p7511_p12 = pneg %p7510_p11 }
 0x133   : > { %p7518_p4 = pnand %p7517_p1, %p7511_p12 }
 0x135   : > { %7521 = shalt.err (!%p7518_p4)
}
 0x136   : > { %6784 = dma.hbm_to_vmem [thread:$0]  (!%p7835_p5), %s8430_s24, 256, %s966_s2, [#allocation35], %s7642_s4, %s7642_s4, %s7643_s30  }
 0x137   : > { %s7664_s29 = smov [#allocation39]   ;;  %s7665_s8 = smov [#allocation40]  }
 0x138   : > { %s991_s28 = sshll.u32 %s7664_s29, 4  ;;  %s1004_s10 = sshll.u32 %s7665_s8, 4  ;;  %s992_s28 = int_to_ptr.vmem [resolvable:$true] %s991_s28  ;;  %s1005_s10 = int_to_ptr.vmem [resolvable:$true] %s1004_s10 }
 0x139   : > { %s7533_s11 = scalar_lea.vmem %s992_s28, 256  ;;  %p7541_p3 = scmp.lt.s32.totalorder %s992_s28, %s992_s28 }
 0x13a   : > { %p7534_p7 = scmp.ne.s32.totalorder %s992_s28, %s7533_s11  ;;  %p7542_p9 = scmp.lt.s32.totalorder %s7533_s11, %s7533_s11 }
 0x13c   : > { %p7536_p8 = pnand %p7534_p7, %p7845_p6  ;;  %p7543_p10 = por %p7542_p9, %p7541_p3 }
 0x13e   : > { %p7537_p2 = pneg %p7536_p8 }
 0x140   : > { %p7544_p11 = pnand %p7543_p10, %p7537_p2 }
 0x142   : > { %7547 = shalt.err (!%p7544_p11)
}
 0x143   : > { %6790 = dma.hbm_to_vmem [thread:$0]  (!%p7835_p5), %s8432_s26, 256, %s992_s28, [#allocation38], %s7642_s4, %s7642_s4, %s7643_s30  }
 0x144   : > { %s7559_s7 = scalar_lea.vmem %s1005_s10, 256  ;;  %p7567_p1 = scmp.lt.s32.totalorder %s1005_s10, %s1005_s10 }
 0x145   : > { %p7560_p12 = scmp.ne.s32.totalorder %s1005_s10, %s7559_s7  ;;  %p7568_p4 = scmp.lt.s32.totalorder %s7559_s7, %s7559_s7 }
 0x147   : > { %p7562_p13 = pnand %p7560_p12, %p7845_p6  ;;  %p7569_p7 = por %p7568_p4, %p7567_p1 }
 0x149   : > { %p7563_p0 = pneg %p7562_p13 }
 0x14b   : > { %p7570_p8 = pnand %p7569_p7, %p7563_p0 }
 0x14d   : > { %7573 = shalt.err (!%p7570_p8)
}
 0x14e   : > { %6793 = dma.hbm_to_vmem [thread:$0]  (!%p7835_p5), %s8433_s27, 256, %s1005_s10, [#allocation41], %s7642_s4, %s7642_s4, %s7643_s30  }
 0x14f   : > { %p8468_p2 = scmp.ne.s32.totalorder %s8453_s9, 0 }
 0x150   : > { %p8469_p6 = scmp.eq.s32.totalorder (!%p8468_p2), %s7820_s5, 0 }
 0x151   : > { %1028 = sbr.rel (%p8468_p2) target bundleno = 3541 (0xdd5), region = 132 }
 0x156   : > { %7579 = dma.done.wait (%p8469_p6), [#allocation3], 36864   ;;  %p8470_p3 = pmov %p8469_p6 }
 0x158   : > { %7581 = vsyncadd (%p8470_p3), [#allocation3], 4294930432  ;;  %p8471_p9 = pmov %p8470_p3 }
 0x159   : > { %p8472_p10 = pmov %p8470_p3 }
 0x15a   : > { %7583 = dma.done.wait (%p8471_p9), [#allocation5], 11520  }
 0x15b   : > { %7585 = vsyncadd (%p8472_p10), [#allocation5], 4294955776  ;;  %p8473_p11 = pmov %p8470_p3 }
 0x15c   : > { %p8474_p5 = pmov %p8470_p3 }
 0x15d   : > { %7587 = dma.done.wait (%p8473_p11), [#allocation8], 2560  }
 0x15e   : > { %7589 = vsyncadd (%p8474_p5), [#allocation8], 4294964736  ;;  %p8475_p12 = pmov %p8470_p3 }
 0x15f   : > { %p8476_p13 = pmov %p8470_p3 }
 0x160   : > { %7591 = dma.done.wait (%p8475_p12), [#allocation11], 2560  }
 0x161   : > { %7593 = vsyncadd (%p8476_p13), [#allocation11], 4294964736  ;;  %p8477_p0 = pmov %p8470_p3 }
 0x163   : > { %7595 = dma.done.wait (%p8477_p0), [#allocation14], 2560   ;;  %p8478_p1 = pmov %p8477_p0 }
 0x164   : > { %p8479_p4 = pmov %p8477_p0 }
 0x165   : > { %7597 = vsyncadd (%p8478_p1), [#allocation14], 4294964736 }
 0x166   : > { %7599 = dma.done.wait (%p8479_p4), [#allocation17], 768   ;;  %p8480_p7 = pmov %p8477_p0 }
 0x167   : > { %p8481_p8 = pmov %p8477_p0 }
 0x168   : > { %7601 = vsyncadd (%p8480_p7), [#allocation17], 4294966528 }
 0x169   : > { %7603 = dma.done.wait (%p8481_p8), [#allocation20], 256   ;;  %p8482_p2 = pmov %p8477_p0 }
 0x16a   : > { %p8483_p6 = pmov %p8477_p0 }
 0x16b   : > { %7605 = vsyncadd (%p8482_p2), [#allocation20], 4294967040 }
 0x16c   : > { %7607 = dma.done.wait (%p8483_p6), [#allocation23], 512   ;;  %p8484_p3 = pmov %p8477_p0 }
 0x16d   : > { %p8485_p9 = pmov %p8477_p0 }
 0x16e   : > { %7609 = vsyncadd (%p8484_p3), [#allocation23], 4294966784 }
 0x16f   : > { %7611 = dma.done.wait (%p8485_p9), [#allocation26], 512   ;;  %p8486_p10 = pmov %p8477_p0 }
 0x170   : > { %p8487_p11 = pmov %p8477_p0 }
 0x171   : > { %7613 = vsyncadd (%p8486_p10), [#allocation26], 4294966784 }
 0x172   : > { %7615 = dma.done.wait (%p8487_p11), [#allocation29], 80   ;;  %p8488_p5 = pmov %p8477_p0 }
 0x173   : > { %p8489_p12 = pmov %p8477_p0 }
 0x174   : > { %7617 = vsyncadd (%p8488_p5), [#allocation29], 4294967216 }
 0x175   : > { %7619 = dma.done.wait (%p8489_p12), [#allocation32], 256   ;;  %p8490_p13 = pmov %p8477_p0 }
 0x177   : > { %7621 = vsyncadd (%p8490_p13), [#allocation32], 4294967040 }
 0x178   : > { %7623 = dma.done.wait (%p8477_p0), [#allocation35], 512   ;;  %p8491_p1 = pmov %p8477_p0 }
 0x179   : > { %p8492_p4 = pmov %p8477_p0 }
 0x17a   : > { %7625 = vsyncadd (%p8491_p1), [#allocation35], 4294966784 }
 0x17b   : > { %7627 = dma.done.wait (%p8492_p4), [#allocation38], 512   ;;  %p8493_p7 = pmov %p8477_p0 }
 0x17c   : > { %p8494_p8 = pmov %p8477_p0 }
 0x17d   : > { %7629 = vsyncadd (%p8493_p7), [#allocation38], 4294966784 }
 0x17e   : > { %7631 = dma.done.wait (%p8494_p8), [#allocation41], 256   ;;  %p8495_p2 = pmov %p8477_p0 }
 0x17f   : > { %v7666_v0 = vmov 0   ;;  %v1249_v1 = vld [vmem:[#allocation2 + $0xf8] sm:$0xff]  ;;  %v1248_v5 = vld [vmem:[#allocation2 + $0xf0] sm:$0xff]  ;;  %v1247_v9 = vld [vmem:[#allocation2 + $0xe8] sm:$0xff]  ;;  %p1202_p6 = scmp.lt.s32.totalorder %s7820_s5, 1  ;;  %s8496_s4 = sld [smem:[#allocation57_spill]] }
 0x180   : > { %7633 = vsyncadd (%p8495_p2), [#allocation41], 4294967040  ;;  %6885 = vset.pattern.permute.xlu0 %v7666_v0  ;;  %6886 = vset.pattern.permute.xlu1 %v7666_v0  ;;  %v1372_v2 = vld [vmem:[#allocation2 + $0x1f8] sm:$0xff]  ;;  %v1371_v6 = vld [vmem:[#allocation2 + $0x1f0] sm:$0xff]  ;;  %vm2361_vm0 = vcmask 523264   ;;  %vm3281_vm1 = vcmask 130048  }
 0x181   : > { %v1233_v3 = vld [vmem:[#allocation2 + $0x78] sm:$0xff]  ;;  %5848 = vmatprep.subr.mxu0 %v1249_v1  ;;  %5886 = vmatprep.subr.mxu1 %v1372_v2  ;;  %v1232_v7 = vld [vmem:[#allocation2 + $0x70] sm:$0xff]  ;;  %v1370_v10 = vld [vmem:[#allocation2 + $0x1e8] sm:$0xff]  ;;  %s8500_s5 = smov (!%p1202_p6, %s7820_s5), 1  ;;  %vm7668_vm2 = vmmov 0   ;;  %vm4259_vm3 = vcmask 31744  }
 0x182   : > { %v1356_v4 = vld [vmem:[#allocation2 + $0x178] sm:$0xff]  ;;  %5849 = vmatpush3.msra.mxu0 %v1233_v3  ;;  %v1355_v8 = vld [vmem:[#allocation2 + $0x170] sm:$0xff]  ;;  %v1231_v11 = vld [vmem:[#allocation2 + $0x68] sm:$0xff]  ;;  %s5846_s9 = sshll.u32 %s8500_s5, 5  ;;  %vm4336_vm4 = vcmask 64512   ;;  %vm4617_vm5 = vcmask 1043456  }
 0x183   : > { %5887 = vmatpush3.msra.mxu1 %v1356_v4  ;;  %5850 = vmatprep.subr.mxu0 %v1248_v5  ;;  %v1354_v12 = vld [vmem:[#allocation2 + $0x168] sm:$0xff]  ;;  %v1246_v13 = vld [vmem:[#allocation2 + $0xe0] sm:$0xff]  ;;  %v1245_v17 = vld [vmem:[#allocation2 + $0xd8] sm:$0xff]  ;;  %s8497_s11 = sld [smem:[#allocation70_spill]] }
 0x184   : > { %5888 = vmatprep.subr.mxu1 %v1371_v6  ;;  %5851 = vmatpush3.msra.mxu0 %v1232_v7  ;;  %v1369_v14 = vld [vmem:[#allocation2 + $0x1e0] sm:$0xff]  ;;  %v1368_v18 = vld [vmem:[#allocation2 + $0x1d8] sm:$0xff]  ;;  %v1244_v21 = vld [vmem:[#allocation2 + $0xd0] sm:$0xff] }
 0x185   : > { %5889 = vmatpush3.msra.mxu1 %v1355_v8  ;;  %5852 = vmatprep.subr.mxu0 %v1247_v9  ;;  %v1230_v15 = vld [vmem:[#allocation2 + $0x60] sm:$0xff]  ;;  %v1229_v19 = vld [vmem:[#allocation2 + $0x58] sm:$0xff]  ;;  %v1367_v22 = vld [vmem:[#allocation2 + $0x1d0] sm:$0xff]  ;;  %s8172_s30 = scalar_lea.vmem %s8496_s4, %s5846_s9 }
 0x186   : > { %5890 = vmatprep.subr.mxu1 %v1370_v10  ;;  %v1353_v16 = vld [vmem:[#allocation2 + $0x160] sm:$0xff]  ;;  %5853 = vmatpush3.msra.mxu0 %v1231_v11  ;;  %v1352_v20 = vld [vmem:[#allocation2 + $0x158] sm:$0xff]  ;;  %v1228_v23 = vld [vmem:[#allocation2 + $0x50] sm:$0xff] }
 0x187   : > { %5891 = vmatpush3.msra.mxu1 %v1354_v12  ;;  %5854 = vmatprep.subr.mxu0 %v1246_v13  ;;  %v1351_v24 = vld [vmem:[#allocation2 + $0x150] sm:$0xff]  ;;  %v1243_v25 = vld [vmem:[#allocation2 + $0xc8] sm:$0xff]  ;;  %v1242_v29 = vld [vmem:[#allocation2 + $0xc0] sm:$0xff] }
 0x188   : > { %5892 = vmatprep.subr.mxu1 %v1369_v14  ;;  %5855 = vmatpush3.msra.mxu0 %v1230_v15  ;;  %v1366_v26 = vld [vmem:[#allocation2 + $0x1c8] sm:$0xff]  ;;  %v1365_v30 = vld [vmem:[#allocation2 + $0x1c0] sm:$0xff]  ;;  %v1241_v33 = vld [vmem:[#allocation2 + $0xb8] sm:$0xff] }
 0x189   : > { %5893 = vmatpush3.msra.mxu1 %v1353_v16  ;;  %5856 = vmatprep.subr.mxu0 %v1245_v17  ;;  %v1227_v27 = vld [vmem:[#allocation2 + $0x48] sm:$0xff]  ;;  %v1226_v31 = vld [vmem:[#allocation2 + $0x40] sm:$0xff]  ;;  %v1364_v34 = vld [vmem:[#allocation2 + $0x1b8] sm:$0xff]  ;;  %s1211_s2 = scalar_lea.vmem %s8497_s11, %s5846_s9 }
 0x18a   : > { %5894 = vmatprep.subr.mxu1 %v1368_v18  ;;  %5857 = vmatpush3.msra.mxu0 %v1229_v19  ;;  %v1350_v28 = vld [vmem:[#allocation2 + $0x148] sm:$0xff]  ;;  %v1349_v32 = vld [vmem:[#allocation2 + $0x140] sm:$0xff]  ;;  %v1225_v35 = vld [vmem:[#allocation2 + $0x38] sm:$0xff] }
 0x18b   : > { %5895 = vmatpush3.msra.mxu1 %v1352_v20  ;;  %5858 = vmatprep.subr.mxu0 %v1244_v21  ;;  %v1348_v36 = vld [vmem:[#allocation2 + $0x138] sm:$0xff]  ;;  %v1240_v37 = vld [vmem:[#allocation2 + $0xb0] sm:$0xff]  ;;  %v1239_v41 = vld [vmem:[#allocation2 + $0xa8] sm:$0xff] }
 0x18c   : > { %5896 = vmatprep.subr.mxu1 %v1367_v22  ;;  %5859 = vmatpush3.msra.mxu0 %v1228_v23  ;;  %v1363_v38 = vld [vmem:[#allocation2 + $0x1b0] sm:$0xff]  ;;  %v1362_v42 = vld [vmem:[#allocation2 + $0x1a8] sm:$0xff]  ;;  %v1238_v45 = vld [vmem:[#allocation2 + $0xa0] sm:$0xff] }
 0x18d   : > { %5897 = vmatpush3.msra.mxu1 %v1351_v24  ;;  %5860 = vmatprep.subr.mxu0 %v1243_v25  ;;  %v1224_v39 = vld [vmem:[#allocation2 + $0x30] sm:$0xff]  ;;  %v1223_v43 = vld [vmem:[#allocation2 + $0x28] sm:$0xff]  ;;  %v1361_v46 = vld [vmem:[#allocation2 + $0x1a0] sm:$0xff] }
 0x18e   : > { %5898 = vmatprep.subr.mxu1 %v1366_v26  ;;  %5861 = vmatpush3.msra.mxu0 %v1227_v27  ;;  %v1347_v40 = vld [vmem:[#allocation2 + $0x130] sm:$0xff]  ;;  %v1346_v44 = vld [vmem:[#allocation2 + $0x128] sm:$0xff]  ;;  %v1222_v47 = vld [vmem:[#allocation2 + $0x20] sm:$0xff] }
 0x18f   : > { %5899 = vmatpush3.msra.mxu1 %v1350_v28  ;;  %5862 = vmatprep.subr.mxu0 %v1242_v29  ;;  %v1345_v48 = vld [vmem:[#allocation2 + $0x120] sm:$0xff]  ;;  %v1237_v49 = vld [vmem:[#allocation2 + $0x98] sm:$0xff]  ;;  %v1236_v53 = vld [vmem:[#allocation2 + $0x90] sm:$0xff] }
 0x190   : > { %5900 = vmatprep.subr.mxu1 %v1365_v30  ;;  %5863 = vmatpush3.msra.mxu0 %v1226_v31  ;;  %v1360_v50 = vld [vmem:[#allocation2 + $0x198] sm:$0xff]  ;;  %v1359_v54 = vld [vmem:[#allocation2 + $0x190] sm:$0xff]  ;;  %v1235_v57 = vld [vmem:[#allocation2 + $0x88] sm:$0xff] }
 0x191   : > { %5901 = vmatpush3.msra.mxu1 %v1349_v32  ;;  %5864 = vmatprep.subr.mxu0 %v1241_v33  ;;  %v1221_v51 = vld [vmem:[#allocation2 + $0x18] sm:$0xff]  ;;  %v1220_v55 = vld [vmem:[#allocation2 + $0x10] sm:$0xff]  ;;  %v1358_v58 = vld [vmem:[#allocation2 + $0x188] sm:$0xff] }
 0x192   : > { %5902 = vmatprep.subr.mxu1 %v1364_v34  ;;  %5865 = vmatpush3.msra.mxu0 %v1225_v35  ;;  %v1344_v52 = vld [vmem:[#allocation2 + $0x118] sm:$0xff]  ;;  %v1343_v56 = vld [vmem:[#allocation2 + $0x110] sm:$0xff]  ;;  %v1219_v59 = vld [vmem:[#allocation2 + $0x8] sm:$0xff] }
 0x193   : > { %5903 = vmatpush3.msra.mxu1 %v1348_v36  ;;  %5866 = vmatprep.subr.mxu0 %v1240_v37  ;;  %v1342_v60 = vld [vmem:[#allocation2 + $0x108] sm:$0xff]  ;;  %v1234_v61 = vld [vmem:[#allocation2 + $0x80] sm:$0xff]  ;;  %v1497_v3 = vld [vmem:[#allocation2 + $0x2f8] sm:$0xff] }
 0x194   : > { %5904 = vmatprep.subr.mxu1 %v1363_v38  ;;  %5867 = vmatpush3.msra.mxu0 %v1224_v39  ;;  %v1357_v62 = vld [vmem:[#allocation2 + $0x180] sm:$0xff]  ;;  %v8175_v0 = vld [vmem:[%s8172_s30 + $0x8] sm:$0xff]  ;;  %v1622_v4 = vld [vmem:[#allocation2 + $0x3f8] sm:$0xff] }
 0x195   : > { %5905 = vmatpush3.msra.mxu1 %v1347_v40  ;;  %5868 = vmatprep.subr.mxu0 %v1239_v41  ;;  %v1218_v63 = vld [vmem:[#allocation2] sm:$0xff]  ;;  %v1481_v5 = vld [vmem:[#allocation2 + $0x278] sm:$0xff]  ;;  %v1496_v7 = vld [vmem:[#allocation2 + $0x2f0] sm:$0xff] }
 0x196   : > { %5906 = vmatprep.subr.mxu1 %v1362_v42  ;;  %5869 = vmatpush3.msra.mxu0 %v1223_v43  ;;  %v1341_v1 = vld [vmem:[#allocation2 + $0x100] sm:$0xff]  ;;  %v1606_v6 = vld [vmem:[#allocation2 + $0x378] sm:$0xff]  ;;  %v1621_v8 = vld [vmem:[#allocation2 + $0x3f0] sm:$0xff] }
 0x197   : > { %5907 = vmatpush3.msra.mxu1 %v1346_v44  ;;  %5870 = vmatprep.subr.mxu0 %v1238_v45  ;;  %v8178_v2 = vld [vmem:[%s8172_s30] sm:$0xff]  ;;  %v1480_v9 = vld [vmem:[#allocation2 + $0x270] sm:$0xff]  ;;  %v1495_v11 = vld [vmem:[#allocation2 + $0x2e8] sm:$0xff] }
 0x198   : > { %5908 = vmatprep.subr.mxu1 %v1361_v46  ;;  %5871 = vmatpush3.msra.mxu0 %v1222_v47  ;;  %v1605_v10 = vld [vmem:[#allocation2 + $0x370] sm:$0xff]  ;;  %v1620_v12 = vld [vmem:[#allocation2 + $0x3e8] sm:$0xff]  ;;  %v1494_v15 = vld [vmem:[#allocation2 + $0x2e0] sm:$0xff] }
 0x199   : > { %5909 = vmatpush3.msra.mxu1 %v1345_v48  ;;  %5872 = vmatprep.subr.mxu0 %v1237_v49  ;;  %v1479_v13 = vld [vmem:[#allocation2 + $0x268] sm:$0xff]  ;;  %v1619_v16 = vld [vmem:[#allocation2 + $0x3e0] sm:$0xff]  ;;  %v1493_v19 = vld [vmem:[#allocation2 + $0x2d8] sm:$0xff] }
 0x19a   : > { %5910 = vmatprep.subr.mxu1 %v1360_v50  ;;  %5873 = vmatpush3.msra.mxu0 %v1221_v51  ;;  %v1604_v14 = vld [vmem:[#allocation2 + $0x368] sm:$0xff]  ;;  %v1478_v17 = vld [vmem:[#allocation2 + $0x260] sm:$0xff]  ;;  %v1618_v20 = vld [vmem:[#allocation2 + $0x3d8] sm:$0xff] }
 0x19b   : > { %5911 = vmatpush3.msra.mxu1 %v1344_v52  ;;  %5874 = vmatprep.subr.mxu0 %v1236_v53  ;;  %v1603_v18 = vld [vmem:[#allocation2 + $0x360] sm:$0xff]  ;;  %v1477_v21 = vld [vmem:[#allocation2 + $0x258] sm:$0xff]  ;;  %v1492_v23 = vld [vmem:[#allocation2 + $0x2d0] sm:$0xff] }
 0x19c   : > { %5912 = vmatprep.subr.mxu1 %v1359_v54  ;;  %5875 = vmatpush3.msra.mxu0 %v1220_v55  ;;  %v1602_v22 = vld [vmem:[#allocation2 + $0x358] sm:$0xff]  ;;  %v1617_v24 = vld [vmem:[#allocation2 + $0x3d0] sm:$0xff]  ;;  %v1491_v27 = vld [vmem:[#allocation2 + $0x2c8] sm:$0xff] }
 0x19d   : > { %5913 = vmatpush3.msra.mxu1 %v1343_v56  ;;  %5876 = vmatprep.subr.mxu0 %v1235_v57  ;;  %v1476_v25 = vld [vmem:[#allocation2 + $0x250] sm:$0xff]  ;;  %v1616_v28 = vld [vmem:[#allocation2 + $0x3c8] sm:$0xff]  ;;  %v1490_v31 = vld [vmem:[#allocation2 + $0x2c0] sm:$0xff] }
 0x19e   : > { %5914 = vmatprep.subr.mxu1 %v1358_v58  ;;  %5877 = vmatpush3.msra.mxu0 %v1219_v59  ;;  %v1601_v26 = vld [vmem:[#allocation2 + $0x350] sm:$0xff]  ;;  %v1475_v29 = vld [vmem:[#allocation2 + $0x248] sm:$0xff]  ;;  %v1615_v32 = vld [vmem:[#allocation2 + $0x3c0] sm:$0xff] }
 0x19f   : > { %5915 = vmatpush3.msra.mxu1 %v1342_v60  ;;  %5878 = vmatprep.subr.mxu0 %v1234_v61  ;;  %v1600_v30 = vld [vmem:[#allocation2 + $0x348] sm:$0xff]  ;;  %v1474_v33 = vld [vmem:[#allocation2 + $0x240] sm:$0xff]  ;;  %v1489_v35 = vld [vmem:[#allocation2 + $0x2b8] sm:$0xff] }
 0x1a0   : > { %5916 = vmatprep.subr.mxu1 %v1357_v62  ;;  %5879 = vmatpush3.msra.mxu0 %v1218_v63  ;;  %v1599_v34 = vld [vmem:[#allocation2 + $0x340] sm:$0xff]  ;;  %v1614_v36 = vld [vmem:[#allocation2 + $0x3b8] sm:$0xff]  ;;  %v1488_v39 = vld [vmem:[#allocation2 + $0x2b0] sm:$0xff] }
 0x1a1   : > { %1314 = vmatprep.mubr.f32.mxu0 %v8175_v0  ;;  %5917 = vmatpush3.msra.mxu1 %v1341_v1  ;;  %v1473_v37 = vld [vmem:[#allocation2 + $0x238] sm:$0xff]  ;;  %v1613_v40 = vld [vmem:[#allocation2 + $0x3b0] sm:$0xff]  ;;  %v1487_v43 = vld [vmem:[#allocation2 + $0x2a8] sm:$0xff] }
 0x1a2   : > { %1437 = vmatprep.mubr.f32.mxu1 %v8175_v0  ;;  %1315 = vmatmul.mubr.f32.vlgmr.msra.gmra.mxu0 %v8178_v2  ;;  %v1598_v38 = vld [vmem:[#allocation2 + $0x338] sm:$0xff]  ;;  %v1472_v41 = vld [vmem:[#allocation2 + $0x230] sm:$0xff]  ;;  %v1612_v44 = vld [vmem:[#allocation2 + $0x3a8] sm:$0xff] }
 0x1a3   : > { %1438 = vmatmul.mubr.f32.vlgmr.msra.gmra.mxu1 %v8178_v2  ;;  %5924 = vmatprep.subr.mxu0 %v1497_v3  ;;  %v1597_v42 = vld [vmem:[#allocation2 + $0x330] sm:$0xff]  ;;  %v1471_v45 = vld [vmem:[#allocation2 + $0x228] sm:$0xff]  ;;  %v1486_v47 = vld [vmem:[#allocation2 + $0x2a0] sm:$0xff] }
 0x1a4   : > { %5962 = vmatprep.subr.mxu1 %v1622_v4  ;;  %5925 = vmatpush3.msra.mxu0 %v1481_v5  ;;  %v1596_v46 = vld [vmem:[#allocation2 + $0x328] sm:$0xff]  ;;  %v1611_v48 = vld [vmem:[#allocation2 + $0x3a0] sm:$0xff]  ;;  %v1485_v51 = vld [vmem:[#allocation2 + $0x298] sm:$0xff] }
 0x1a5   : > { %5963 = vmatpush3.msra.mxu1 %v1606_v6  ;;  %5926 = vmatprep.subr.mxu0 %v1496_v7  ;;  %v1470_v49 = vld [vmem:[#allocation2 + $0x220] sm:$0xff]  ;;  %v1610_v52 = vld [vmem:[#allocation2 + $0x398] sm:$0xff]  ;;  %v1484_v56 = vld [vmem:[#allocation2 + $0x290] sm:$0xff] }
 0x1a6   : > { %5964 = vmatprep.subr.mxu1 %v1621_v8  ;;  %5927 = vmatpush3.msra.mxu0 %v1480_v9  ;;  %v1595_v50 = vld [vmem:[#allocation2 + $0x320] sm:$0xff]  ;;  %v1469_v53 = vld [vmem:[#allocation2 + $0x218] sm:$0xff]  ;;  %v1609_v57 = vld [vmem:[#allocation2 + $0x390] sm:$0xff] }
 0x1a7   : > { %5965 = vmatpush3.msra.mxu1 %v1605_v10  ;;  %5928 = vmatprep.subr.mxu0 %v1495_v11  ;;  %v1594_v54 = vld [vmem:[#allocation2 + $0x318] sm:$0xff]  ;;  %v8188_v58 = vld [vmem:[%s8172_s30 + $0x10] sm:$0xff]  ;;  %v1483_v62 = vld [vmem:[#allocation2 + $0x288] sm:$0xff] }
 0x1a8   : > { %5966 = vmatprep.subr.mxu1 %v1620_v12  ;;  %5929 = vmatpush3.msra.mxu0 %v1479_v13  ;;  %v8185_v55 = vld [vmem:[%s8172_s30 + $0x18] sm:$0xff]  ;;  %v1468_v59 = vld [vmem:[#allocation2 + $0x210] sm:$0xff]  ;;  %v1608_v63 = vld [vmem:[#allocation2 + $0x388] sm:$0xff] }
 0x1a9   : > { %5967 = vmatpush3.msra.mxu1 %v1604_v14  ;;  %5930 = vmatprep.subr.mxu0 %v1494_v15  ;;  %v1593_v60 = vld [vmem:[#allocation2 + $0x310] sm:$0xff]  ;;  %v1467_v1 = vld [vmem:[#allocation2 + $0x208] sm:$0xff]  ;;  %v1482_v4 = vld [vmem:[#allocation2 + $0x280] sm:$0xff] }
 0x1aa   : > { %5968 = vmatprep.subr.mxu1 %v1619_v16  ;;  %5931 = vmatpush3.msra.mxu0 %v1478_v17  ;;  %v1216_v61 = vld [vmem:[#allocation7] sm:$0xff]  ;;  %v1592_v3 = vld [vmem:[#allocation2 + $0x308] sm:$0xff]  ;;  %v1607_v5 = vld [vmem:[#allocation2 + $0x380] sm:$0xff] }
 0x1ab   : > { %5969 = vmatpush3.msra.mxu1 %v1603_v18  ;;  %5932 = vmatprep.subr.mxu0 %v1493_v19  ;;  %v1466_v6 = vld [vmem:[#allocation2 + $0x200] sm:$0xff]  ;;  %v1747_v9 = vld [vmem:[#allocation2 + $0x4f8] sm:$0xff]  ;;  %v1746_v14 = vld [vmem:[#allocation2 + $0x4f0] sm:$0xff] }
 0x1ac   : > { %5970 = vmatprep.subr.mxu1 %v1618_v20  ;;  %5933 = vmatpush3.msra.mxu0 %v1477_v21  ;;  %v1591_v7 = vld [vmem:[#allocation2 + $0x300] sm:$0xff]  ;;  %v1872_v10 = vld [vmem:[#allocation2 + $0x5f8] sm:$0xff]  ;;  %v1871_v15 = vld [vmem:[#allocation2 + $0x5f0] sm:$0xff] }
 0x1ad   : > { %5971 = vmatpush3.msra.mxu1 %v1602_v22  ;;  %5934 = vmatprep.subr.mxu0 %v1492_v23  ;;  %v1338_v8 = vld [vmem:[#allocation7 + $0x10] sm:$0xff]  ;;  %v1217_v11 = vld [vmem:[#allocation7 + $0x8] sm:$0xff]  ;;  %v1730_v16 = vld [vmem:[#allocation2 + $0x470] sm:$0xff] }
 0x1ae   : > { %5972 = vmatprep.subr.mxu1 %v1617_v24  ;;  %5935 = vmatpush3.msra.mxu0 %v1476_v25  ;;  %v1731_v12 = vld [vmem:[#allocation2 + $0x478] sm:$0xff]  ;;  %v1855_v17 = vld [vmem:[#allocation2 + $0x570] sm:$0xff]  ;;  %v1745_v19 = vld [vmem:[#allocation2 + $0x4e8] sm:$0xff] }
 0x1af   : > { %5973 = vmatpush3.msra.mxu1 %v1601_v26  ;;  %5936 = vmatprep.subr.mxu0 %v1491_v27  ;;  %v1856_v13 = vld [vmem:[#allocation2 + $0x578] sm:$0xff]  ;;  %v1463_v18 = vld [vmem:[#allocation7 + $0x20] sm:$0xff]  ;;  %v1870_v20 = vld [vmem:[#allocation2 + $0x5e8] sm:$0xff] }
 0x1b0   : > { %5974 = vmatprep.subr.mxu1 %v1616_v28  ;;  %5937 = vmatpush3.msra.mxu0 %v1475_v29  ;;  %v1339_v21 = vld [vmem:[#allocation7 + $0x18] sm:$0xff]  ;;  %v1744_v24 = vld [vmem:[#allocation2 + $0x4e0] sm:$0xff]  ;;  %v1743_v29 = vld [vmem:[#allocation2 + $0x4d8] sm:$0xff] }
 0x1b1   : > { %5975 = vmatpush3.msra.mxu1 %v1600_v30  ;;  %5938 = vmatprep.subr.mxu0 %v1490_v31  ;;  %v1729_v22 = vld [vmem:[#allocation2 + $0x468] sm:$0xff]  ;;  %v1869_v25 = vld [vmem:[#allocation2 + $0x5e0] sm:$0xff]  ;;  %v1868_v30 = vld [vmem:[#allocation2 + $0x5d8] sm:$0xff] }
 0x1b2   : > { %5976 = vmatprep.subr.mxu1 %v1615_v32  ;;  %5939 = vmatpush3.msra.mxu0 %v1474_v33  ;;  %v1854_v23 = vld [vmem:[#allocation2 + $0x568] sm:$0xff]  ;;  %v1728_v26 = vld [vmem:[#allocation2 + $0x460] sm:$0xff]  ;;  %v1464_v31 = vld [vmem:[#allocation7 + $0x28] sm:$0xff] }
 0x1b3   : > { %5977 = vmatpush3.msra.mxu1 %v1599_v34  ;;  %5940 = vmatprep.subr.mxu0 %v1489_v35  ;;  %v1853_v27 = vld [vmem:[#allocation2 + $0x560] sm:$0xff]  ;;  %v1727_v32 = vld [vmem:[#allocation2 + $0x458] sm:$0xff]  ;;  %v1742_v34 = vld [vmem:[#allocation2 + $0x4d0] sm:$0xff] }
 0x1b4   : > { %5978 = vmatprep.subr.mxu1 %v1614_v36  ;;  %5941 = vmatpush3.msra.mxu0 %v1473_v37  ;;  %v1588_v28 = vld [vmem:[#allocation7 + $0x30] sm:$0xff]  ;;  %v1852_v33 = vld [vmem:[#allocation2 + $0x558] sm:$0xff]  ;;  %v1867_v35 = vld [vmem:[#allocation2 + $0x5d0] sm:$0xff] }
 0x1b5   : > { %5979 = vmatpush3.msra.mxu1 %v1598_v38  ;;  %5942 = vmatprep.subr.mxu0 %v1488_v39  ;;  %v1726_v36 = vld [vmem:[#allocation2 + $0x450] sm:$0xff]  ;;  %v1741_v39 = vld [vmem:[#allocation2 + $0x4c8] sm:$0xff] }
 0x1b6   : > { %5980 = vmatprep.subr.mxu1 %v1613_v40  ;;  %5943 = vmatpush3.msra.mxu0 %v1472_v41  ;;  %v1851_v37 = vld [vmem:[#allocation2 + $0x550] sm:$0xff]  ;;  %v1866_v40 = vld [vmem:[#allocation2 + $0x5c8] sm:$0xff] }
 0x1b7   : > { %5981 = vmatpush3.msra.mxu1 %v1597_v42  ;;  %5944 = vmatprep.subr.mxu0 %v1487_v43  ;;  %v1713_v38 = vld [vmem:[#allocation7 + $0x40] sm:$0xff]  ;;  %v1589_v41 = vld [vmem:[#allocation7 + $0x38] sm:$0xff] }
 0x1b8   : > { %5982 = vmatprep.subr.mxu1 %v1612_v44  ;;  %5945 = vmatpush3.msra.mxu0 %v1471_v45  ;;  %v1725_v42 = vld [vmem:[#allocation2 + $0x448] sm:$0xff]  ;;  %v1740_v44 = vld [vmem:[#allocation2 + $0x4c0] sm:$0xff] }
 0x1b9   : > { %5983 = vmatpush3.msra.mxu1 %v1596_v46  ;;  %5946 = vmatprep.subr.mxu0 %v1486_v47  ;;  %v1850_v43 = vld [vmem:[#allocation2 + $0x548] sm:$0xff]  ;;  %v1865_v45 = vld [vmem:[#allocation2 + $0x5c0] sm:$0xff] }
 0x1ba   : > { %5984 = vmatprep.subr.mxu1 %v1611_v48  ;;  %5947 = vmatpush3.msra.mxu0 %v1470_v49  ;;  %v1724_v46 = vld [vmem:[#allocation2 + $0x440] sm:$0xff]  ;;  %v1739_v49 = vld [vmem:[#allocation2 + $0x4b8] sm:$0xff] }
 0x1bb   : > { %5985 = vmatpush3.msra.mxu1 %v1595_v50  ;;  %5948 = vmatprep.subr.mxu0 %v1485_v51  ;;  %v1849_v47 = vld [vmem:[#allocation2 + $0x540] sm:$0xff]  ;;  %v1864_v50 = vld [vmem:[#allocation2 + $0x5b8] sm:$0xff] }
 0x1bc   : > { %5986 = vmatprep.subr.mxu1 %v1610_v52  ;;  %5949 = vmatpush3.msra.mxu0 %v1469_v53  ;;  %v1838_v48 = vld [vmem:[#allocation7 + $0x50] sm:$0xff]  ;;  %v1714_v51 = vld [vmem:[#allocation7 + $0x48] sm:$0xff] }
 0x1bd   : > { %5987 = vmatpush3.msra.mxu1 %v1594_v54  ;;  %1319 = vmatprep.mubr.f32.mxu0 %v8185_v55  ;;  %v1723_v52 = vld [vmem:[#allocation2 + $0x438] sm:$0xff]  ;;  %v1738_v54 = vld [vmem:[#allocation2 + $0x4b0] sm:$0xff] }
 0x1be   : > { %1442 = vmatprep.mubr.f32.mxu1 %v8185_v55  ;;  %5950 = vmatprep.subr.mxu0 %v1484_v56  ;;  %v1848_v53 = vld [vmem:[#allocation2 + $0x538] sm:$0xff]  ;;  %v1863_v56 = vld [vmem:[#allocation2 + $0x5b0] sm:$0xff] }
 0x1bf   : > { %5988 = vmatprep.subr.mxu1 %v1609_v57  ;;  %1320 = vmatmul.mubr.f32.gmra.mxu0 %v8188_v58  ;;  %v1722_v57 = vld [vmem:[#allocation2 + $0x430] sm:$0xff] }
 0x1c0   : > { %1443 = vmatmul.mubr.f32.gmra.mxu1 %v8188_v58  ;;  %5951 = vmatpush3.msra.mxu0 %v1468_v59  ;;  %v1847_v59 = vld [vmem:[#allocation2 + $0x530] sm:$0xff] }
 0x1c1   : > { %5989 = vmatpush3.msra.mxu1 %v1593_v60  ;;  %1327 = vperm.xlu0 %6885, %v1216_v61   ;;  %v1963_v60 = vld [vmem:[#allocation7 + $0x60] sm:$0xff]  ;;  %v1737_v61 = vld [vmem:[#allocation2 + $0x4a8] sm:$0xff] }
 0x1c2   : > { %5952 = vmatprep.subr.mxu0 %v1483_v62  ;;  %5990 = vmatprep.subr.mxu1 %v1608_v63  ;;  %v1862_v62 = vld [vmem:[#allocation2 + $0x5a8] sm:$0xff] }
 0x1c3   : > { %5953 = vmatpush3.msra.mxu0 %v1467_v1  ;;  %5991 = vmatpush3.msra.mxu1 %v1592_v3  ;;  %v1839_v63 = vld [vmem:[#allocation7 + $0x58] sm:$0xff] }
 0x1c4   : > { %5954 = vmatprep.subr.mxu0 %v1482_v4  ;;  %5992 = vmatprep.subr.mxu1 %v1607_v5  ;;  %v1721_v1 = vld [vmem:[#allocation2 + $0x428] sm:$0xff]  ;;  %v1736_v4 = vld [vmem:[#allocation2 + $0x4a0] sm:$0xff] }
 0x1c5   : > { %5955 = vmatpush3.msra.mxu0 %v1466_v6  ;;  %1562 = vmatprep.mubr.f32.mxu0 %v8175_v0  ;;  %v1846_v3 = vld [vmem:[#allocation2 + $0x528] sm:$0xff]  ;;  %v1861_v5 = vld [vmem:[#allocation2 + $0x5a0] sm:$0xff] }
 0x1c6   : > { %5993 = vmatpush3.msra.mxu1 %v1591_v7  ;;  %1450 = vperm.xlu0 %6885, %v1338_v8   ;;  %v1720_v6 = vld [vmem:[#allocation2 + $0x420] sm:$0xff] }
 0x1c7   : > { %1563 = vmatmul.mubr.f32.vlgmr.msra.gmra.mxu0 %v8178_v2  ;;  %1687 = vmatprep.mubr.f32.mxu1 %v8175_v0  ;;  %v1845_v7 = vld [vmem:[#allocation2 + $0x520] sm:$0xff] }
 0x1c8   : > { %6000 = vmatprep.subr.mxu0 %v1747_v9  ;;  %6038 = vmatprep.subr.mxu1 %v1872_v10  ;;  %v2088_v8 = vld [vmem:[#allocation7 + $0x70] sm:$0xff]  ;;  %v1735_v9 = vld [vmem:[#allocation2 + $0x498] sm:$0xff] }
 0x1c9   : > { %1332 = vperm.xlu1 %6886, %v1217_v11   ;;  %1688 = vmatmul.mubr.f32.vlgmr.msra.gmra.mxu1 %v8178_v2  ;;  %v1860_v10 = vld [vmem:[#allocation2 + $0x598] sm:$0xff] }
 0x1ca   : > { %6001 = vmatpush3.msra.mxu0 %v1731_v12  ;;  %6039 = vmatpush3.msra.mxu1 %v1856_v13  ;;  %v1964_v11 = vld [vmem:[#allocation7 + $0x68] sm:$0xff] }
 0x1cb   : > { %6002 = vmatprep.subr.mxu0 %v1746_v14  ;;  %6040 = vmatprep.subr.mxu1 %v1871_v15  ;;  %v1719_v12 = vld [vmem:[#allocation2 + $0x418] sm:$0xff]  ;;  %v1734_v14 = vld [vmem:[#allocation2 + $0x490] sm:$0xff] }
 0x1cc   : > { %1567 = vmatprep.mubr.f32.mxu0 %v8185_v55  ;;  %6003 = vmatpush3.msra.mxu0 %v1730_v16  ;;  %v1844_v13 = vld [vmem:[#allocation2 + $0x518] sm:$0xff]  ;;  %v1859_v15 = vld [vmem:[#allocation2 + $0x590] sm:$0xff] }
 0x1cd   : > { %6041 = vmatpush3.msra.mxu1 %v1855_v17  ;;  %1575 = vperm.xlu0 %6885, %v1463_v18   ;;  %v1718_v16 = vld [vmem:[#allocation2 + $0x410] sm:$0xff] }
 0x1ce   : > { %1568 = vmatmul.mubr.f32.gmra.mxu0 %v8188_v58  ;;  %6004 = vmatprep.subr.mxu0 %v1745_v19  ;;  %v1843_v17 = vld [vmem:[#allocation2 + $0x510] sm:$0xff]  ;;  %v1733_v19 = vld [vmem:[#allocation2 + $0x488] sm:$0xff] }
 0x1cf   : > { %6042 = vmatprep.subr.mxu1 %v1870_v20  ;;  %1455 = vperm.xlu1 %6886, %v1339_v21   ;;  %v2213_v18 = vld [vmem:[#allocation7 + $0x80] sm:$0xff]  ;;  %v1858_v20 = vld [vmem:[#allocation2 + $0x588] sm:$0xff] }
 0x1d0   : > { %1692 = vmatprep.mubr.f32.mxu1 %v8185_v55  ;;  %6005 = vmatpush3.msra.mxu0 %v1729_v22  ;;  %v2089_v21 = vld [vmem:[#allocation7 + $0x78] sm:$0xff] }
 0x1d1   : > { %6043 = vmatpush3.msra.mxu1 %v1854_v23  ;;  %6006 = vmatprep.subr.mxu0 %v1744_v24  ;;  %v1717_v22 = vld [vmem:[#allocation2 + $0x408] sm:$0xff]  ;;  %v1732_v24 = vld [vmem:[#allocation2 + $0x480] sm:$0xff] }
 0x1d2   : > { %1693 = vmatmul.mubr.f32.gmra.mxu1 %v8188_v58  ;;  %6044 = vmatprep.subr.mxu1 %v1869_v25  ;;  %v1842_v23 = vld [vmem:[#allocation2 + $0x508] sm:$0xff]  ;;  %v1857_v25 = vld [vmem:[#allocation2 + $0x580] sm:$0xff] }
 0x1d3   : > { %6007 = vmatpush3.msra.mxu0 %v1728_v26  ;;  %6045 = vmatpush3.msra.mxu1 %v1853_v27  ;;  %v1716_v26 = vld [vmem:[#allocation2 + $0x400] sm:$0xff] }
 0x1d4   : > { %1700 = vperm.xlu0 %6885, %v1588_v28   ;;  %6008 = vmatprep.subr.mxu0 %v1743_v29  ;;  %v1841_v27 = vld [vmem:[#allocation2 + $0x500] sm:$0xff]  ;;  %v1997_v29 = vld [vmem:[#allocation2 + $0x6f8] sm:$0xff] }
 0x1d5   : > { %6046 = vmatprep.subr.mxu1 %v1868_v30  ;;  %1580 = vperm.xlu1 %6886, %v1464_v31   ;;  %v2337_v28 = vld [vmem:[#allocation9] sm:$0xff]  ;;  %v2122_v30 = vld [vmem:[#allocation2 + $0x7f8] sm:$0xff] }
 0x1d6   : > { %6009 = vmatpush3.msra.mxu0 %v1727_v32  ;;  %6047 = vmatpush3.msra.mxu1 %v1852_v33  ;;  %v2214_v31 = vld [vmem:[#allocation7 + $0x88] sm:$0xff] }
 0x1d7   : > { %6010 = vmatprep.subr.mxu0 %v1742_v34  ;;  %6048 = vmatprep.subr.mxu1 %v1867_v35  ;;  %v1981_v32 = vld [vmem:[#allocation2 + $0x678] sm:$0xff]  ;;  %v1996_v34 = vld [vmem:[#allocation2 + $0x6f0] sm:$0xff] }
 0x1d8   : > { %6011 = vmatpush3.msra.mxu0 %v1726_v36  ;;  %6049 = vmatpush3.msra.mxu1 %v1851_v37  ;;  %v2106_v33 = vld [vmem:[#allocation2 + $0x778] sm:$0xff]  ;;  %v2121_v35 = vld [vmem:[#allocation2 + $0x7f0] sm:$0xff] }
 0x1d9   : > { %1825 = vperm.xlu0 %6885, %v1713_v38   ;;  %6012 = vmatprep.subr.mxu0 %v1741_v39  ;;  %v1980_v36 = vld [vmem:[#allocation2 + $0x670] sm:$0xff]  ;;  %v1995_v39 = vld [vmem:[#allocation2 + $0x6e8] sm:$0xff] }
 0x1da   : > { %6050 = vmatprep.subr.mxu1 %v1866_v40  ;;  %1705 = vperm.xlu1 %6886, %v1589_v41   ;;  %v2105_v37 = vld [vmem:[#allocation2 + $0x770] sm:$0xff]  ;;  %v2120_v40 = vld [vmem:[#allocation2 + $0x7e8] sm:$0xff] }
 0x1db   : > { %6013 = vmatpush3.msra.mxu0 %v1725_v42  ;;  %6051 = vmatpush3.msra.mxu1 %v1850_v43  ;;  %v2351_v38 = vld [vmem:[#allocation10] sm:$0xff]  ;;  %v2338_v41 = vld [vmem:[#allocation9 + $0x8] sm:$0xff] }
 0x1dc   : > { %6014 = vmatprep.subr.mxu0 %v1740_v44  ;;  %6052 = vmatprep.subr.mxu1 %v1865_v45  ;;  %v1979_v42 = vld [vmem:[#allocation2 + $0x668] sm:$0xff]  ;;  %v1994_v44 = vld [vmem:[#allocation2 + $0x6e0] sm:$0xff] }
 0x1dd   : > { %6015 = vmatpush3.msra.mxu0 %v1724_v46  ;;  %6053 = vmatpush3.msra.mxu1 %v1849_v47  ;;  %v2104_v43 = vld [vmem:[#allocation2 + $0x768] sm:$0xff]  ;;  %v2119_v45 = vld [vmem:[#allocation2 + $0x7e0] sm:$0xff] }
 0x1de   : > { %1950 = vperm.xlu0 %6885, %v1838_v48   ;;  %6016 = vmatprep.subr.mxu0 %v1739_v49  ;;  %v1978_v46 = vld [vmem:[#allocation2 + $0x660] sm:$0xff]  ;;  %v2352_v48 = vld [vmem:[#allocation10 + $0x8] sm:$0xff] }
 0x1df   : > { %6054 = vmatprep.subr.mxu1 %v1864_v50  ;;  %1830 = vperm.xlu1 %6886, %v1714_v51   ;;  %v2103_v47 = vld [vmem:[#allocation2 + $0x760] sm:$0xff]  ;;  %v1993_v49 = vld [vmem:[#allocation2 + $0x6d8] sm:$0xff] }
 0x1e0   : > { %6017 = vmatpush3.msra.mxu0 %v1723_v52  ;;  %6055 = vmatpush3.msra.mxu1 %v1848_v53  ;;  %v2118_v50 = vld [vmem:[#allocation2 + $0x7d8] sm:$0xff]  ;;  %v2456_v51 = vld [vmem:[#allocation10 + $0x10] sm:$0xff] }
 0x1e1   : > { %6018 = vmatprep.subr.mxu0 %v1738_v54  ;;  %6056 = vmatprep.subr.mxu1 %v1863_v56  ;;  %v1977_v52 = vld [vmem:[#allocation2 + $0x658] sm:$0xff]  ;;  %v1992_v54 = vld [vmem:[#allocation2 + $0x6d0] sm:$0xff] }
 0x1e2   : > { %6019 = vmatpush3.msra.mxu0 %v1722_v57  ;;  %6057 = vmatpush3.msra.mxu1 %v1847_v59  ;;  %v2102_v53 = vld [vmem:[#allocation2 + $0x758] sm:$0xff]  ;;  %v2117_v56 = vld [vmem:[#allocation2 + $0x7d0] sm:$0xff] }
 0x1e3   : > { %2075 = vperm.xlu0 %6885, %v1963_v60   ;;  %6020 = vmatprep.subr.mxu0 %v1737_v61  ;;  %v1976_v57 = vld [vmem:[#allocation2 + $0x650] sm:$0xff]  ;;  %v1991_v61 = vld [vmem:[#allocation2 + $0x6c8] sm:$0xff] }
 0x1e4   : > { %6058 = vmatprep.subr.mxu1 %v1862_v62  ;;  %1955 = vperm.xlu1 %6886, %v1839_v63   ;;  %v2101_v59 = vld [vmem:[#allocation2 + $0x750] sm:$0xff]  ;;  %v2116_v62 = vld [vmem:[#allocation2 + $0x7c8] sm:$0xff] }
 0x1e5   : > { %6021 = vmatpush3.msra.mxu0 %v1721_v1  ;;  %6059 = vmatpush3.msra.mxu1 %v1846_v3  ;;  %v2557_v60 = vld [vmem:[#allocation10 + $0x20] sm:$0xff]  ;;  %v2457_v63 = vld [vmem:[#allocation10 + $0x18] sm:$0xff] }
 0x1e6   : > { %6022 = vmatprep.subr.mxu0 %v1736_v4  ;;  %6060 = vmatprep.subr.mxu1 %v1861_v5  ;;  %v1975_v1 = vld [vmem:[#allocation2 + $0x648] sm:$0xff]  ;;  %v1990_v4 = vld [vmem:[#allocation2 + $0x6c0] sm:$0xff] }
 0x1e7   : > { %6023 = vmatpush3.msra.mxu0 %v1720_v6  ;;  %6061 = vmatpush3.msra.mxu1 %v1845_v7  ;;  %v2100_v3 = vld [vmem:[#allocation2 + $0x748] sm:$0xff]  ;;  %v2115_v5 = vld [vmem:[#allocation2 + $0x7c0] sm:$0xff] }
 0x1e8   : > { %2200 = vperm.xlu0 %6885, %v2088_v8   ;;  %6024 = vmatprep.subr.mxu0 %v1735_v9  ;;  %v1974_v6 = vld [vmem:[#allocation2 + $0x640] sm:$0xff]  ;;  %v1989_v9 = vld [vmem:[#allocation2 + $0x6b8] sm:$0xff] }
 0x1e9   : > { %6062 = vmatprep.subr.mxu1 %v1860_v10  ;;  %2080 = vperm.xlu1 %6886, %v1964_v11   ;;  %v2099_v7 = vld [vmem:[#allocation2 + $0x740] sm:$0xff]  ;;  %v2114_v10 = vld [vmem:[#allocation2 + $0x7b8] sm:$0xff] }
 0x1ea   : > { %6025 = vmatpush3.msra.mxu0 %v1719_v12  ;;  %6063 = vmatpush3.msra.mxu1 %v1844_v13  ;;  %v2658_v8 = vld [vmem:[#allocation10 + $0x30] sm:$0xff]  ;;  %v2558_v11 = vld [vmem:[#allocation10 + $0x28] sm:$0xff] }
 0x1eb   : > { %6026 = vmatprep.subr.mxu0 %v1734_v14  ;;  %6064 = vmatprep.subr.mxu1 %v1859_v15  ;;  %v1973_v12 = vld [vmem:[#allocation2 + $0x638] sm:$0xff]  ;;  %v1988_v14 = vld [vmem:[#allocation2 + $0x6b0] sm:$0xff] }
 0x1ec   : > { %6027 = vmatpush3.msra.mxu0 %v1718_v16  ;;  %6065 = vmatpush3.msra.mxu1 %v1843_v17  ;;  %v2098_v13 = vld [vmem:[#allocation2 + $0x738] sm:$0xff]  ;;  %v2113_v15 = vld [vmem:[#allocation2 + $0x7b0] sm:$0xff] }
 0x1ed   : > { %2325 = vperm.xlu0 %6885, %v2213_v18   ;;  %6028 = vmatprep.subr.mxu0 %v1733_v19  ;;  %v1972_v16 = vld [vmem:[#allocation2 + $0x630] sm:$0xff]  ;;  %v1987_v19 = vld [vmem:[#allocation2 + $0x6a8] sm:$0xff] }
 0x1ee   : > { %6066 = vmatprep.subr.mxu1 %v1858_v20  ;;  %2205 = vperm.xlu1 %6886, %v2089_v21   ;;  %v2097_v17 = vld [vmem:[#allocation2 + $0x730] sm:$0xff]  ;;  %v2112_v20 = vld [vmem:[#allocation2 + $0x7a8] sm:$0xff] }
 0x1ef   : > { %6029 = vmatpush3.msra.mxu0 %v1717_v22  ;;  %6067 = vmatpush3.msra.mxu1 %v1842_v23  ;;  %v2759_v18 = vld [vmem:[#allocation10 + $0x40] sm:$0xff]  ;;  %v2659_v21 = vld [vmem:[#allocation10 + $0x38] sm:$0xff] }
 0x1f0   : > { %6030 = vmatprep.subr.mxu0 %v1732_v24  ;;  %6068 = vmatprep.subr.mxu1 %v1857_v25  ;;  %v1971_v22 = vld [vmem:[#allocation2 + $0x628] sm:$0xff]  ;;  %v1986_v24 = vld [vmem:[#allocation2 + $0x6a0] sm:$0xff] }
 0x1f1   : > { %6031 = vmatpush3.msra.mxu0 %v1716_v26  ;;  %1812 = vmatprep.mubr.f32.mxu0 %v8175_v0  ;;  %v2096_v23 = vld [vmem:[#allocation2 + $0x728] sm:$0xff]  ;;  %v2111_v25 = vld [vmem:[#allocation2 + $0x7a0] sm:$0xff] }
 0x1f2   : > { %6069 = vmatpush3.msra.mxu1 %v1841_v27  ;;  %2341 = vperm.xlu0 %6885, %v2337_v28   ;;  %v1970_v26 = vld [vmem:[#allocation2 + $0x620] sm:$0xff] }
 0x1f3   : > { %1813 = vmatmul.mubr.f32.vlgmr.msra.gmra.mxu0 %v8178_v2  ;;  %1937 = vmatprep.mubr.f32.mxu1 %v8175_v0  ;;  %v2095_v27 = vld [vmem:[#allocation2 + $0x720] sm:$0xff] }
 0x1f4   : > { %6076 = vmatprep.subr.mxu0 %v1997_v29  ;;  %6114 = vmatprep.subr.mxu1 %v2122_v30  ;;  %v2860_v28 = vld [vmem:[#allocation10 + $0x50] sm:$0xff]  ;;  %v1985_v29 = vld [vmem:[#allocation2 + $0x698] sm:$0xff] }
 0x1f5   : > { %2330 = vperm.xlu1 %6886, %v2214_v31   ;;  %1938 = vmatmul.mubr.f32.vlgmr.msra.gmra.mxu1 %v8178_v2  ;;  %v2110_v30 = vld [vmem:[#allocation2 + $0x798] sm:$0xff] }
 0x1f6   : > { %6077 = vmatpush3.msra.mxu0 %v1981_v32  ;;  %6115 = vmatpush3.msra.mxu1 %v2106_v33  ;;  %v2760_v31 = vld [vmem:[#allocation10 + $0x48] sm:$0xff] }
 0x1f7   : > { %6078 = vmatprep.subr.mxu0 %v1996_v34  ;;  %6116 = vmatprep.subr.mxu1 %v2121_v35  ;;  %v1969_v32 = vld [vmem:[#allocation2 + $0x618] sm:$0xff]  ;;  %v1984_v34 = vld [vmem:[#allocation2 + $0x690] sm:$0xff] }
 0x1f8   : > { %1817 = vmatprep.mubr.f32.mxu0 %v8185_v55  ;;  %6079 = vmatpush3.msra.mxu0 %v1980_v36  ;;  %v2094_v33 = vld [vmem:[#allocation2 + $0x718] sm:$0xff]  ;;  %v2109_v35 = vld [vmem:[#allocation2 + $0x790] sm:$0xff] }
 0x1f9   : > { %6117 = vmatpush3.msra.mxu1 %v2105_v37  ;;  %2445 = vperm.xlu0 %6885, %v2351_v38   ;;  %v1968_v36 = vld [vmem:[#allocation2 + $0x610] sm:$0xff] }
 0x1fa   : > { %1818 = vmatmul.mubr.f32.gmra.mxu0 %v8188_v58  ;;  %6080 = vmatprep.subr.mxu0 %v1995_v39  ;;  %v2093_v37 = vld [vmem:[#allocation2 + $0x710] sm:$0xff]  ;;  %v1983_v39 = vld [vmem:[#allocation2 + $0x688] sm:$0xff] }
 0x1fb   : > { %6118 = vmatprep.subr.mxu1 %v2120_v40  ;;  %2346 = vperm.xlu1 %6886, %v2338_v41   ;;  %v2961_v38 = vld [vmem:[#allocation10 + $0x60] sm:$0xff]  ;;  %v2108_v40 = vld [vmem:[#allocation2 + $0x788] sm:$0xff] }
 0x1fc   : > { %1942 = vmatprep.mubr.f32.mxu1 %v8185_v55  ;;  %6081 = vmatpush3.msra.mxu0 %v1979_v42  ;;  %v2861_v41 = vld [vmem:[#allocation10 + $0x58] sm:$0xff] }
 0x1fd   : > { %6119 = vmatpush3.msra.mxu1 %v2104_v43  ;;  %6082 = vmatprep.subr.mxu0 %v1994_v44  ;;  %v1967_v42 = vld [vmem:[#allocation2 + $0x608] sm:$0xff]  ;;  %v1982_v44 = vld [vmem:[#allocation2 + $0x680] sm:$0xff] }
 0x1fe   : > { %1943 = vmatmul.mubr.f32.gmra.mxu1 %v8188_v58  ;;  %6120 = vmatprep.subr.mxu1 %v2119_v45  ;;  %v2092_v43 = vld [vmem:[#allocation2 + $0x708] sm:$0xff]  ;;  %v2107_v45 = vld [vmem:[#allocation2 + $0x780] sm:$0xff] }
 0x1ff   : > { %6083 = vmatpush3.msra.mxu0 %v1978_v46  ;;  %6121 = vmatpush3.msra.mxu1 %v2103_v47  ;;  %v1966_v46 = vld [vmem:[#allocation2 + $0x600] sm:$0xff] }
 0x200   : > { %2450 = vperm.xlu0 %6885, %v2352_v48   ;;  %6084 = vmatprep.subr.mxu0 %v1993_v49  ;;  %v2091_v47 = vld [vmem:[#allocation2 + $0x700] sm:$0xff]  ;;  %v2247_v49 = vld [vmem:[#allocation2 + $0x8f8] sm:$0xff] }
 0x201   : > { %6122 = vmatprep.subr.mxu1 %v2118_v50  ;;  %2544 = vperm.xlu1 %6886, %v2456_v51   ;;  %v3062_v48 = vld [vmem:[#allocation10 + $0x70] sm:$0xff]  ;;  %v2962_v50 = vld [vmem:[#allocation10 + $0x68] sm:$0xff] }
 0x202   : > { %6085 = vmatpush3.msra.mxu0 %v1977_v52  ;;  %6123 = vmatpush3.msra.mxu1 %v2102_v53  ;;  %v2231_v51 = vld [vmem:[#allocation2 + $0x878] sm:$0xff]  ;;  %v2246_v52 = vld [vmem:[#allocation2 + $0x8f0] sm:$0xff] }
 0x203   : > { %6086 = vmatprep.subr.mxu0 %v1992_v54  ;;  %6124 = vmatprep.subr.mxu1 %v2117_v56  ;;  %v2230_v53 = vld [vmem:[#allocation2 + $0x870] sm:$0xff]  ;;  %v2245_v56 = vld [vmem:[#allocation2 + $0x8e8] sm:$0xff] }
 0x204   : > { %6087 = vmatpush3.msra.mxu0 %v1976_v57  ;;  %6125 = vmatpush3.msra.mxu1 %v2101_v59  ;;  %v3163_v54 = vld [vmem:[#allocation10 + $0x80] sm:$0xff]  ;;  %v2229_v57 = vld [vmem:[#allocation2 + $0x868] sm:$0xff]  ;;  %v3263_v59 = vld [vmem:[#allocation12] sm:$0xff] }
 0x205   : > { %2645 = vperm.xlu0 %6885, %v2557_v60   ;;  %6088 = vmatprep.subr.mxu0 %v1991_v61  ;;  %v2228_v60 = vld [vmem:[#allocation2 + $0x860] sm:$0xff]  ;;  %v2243_v61 = vld [vmem:[#allocation2 + $0x8d8] sm:$0xff] }
 0x206   : > { %6126 = vmatprep.subr.mxu1 %v2116_v62  ;;  %2549 = vperm.xlu1 %6886, %v2457_v63   ;;  %v3164_v62 = vld [vmem:[#allocation10 + $0x88] sm:$0xff]  ;;  %v6892_v63 = vld [vmem:[%s8172_s30 + $0x8] sm:$0xff] }
 0x207   : > { %6089 = vmatpush3.msra.mxu0 %v1975_v1  ;;  %6127 = vmatpush3.msra.mxu1 %v2100_v3  ;;  %v2227_v1 = vld [vmem:[#allocation2 + $0x858] sm:$0xff]  ;;  %v2242_v3 = vld [vmem:[#allocation2 + $0x8d0] sm:$0xff] }
 0x208   : > { %6090 = vmatprep.subr.mxu0 %v1990_v4  ;;  %6128 = vmatprep.subr.mxu1 %v2115_v5  ;;  %v3278_v4 = vld [vmem:[#allocation13 + $0x8] sm:$0xff]  ;;  %v2226_v5 = vld [vmem:[#allocation2 + $0x850] sm:$0xff] }
 0x209   : > { %6091 = vmatpush3.msra.mxu0 %v1974_v6  ;;  %6129 = vmatpush3.msra.mxu1 %v2099_v7  ;;  %v2241_v6 = vld [vmem:[#allocation2 + $0x8c8] sm:$0xff] }
 0x20a   : > { %2746 = vperm.xlu0 %6885, %v2658_v8   ;;  %6092 = vmatprep.subr.mxu0 %v1989_v9  ;;  %v3264_v7 = vld [vmem:[#allocation12 + $0x8] sm:$0xff]  ;;  %v2240_v9 = vld [vmem:[#allocation2 + $0x8c0] sm:$0xff] }
 0x20b   : > { %6130 = vmatprep.subr.mxu1 %v2114_v10  ;;  %2650 = vperm.xlu1 %6886, %v2558_v11   ;;  %v2225_v8 = vld [vmem:[#allocation2 + $0x848] sm:$0xff]  ;;  %v3277_v10 = vld [vmem:[#allocation13] sm:$0xff]  ;;  %v2224_v11 = vld [vmem:[#allocation2 + $0x840] sm:$0xff] }
 0x20c   : > { %6093 = vmatpush3.msra.mxu0 %v1973_v12  ;;  %6131 = vmatpush3.msra.mxu1 %v2098_v13  ;;  %v2239_v12 = vld [vmem:[#allocation2 + $0x8b8] sm:$0xff]  ;;  %v3377_v13 = vld [vmem:[#allocation13 + $0x18] sm:$0xff] }
 0x20d   : > { %6094 = vmatprep.subr.mxu0 %v1988_v14  ;;  %6132 = vmatprep.subr.mxu1 %v2113_v15  ;;  %v2223_v14 = vld [vmem:[#allocation2 + $0x838] sm:$0xff]  ;;  %v2238_v15 = vld [vmem:[#allocation2 + $0x8b0] sm:$0xff] }
 0x20e   : > { %6095 = vmatpush3.msra.mxu0 %v1972_v16  ;;  %6133 = vmatpush3.msra.mxu1 %v2097_v17  ;;  %v3472_v16 = vld [vmem:[#allocation13 + $0x28] sm:$0xff]  ;;  %v2222_v17 = vld [vmem:[#allocation2 + $0x830] sm:$0xff] }
 0x20f   : > { %2847 = vperm.xlu0 %6885, %v2759_v18   ;;  %6096 = vmatprep.subr.mxu0 %v1987_v19  ;;  %v2237_v18 = vld [vmem:[#allocation2 + $0x8a8] sm:$0xff]  ;;  %v3376_v19 = vld [vmem:[#allocation13 + $0x10] sm:$0xff] }
 0x210   : > { %6134 = vmatprep.subr.mxu1 %v2112_v20  ;;  %2751 = vperm.xlu1 %6886, %v2659_v21   ;;  %v2221_v20 = vld [vmem:[#allocation2 + $0x828] sm:$0xff]  ;;  %v2236_v21 = vld [vmem:[#allocation2 + $0x8a0] sm:$0xff] }
 0x211   : > { %6097 = vmatpush3.msra.mxu0 %v1971_v22  ;;  %6135 = vmatpush3.msra.mxu1 %v2096_v23  ;;  %v3567_v22 = vld [vmem:[#allocation13 + $0x38] sm:$0xff]  ;;  %v2220_v23 = vld [vmem:[#allocation2 + $0x820] sm:$0xff] }
 0x212   : > { %6098 = vmatprep.subr.mxu0 %v1986_v24  ;;  %6136 = vmatprep.subr.mxu1 %v2111_v25  ;;  %v2235_v24 = vld [vmem:[#allocation2 + $0x898] sm:$0xff]  ;;  %v3471_v25 = vld [vmem:[#allocation13 + $0x20] sm:$0xff] }
 0x213   : > { %6099 = vmatpush3.msra.mxu0 %v1970_v26  ;;  %6137 = vmatpush3.msra.mxu1 %v2095_v27  ;;  %v2219_v26 = vld [vmem:[#allocation2 + $0x818] sm:$0xff]  ;;  %v2234_v27 = vld [vmem:[#allocation2 + $0x890] sm:$0xff] }
 0x214   : > { %2948 = vperm.xlu0 %6885, %v2860_v28   ;;  %6100 = vmatprep.subr.mxu0 %v1985_v29  ;;  %v3662_v28 = vld [vmem:[#allocation13 + $0x48] sm:$0xff]  ;;  %v2218_v29 = vld [vmem:[#allocation2 + $0x810] sm:$0xff] }
 0x215   : > { %6138 = vmatprep.subr.mxu1 %v2110_v30  ;;  %2852 = vperm.xlu1 %6886, %v2760_v31   ;;  %v2233_v30 = vld [vmem:[#allocation2 + $0x888] sm:$0xff]  ;;  %v3566_v31 = vld [vmem:[#allocation13 + $0x30] sm:$0xff] }
 0x216   : > { %6101 = vmatpush3.msra.mxu0 %v1969_v32  ;;  %6139 = vmatpush3.msra.mxu1 %v2094_v33  ;;  %v2217_v32 = vld [vmem:[#allocation2 + $0x808] sm:$0xff]  ;;  %v2232_v33 = vld [vmem:[#allocation2 + $0x880] sm:$0xff] }
 0x217   : > { %6102 = vmatprep.subr.mxu0 %v1984_v34  ;;  %6140 = vmatprep.subr.mxu1 %v2109_v35  ;;  %v3757_v34 = vld [vmem:[#allocation13 + $0x58] sm:$0xff]  ;;  %v2216_v35 = vld [vmem:[#allocation2 + $0x800] sm:$0xff] }
 0x218   : > { %6103 = vmatpush3.msra.mxu0 %v1968_v36  ;;  %6141 = vmatpush3.msra.mxu1 %v2093_v37  ;;  %v3661_v36 = vld [vmem:[#allocation13 + $0x40] sm:$0xff]  ;;  %v3852_v37 = vld [vmem:[#allocation13 + $0x68] sm:$0xff] }
 0x219   : > { %3049 = vperm.xlu0 %6885, %v2961_v38   ;;  %6104 = vmatprep.subr.mxu0 %v1983_v39  ;;  %v6893_v38 = vld [vmem:[%s8172_s30] sm:$0xff] }
 0x21a   : > { %6142 = vmatprep.subr.mxu1 %v2108_v40  ;;  %2953 = vperm.xlu1 %6886, %v2861_v41   ;;  %v3756_v39 = vld [vmem:[#allocation13 + $0x50] sm:$0xff]  ;;  %v3947_v40 = vld [vmem:[#allocation13 + $0x78] sm:$0xff]  ;;  %v3851_v41 = vld [vmem:[#allocation13 + $0x60] sm:$0xff] }
 0x21b   : > { %6105 = vmatpush3.msra.mxu0 %v1967_v42  ;;  %6143 = vmatpush3.msra.mxu1 %v2092_v43  ;;  %v4042_v42 = vld [vmem:[#allocation13 + $0x88] sm:$0xff]  ;;  %v3946_v43 = vld [vmem:[#allocation13 + $0x70] sm:$0xff] }
 0x21c   : > { %6106 = vmatprep.subr.mxu0 %v1982_v44  ;;  %6144 = vmatprep.subr.mxu1 %v2107_v45  ;;  %v4136_v44 = vld [vmem:[#allocation15 + $0x8] sm:$0xff]  ;;  %v4041_v45 = vld [vmem:[#allocation13 + $0x80] sm:$0xff] }
 0x21d   : > { %6107 = vmatpush3.msra.mxu0 %v1966_v46  ;;  %2062 = vmatprep.mubr.f32.mxu0 %v8175_v0  ;;  %v4154_v46 = vld [vmem:[#allocation18 + $0x10] sm:$0xff] }
 0x21e   : > { %6145 = vmatpush3.msra.mxu1 %v2091_v47  ;;  %2187 = vmatprep.mubr.f32.mxu1 %v8175_v0  ;;  %v3063_v0 = vld [vmem:[#allocation10 + $0x78] sm:$0xff]  ;;  %v4135_v47 = vld [vmem:[#allocation15] sm:$0xff] }
 0x21f   : > { %3150 = vperm.xlu0 %6885, %v3062_v48   ;;  %2063 = vmatmul.mubr.f32.vlgmr.msra.gmra.mxu0 %v8178_v2  ;;  %v4153_v48 = vld [vmem:[#allocation18 + $0x8] sm:$0xff] }
 0x220   : > { %2188 = vmatmul.mubr.f32.vlgmr.msra.gmra.mxu1 %v8178_v2  ;;  %6152 = vmatprep.subr.mxu0 %v2247_v49  ;;  %v2244_v2 = vld [vmem:[#allocation2 + $0x8e0] sm:$0xff]  ;;  %v4430_v49 = vld [vmem:[#allocation21] sm:$0xff] }
 0x221   : > { %3054 = vperm.xlu1 %6886, %v2962_v50   ;;  %6153 = vmatpush3.msra.mxu0 %v2231_v51  ;;  %v4710_v50 = vld [vmem:[#allocation27 + $0x8] sm:$0xf] }
 0x222   : > { %2067 = vmatprep.mubr.f32.mxu0 %v8185_v55  ;;  %6154 = vmatprep.subr.mxu0 %v2246_v52  ;;  %v4512_v51 = vld [vmem:[#allocation24 + $0x8] sm:$0xff]  ;;  %v4960_v52 = vld [vmem:[#allocation33] sm:$0xff] }
 0x223   : > { %2192 = vmatprep.mubr.f32.mxu1 %v8185_v55  ;;  %6155 = vmatpush3.msra.mxu0 %v2230_v53  ;;  %v4709_v53 = vld [vmem:[#allocation27] sm:$0xff] }
 0x224   : > { %3251 = vperm.xlu0 %6885, %v3163_v54   ;;  %2068 = vmatmul.mubr.f32.gmra.mxu0 %v8188_v58  ;;  %v5121_v54 = vld [vmem:[#allocation36] sm:$0xff] }
 0x225   : > { %2193 = vmatmul.mubr.f32.gmra.mxu1 %v8188_v58  ;;  %6156 = vmatprep.subr.mxu0 %v2245_v56  ;;  %v5122_v56 = vld [vmem:[#allocation36 + $0x8] sm:$0xff] }
 0x226   : > { %3155 = vperm.xlu1 %6886, %v3063_v0   ;;  %6157 = vmatpush3.msra.mxu0 %v2229_v57  ;;  %v5395_v0 = vld [vmem:[#allocation40 + $0x8] sm:$0xff]  ;;  %v5394_v57 = vld [vmem:[#allocation40] sm:$0xff] }
 0x227   : > { %2312 = vmatprep.mubr.f32.mxu0 %v6892_v63  ;;  %6158 = vmatprep.subr.mxu0 %v2244_v2  ;;  %v2360_v2 = vld [vmem:[#allocation4 + $0x38] sm:$0xff]  ;;  %v2565_v63 = vld [vmem:[#allocation4 + $0xa8] sm:$0xff] }
 0x228   : > { %3267 = vperm.xlu0 %6885, %v3263_v59   ;;  %6159 = vmatpush3.msra.mxu0 %v2228_v60  ;;  %v2567_v59 = vld [vmem:[#allocation4 + $0xb8] sm:$0xff]  ;;  %v2359_v60 = vld [vmem:[#allocation4 + $0x30] sm:$0xff] }
 0x229   : > { %6160 = vmatprep.subr.mxu0 %v2243_v61  ;;  %6334 = vmatprep.subr.mxu1 %v2360_v2  ;;  %v2566_v61 = vld [vmem:[#allocation4 + $0xb0] sm:$0xff] }
 0x22a   : > { %3256 = vperm.xlu1 %6886, %v3164_v62   ;;  %6161 = vmatpush3.msra.mxu0 %v2227_v1  ;;  %v2358_v62 = vld [vmem:[#allocation4 + $0x28] sm:$0xff]  ;;  %v2357_v1 = vld [vmem:[#allocation4 + $0x20] sm:$0xff] }
 0x22b   : > { %6162 = vmatprep.subr.mxu0 %v2242_v3  ;;  %6335 = vmatpush3.msra.mxu1 %v2360_v2  ;;  %v2564_v3 = vld [vmem:[#allocation4 + $0xa0] sm:$0xff] }
 0x22c   : > { %3370 = vperm.xlu0 %6885, %v3278_v4   ;;  %6163 = vmatpush3.msra.mxu0 %v2226_v5  ;;  %v2356_v4 = vld [vmem:[#allocation4 + $0x18] sm:$0xff] }
 0x22d   : > { %6164 = vmatprep.subr.mxu0 %v2241_v6  ;;  %6336 = vmatprep.subr.mxu1 %v2359_v60  ;;  %v2563_v5 = vld [vmem:[#allocation4 + $0x98] sm:$0xff]  ;;  %v2355_v6 = vld [vmem:[#allocation4 + $0x10] sm:$0xff] }
 0x22e   : > { %3272 = vperm.xlu1 %6886, %v3264_v7   ;;  %6165 = vmatpush3.msra.mxu0 %v2225_v8  ;;  %v2562_v7 = vld [vmem:[#allocation4 + $0x90] sm:$0xff]  ;;  %v2354_v8 = vld [vmem:[#allocation4 + $0x8] sm:$0xff] }
 0x22f   : > { %6166 = vmatprep.subr.mxu0 %v2240_v9  ;;  %6337 = vmatpush3.msra.mxu1 %v2359_v60  ;;  %v2561_v9 = vld [vmem:[#allocation4 + $0x88] sm:$0xff] }
 0x230   : > { %3365 = vperm.xlu0 %6885, %v3277_v10   ;;  %6167 = vmatpush3.msra.mxu0 %v2224_v11  ;;  %v2353_v10 = vld [vmem:[#allocation4] sm:$0xff] }
 0x231   : > { %6168 = vmatprep.subr.mxu0 %v2239_v12  ;;  %6338 = vmatprep.subr.mxu1 %v2358_v62  ;;  %v2560_v11 = vld [vmem:[#allocation4 + $0x80] sm:$0xff]  ;;  %v8222_v12 = vld [vmem:[#allocation4 + $0x78] sm:$0xff] }
 0x232   : > { %3463 = vperm.xlu1 %6886, %v3377_v13   ;;  %6169 = vmatpush3.msra.mxu0 %v2223_v14  ;;  %v8224_v13 = vld [vmem:[#allocation4 + $0x138] sm:$0xff] }
 0x233   : > { %6170 = vmatprep.subr.mxu0 %v2238_v15  ;;  %6339 = vmatpush3.msra.mxu1 %v2358_v62 }
 0x234   : > { %3558 = vperm.xlu0 %6885, %v3472_v16   ;;  %6171 = vmatpush3.msra.mxu0 %v2222_v17 }
 0x235   : > { %6172 = vmatprep.subr.mxu0 %v2237_v18  ;;  %6340 = vmatprep.subr.mxu1 %v2357_v1 }
 0x236   : > { %3458 = vperm.xlu1 %6886, %v3376_v19   ;;  %6173 = vmatpush3.msra.mxu0 %v2221_v20 }
 0x237   : > { %6174 = vmatprep.subr.mxu0 %v2236_v21  ;;  %6341 = vmatpush3.msra.mxu1 %v2357_v1 }
 0x238   : > { %3653 = vperm.xlu0 %6885, %v3567_v22   ;;  %6175 = vmatpush3.msra.mxu0 %v2220_v23 }
 0x239   : > { %6176 = vmatprep.subr.mxu0 %v2235_v24  ;;  %6342 = vmatprep.subr.mxu1 %v2356_v4 }
 0x23a   : > { %3553 = vperm.xlu1 %6886, %v3471_v25   ;;  %6177 = vmatpush3.msra.mxu0 %v2219_v26 }
 0x23b   : > { %6178 = vmatprep.subr.mxu0 %v2234_v27  ;;  %6343 = vmatpush3.msra.mxu1 %v2356_v4 }
 0x23c   : > { %3748 = vperm.xlu0 %6885, %v3662_v28   ;;  %6179 = vmatpush3.msra.mxu0 %v2218_v29  ;;  %v1328_v20 = vpop.permute.xlu0 %1327 }
 0x23d   : > { %6180 = vmatprep.subr.mxu0 %v2233_v30  ;;  %6344 = vmatprep.subr.mxu1 %v2355_v6 }
 0x23e   : > { %3648 = vperm.xlu1 %6886, %v3566_v31   ;;  %6181 = vmatpush3.msra.mxu0 %v2217_v32 }
 0x23f   : > { %6182 = vmatprep.subr.mxu0 %v2232_v33  ;;  %6345 = vmatpush3.msra.mxu1 %v2355_v6 }
 0x240   : > { %3843 = vperm.xlu0 %6885, %v3757_v34   ;;  %6183 = vmatpush3.msra.mxu0 %v2216_v35 }
 0x241   : > { %2313 = vmatmul.mubr.f32.vlgmr.msra.gmra.mxu0 %v6893_v38  ;;  %6372 = vmatprep.subr.mxu0 %v2567_v59  ;;  %v1451_v26 = vpop.permute.xlu0 %1450 }
 0x242   : > { %3743 = vperm.xlu1 %6886, %v3661_v36   ;;  %2317 = vmatprep.mubr.f32.mxu0 %v8185_v55  ;;  %v4152_v55 = vld [vmem:[#allocation18] sm:$0xff] }
 0x243   : > { %6373 = vmatpush3.msra.mxu0 %v2567_v59  ;;  %6346 = vmatprep.subr.mxu1 %v2354_v8 }
 0x244   : > { %3938 = vperm.xlu0 %6885, %v3852_v37   ;;  %6374 = vmatprep.subr.mxu0 %v2566_v61  ;;  %v1333_v23 = vpop.permute.xlu1 %1332 }
 0x245   : > { %2318 = vmatmul.mubr.f32.gmra.mxu0 %v8188_v58  ;;  %v4511_v58 = vld [vmem:[#allocation24] sm:$0xff]  ;;  %6347 = vmatpush3.msra.mxu1 %v2354_v8 }
 0x246   : > { %3838 = vperm.xlu1 %6886, %v3756_v39   ;;  %6375 = vmatpush3.msra.mxu0 %v2566_v61 }
 0x247   : > { %6376 = vmatprep.subr.mxu0 %v2565_v63  ;;  %6348 = vmatprep.subr.mxu1 %v2353_v10 }
 0x248   : > { %4033 = vperm.xlu0 %6885, %v3947_v40   ;;  %6377 = vmatpush3.msra.mxu0 %v2565_v63  ;;  %v1576_v31 = vpop.permute.xlu0 %1575 }
 0x249   : > { %6378 = vmatprep.subr.mxu0 %v2564_v3  ;;  %6349 = vmatpush3.msra.mxu1 %v2353_v10 }
 0x24a   : > { %3933 = vperm.xlu1 %6886, %v3851_v41   ;;  %6379 = vmatpush3.msra.mxu0 %v2564_v3  ;;  %v1456_v29 = vpop.permute.xlu1 %1455 }
 0x24b   : > { %6380 = vmatprep.subr.mxu0 %v2563_v5  ;;  %6353 = vmatprep.subr.mxu1 %v8222_v12 }
 0x24c   : > { %4128 = vperm.xlu0 %6885, %v4042_v42   ;;  %6381 = vmatpush3.msra.mxu0 %v2563_v5 }
 0x24d   : > { %6382 = vmatprep.subr.mxu0 %v2562_v7 }
 0x24e   : > { %4028 = vperm.xlu1 %6886, %v3946_v43   ;;  %6383 = vmatpush3.msra.mxu0 %v2562_v7 }
 0x24f   : > { %6384 = vmatprep.subr.mxu0 %v2561_v9  ;;  %v1701_v36 = vpop.permute.xlu0 %1700 }
 0x250   : > { %4144 = vperm.xlu0 %6885, %v4136_v44   ;;  %6385 = vmatpush3.msra.mxu0 %v2561_v9  ;;  %v1581_v35 = vpop.permute.xlu1 %1580 }
 0x251   : > { %6386 = vmatprep.subr.mxu0 %v2560_v11 }
 0x252   : > { %4123 = vperm.xlu1 %6886, %v4041_v45   ;;  %6387 = vmatpush3.msra.mxu0 %v2560_v11 }
 0x253   : > { %6410 = vmatprep.subr.mxu0 %v8224_v13 }
 0x254   : > { %4167 = vperm.xlu0 %6885, %v4154_v46   ;;  %v1826_v42 = vpop.permute.xlu0 %1825 }
 0x255   : > { %v1706_v40 = vpop.permute.xlu1 %1705 }
 0x256   : > { %4139 = vperm.xlu1 %6886, %v4135_v47  }
 0x258   : > { %4157 = vperm.xlu0 %6885, %v4152_v55  }
 0x25a   : > { %4162 = vperm.xlu1 %6886, %v4153_v48   ;;  %v1831_v47 = vpop.permute.xlu1 %1830 }
 0x25c   : > { %4515 = vperm.xlu0 %6885, %v4511_v58  }
 0x25e   : > { %4433 = vperm.xlu1 %6886, %v4430_v49  }
 0x25f   : > { %v1956_v59 = vpop.permute.xlu1 %1955 }
 0x260   : > { %4718 = vperm.xlu0 %6885, %v4710_v50  }
 0x262   : > { %4520 = vperm.xlu1 %6886, %v4512_v51   ;;  %v5880_v14 = vpop.f32.mrf.mxu0 }
 0x263   : > { %v5918_v17 = vpop.f32.mrf.mxu1 }
 0x264   : > { %4963 = vperm.xlu0 %6885, %v4960_v52   ;;  %v5881_v15 = vpop.f32.mrf.mxu0 }
 0x265   : > { %v5919_v19 = vpop.f32.mrf.mxu1  ;;  %v5882_v44 = vadd.f32 %v5881_v15, %v5880_v14 }
 0x266   : > { %4713 = vperm.xlu1 %6886, %v4709_v53   ;;  %v5920_v45 = vadd.f32 %v5919_v19, %v5918_v17  ;;  %v1951_v53 = vpop.permute.xlu0 %1950 }
 0x267   : > { %v1335_v49 = vmul.f32 %v5882_v44, %v1328_v20 }
 0x268   : > { %5125 = vperm.xlu0 %6885, %v5121_v54   ;;  %v1458_v50 = vmul.f32 %v5920_v45, %v1451_v26 }
 0x26a   : > { %5130 = vperm.xlu1 %6886, %v5122_v56   ;;  %v1460_v60 = vadd.f32 %v1458_v50, %v1335_v49  ;;  %v2076_v7 = vpop.permute.xlu0 %2075 }
 0x26c   : > { %5403 = vperm.xlu0 %6885, %v5395_v0  }
 0x26e   : > { %5398 = vperm.xlu1 %6886, %v5394_v57   ;;  %v2201_v26 = vpop.permute.xlu0 %2200 }
 0x27f   : > { %v5883_v16 = vpop.f32.mrf.mxu0 }
 0x280   : > { %v5921_v21 = vpop.f32.mrf.mxu1 }
 0x281   : > { %v5884_v18 = vpop.f32.mrf.mxu0 }
 0x282   : > { %v5922_v24 = vpop.f32.mrf.mxu1  ;;  %v5885_v51 = vadd.f32 %v5884_v18, %v5883_v16  ;;  %v2081_v16 = vpop.permute.xlu1 %2080 }
 0x283   : > { %v5923_v52 = vadd.f32 %v5922_v24, %v5921_v21 }
 0x284   : > { %v1336_v61 = vmul.f32 %v5885_v51, %v1333_v23 }
 0x285   : > { %v1459_v62 = vmul.f32 %v5923_v52, %v1456_v29 }
 0x287   : > { %v5956_v22 = vpop.f32.mrf.mxu0  ;;  %v1461_v9 = vadd.f32 %v1459_v62, %v1336_v61  ;;  %v2768_v61 = vld [vmem:[#allocation4 + $0x130] sm:$0xff]  ;;  %v2464_v62 = vld [vmem:[#allocation4 + $0x68] sm:$0xff] }
 0x289   : > { %v5957_v25 = vpop.f32.mrf.mxu0  ;;  %v5994_v27 = vpop.f32.mrf.mxu1 }
 0x28a   : > { %v5958_v55 = vadd.f32 %v5957_v25, %v5956_v22 }
 0x28b   : > { %v5995_v30 = vpop.f32.mrf.mxu1 }
 0x28c   : > { %v1583_v54 = vmul.f32 %v5958_v55, %v1576_v31  ;;  %v5996_v56 = vadd.f32 %v5995_v30, %v5994_v27 }
 0x28e   : > { %v5959_v28 = vpop.f32.mrf.mxu0  ;;  %v1585_v3 = vadd.f32 %v1583_v54, %v1460_v60  ;;  %v1708_v4 = vmul.f32 %v5996_v56, %v1701_v36  ;;  %v2465_v60 = vld [vmem:[#allocation4 + $0x70] sm:$0xff] }
 0x290   : > { %v5960_v32 = vpop.f32.mrf.mxu0  ;;  %v1710_v17 = vadd.f32 %v1708_v4, %v1585_v3  ;;  %v2766_v3 = vld [vmem:[#allocation4 + $0x120] sm:$0xff]  ;;  %v2461_v4 = vld [vmem:[#allocation4 + $0x50] sm:$0xff] }
 0x291   : > { %v5961_v0 = vadd.f32 %v5960_v32, %v5959_v28  ;;  %v2206_v32 = vpop.permute.xlu1 %2205 }
 0x292   : > { %v5997_v33 = vpop.f32.mrf.mxu1 }
 0x293   : > { %v1584_v5 = vmul.f32 %v5961_v0, %v1581_v35 }
 0x294   : > { %v5998_v37 = vpop.f32.mrf.mxu1 }
 0x295   : > { %v5999_v6 = vadd.f32 %v5998_v37, %v5997_v33  ;;  %v1586_v18 = vadd.f32 %v1584_v5, %v1461_v9  ;;  %v2764_v5 = vld [vmem:[#allocation4 + $0x110] sm:$0xff]  ;;  %v2762_v9 = vld [vmem:[#allocation4 + $0x100] sm:$0xff] }
 0x297   : > { %v1709_v19 = vmul.f32 %v5999_v6, %v1706_v40  ;;  %v2460_v6 = vld [vmem:[#allocation4 + $0x48] sm:$0xff] }
 0x299   : > { %v1711_v28 = vadd.f32 %v1709_v19, %v1586_v18  ;;  %v2665_v18 = vld [vmem:[#allocation4 + $0xe0] sm:$0xff] }
 0x29a   : > { %v2968_v19 = vld [vmem:[#allocation4 + $0x1a0] sm:$0xff] }
 0x2b3   : > { %v6032_v34 = vpop.f32.mrf.mxu0 }
 0x2b5   : > { %v6033_v38 = vpop.f32.mrf.mxu0  ;;  %v6070_v39 = vpop.f32.mrf.mxu1 }
 0x2b6   : > { %v6034_v63 = vadd.f32 %v6033_v38, %v6032_v34 }
 0x2b7   : > { %v6071_v43 = vpop.f32.mrf.mxu1 }
 0x2b8   : > { %v1833_v10 = vmul.f32 %v6034_v63, %v1826_v42  ;;  %v6072_v11 = vadd.f32 %v6071_v43, %v6070_v39  ;;  %v2767_v63 = vld [vmem:[#allocation4 + $0x128] sm:$0xff] }
 0x2ba   : > { %v6035_v41 = vpop.f32.mrf.mxu0  ;;  %v1835_v22 = vadd.f32 %v1833_v10, %v1710_v17  ;;  %v1958_v23 = vmul.f32 %v6072_v11, %v1951_v53  ;;  %v2668_v10 = vld [vmem:[#allocation4 + $0xf8] sm:$0xff]  ;;  %v2969_v17 = vld [vmem:[#allocation4 + $0x1a8] sm:$0xff] }
 0x2bb   : > { %v2971_v11 = vld [vmem:[#allocation4 + $0x1b8] sm:$0xff] }
 0x2bc   : > { %v6036_v46 = vpop.f32.mrf.mxu0  ;;  %v1960_v33 = vadd.f32 %v1958_v23, %v1835_v22  ;;  %v2663_v22 = vld [vmem:[#allocation4 + $0xd0] sm:$0xff] }
 0x2bd   : > { %v6037_v14 = vadd.f32 %v6036_v46, %v6035_v41  ;;  %v2326_v41 = vpop.permute.xlu0 %2325  ;;  %v2966_v23 = vld [vmem:[#allocation4 + $0x190] sm:$0xff] }
 0x2be   : > { %v6073_v48 = vpop.f32.mrf.mxu1 }
 0x2bf   : > { %v1834_v24 = vmul.f32 %v6037_v14, %v1831_v47  ;;  %v2667_v14 = vld [vmem:[#allocation4 + $0xf0] sm:$0xff] }
 0x2c0   : > { %v6074_v57 = vpop.f32.mrf.mxu1 }
 0x2c1   : > { %v6075_v25 = vadd.f32 %v6074_v57, %v6073_v48  ;;  %v1836_v34 = vadd.f32 %v1834_v24, %v1711_v28  ;;  %v2342_v53 = vpop.permute.xlu0 %2341  ;;  %v2662_v24 = vld [vmem:[#allocation4 + $0xc8] sm:$0xff]  ;;  %v2870_v28 = vld [vmem:[#allocation4 + $0x178] sm:$0xff] }
 0x2c3   : > { %v1959_v35 = vmul.f32 %v6075_v25, %v1956_v59  ;;  %v2965_v25 = vld [vmem:[#allocation4 + $0x188] sm:$0xff] }
 0x2c5   : > { %v1961_v43 = vadd.f32 %v1959_v35, %v1836_v34  ;;  %v2867_v34 = vld [vmem:[#allocation4 + $0x160] sm:$0xff] }
 0x2c6   : > { %v3170_v35 = vld [vmem:[#allocation4 + $0x220] sm:$0xff] }
 0x2df   : > { %v6108_v58 = vpop.f32.mrf.mxu0 }
 0x2e0   : > { %v6146_v1 = vpop.f32.mrf.mxu1 }
 0x2e1   : > { %v6109_v2 = vpop.f32.mrf.mxu0 }
 0x2e2   : > { %v6147_v15 = vpop.f32.mrf.mxu1  ;;  %v6110_v20 = vadd.f32 %v6109_v2, %v6108_v58  ;;  %v2331_v58 = vpop.permute.xlu1 %2330 }
 0x2e3   : > { %v6148_v30 = vadd.f32 %v6147_v15, %v6146_v1  ;;  %v2463_v1 = vld [vmem:[#allocation4 + $0x60] sm:$0xff]  ;;  %v2970_v15 = vld [vmem:[#allocation4 + $0x1b0] sm:$0xff] }
 0x2e4   : > { %v6111_v8 = vpop.f32.mrf.mxu0  ;;  %v2083_v29 = vmul.f32 %v6110_v20, %v2076_v7  ;;  %v2763_v7 = vld [vmem:[#allocation4 + $0x108] sm:$0xff]  ;;  %v2664_v20 = vld [vmem:[#allocation4 + $0xd8] sm:$0xff] }
 0x2e5   : > { %v6149_v27 = vpop.f32.mrf.mxu1  ;;  %v2208_v39 = vmul.f32 %v6148_v30, %v2201_v26  ;;  %v2661_v26 = vld [vmem:[#allocation4 + $0xc0] sm:$0xff]  ;;  %v2869_v30 = vld [vmem:[#allocation4 + $0x170] sm:$0xff] }
 0x2e6   : > { %v6112_v21 = vpop.f32.mrf.mxu0  ;;  %v2085_v38 = vadd.f32 %v2083_v29, %v1960_v33  ;;  %v2347_v2 = vpop.permute.xlu1 %2346  ;;  %v3173_v29 = vld [vmem:[#allocation4 + $0x238] sm:$0xff]  ;;  %v3171_v33 = vld [vmem:[#allocation4 + $0x228] sm:$0xff] }
 0x2e7   : > { %v6113_v31 = vadd.f32 %v6112_v21, %v6111_v8  ;;  %v6150_v36 = vpop.f32.mrf.mxu1  ;;  %v2459_v8 = vld [vmem:[#allocation4 + $0x40] sm:$0xff]  ;;  %v2967_v21 = vld [vmem:[#allocation4 + $0x198] sm:$0xff] }
 0x2e8   : > { %v6151_v44 = vadd.f32 %v6150_v36, %v6149_v27  ;;  %v2210_v47 = vadd.f32 %v2208_v39, %v2085_v38  ;;  %v2964_v27 = vld [vmem:[#allocation4 + $0x180] sm:$0xff]  ;;  %v2866_v36 = vld [vmem:[#allocation4 + $0x158] sm:$0xff]  ;;  %v2865_v38 = vld [vmem:[#allocation4 + $0x150] sm:$0xff] }
 0x2e9   : > { %v2084_v40 = vmul.f32 %v6113_v31, %v2081_v16  ;;  %v2666_v16 = vld [vmem:[#allocation4 + $0xe8] sm:$0xff]  ;;  %v3172_v31 = vld [vmem:[#allocation4 + $0x230] sm:$0xff] }
 0x2ea   : > { %v2209_v50 = vmul.f32 %v6151_v44, %v2206_v32  ;;  %v2868_v32 = vld [vmem:[#allocation4 + $0x168] sm:$0xff]  ;;  %v3168_v39 = vld [vmem:[#allocation4 + $0x210] sm:$0xff]  ;;  %v3072_v44 = vld [vmem:[#allocation4 + $0x1f8] sm:$0xff] }
 0x2eb   : > { %v2086_v55 = vadd.f32 %v2084_v40, %v1961_v43  ;;  %v2864_v40 = vld [vmem:[#allocation4 + $0x148] sm:$0xff]  ;;  %v3166_v43 = vld [vmem:[#allocation4 + $0x200] sm:$0xff] }
 0x2ed   : > { %v2211_v54 = vadd.f32 %v2209_v50, %v2086_v55  ;;  %v3068_v55 = vld [vmem:[#allocation4 + $0x1d8] sm:$0xff]  ;;  %v3280_v50 = vld [vmem:[#allocation6 + $0x8] sm:$0xff] }
 0x301   : > { %v6184_v37 = vpop.f32.mrf.mxu0 }
 0x303   : > { %v6185_v42 = vpop.f32.mrf.mxu0 }
 0x304   : > { %v6186_v45 = vadd.f32 %v6185_v42, %v6184_v37  ;;  %v3169_v37 = vld [vmem:[#allocation4 + $0x218] sm:$0xff]  ;;  %v2863_v42 = vld [vmem:[#allocation4 + $0x140] sm:$0xff] }
 0x305   : > { %v6187_v46 = vpop.f32.mrf.mxu0 }
 0x306   : > { %v2333_v48 = vmul.f32 %v6186_v45, %v2326_v41  ;;  %v3167_v41 = vld [vmem:[#allocation4 + $0x208] sm:$0xff]  ;;  %v3071_v45 = vld [vmem:[#allocation4 + $0x1f0] sm:$0xff] }
 0x307   : > { %v6188_v49 = vpop.f32.mrf.mxu0 }
 0x308   : > { %v2335_v51 = vadd.f32 %v2333_v48, %v2210_v47  ;;  %v6189_v52 = vadd.f32 %v6188_v49, %v6187_v46  ;;  %v3070_v46 = vld [vmem:[#allocation4 + $0x1e8] sm:$0xff]  ;;  %v3069_v47 = vld [vmem:[#allocation4 + $0x1e0] sm:$0xff]  ;;  %v3067_v48 = vld [vmem:[#allocation4 + $0x1d0] sm:$0xff] }
 0x309   : > { %v3065_v49 = vld [vmem:[#allocation4 + $0x1c0] sm:$0xff] }
 0x30a   : > { %v8228_v56 = vadd.f32 %v2342_v53, %v2335_v51  ;;  %v2334_v0 = vmul.f32 %v6189_v52, %v2331_v58  ;;  %v3066_v58 = vld [vmem:[#allocation4 + $0x1c8] sm:$0xff]  ;;  %v3279_v52 = vld [vmem:[#allocation6] sm:$0xff] }
 0x30b   : > { %v3855_v51 = vld [vmem:[#allocation6 + $0x68] sm:$0xff]  ;;  %v3854_v53 = vld [vmem:[#allocation6 + $0x60] sm:$0xff] }
 0x30c   : > { %v2336_v57 = vadd.f32 %v2334_v0, %v2211_v54  ;;  %6350 = vmatprep.mubr.msk.f32.mxu1 %vm2361_vm0, %v8228_v56  ;;  %6388 = vmatprep.mubr.msk.f32.mxu0 %vm2361_vm0, %v8228_v56  ;;  %v8270_v54 = vld [vmem:[#allocation6 + $0x18] sm:$0xff]  ;;  %v2446_v0 = vpop.permute.xlu0 %2445 }
 0x30e   : > { %v8234_v59 = vadd.f32 %v2347_v2, %v2336_v57  ;;  %v2545_v57 = vpop.permute.xlu1 %2544 }
 0x310   : > { %6351 = vmatmul.mubr.msk.f32.vlgmr.msra.gmra.mxu1 %vm2361_vm0, %v8234_v59  ;;  %6389 = vmatmul.mubr.msk.f32.vlgmr.msra.gmra.mxu0 %vm2361_vm0, %v8234_v59  ;;  %v2451_v2 = vpop.permute.xlu0 %2450 }
 0x311   : > { %6354 = vmatpush3.msra.mxu1 %v8222_v12  ;;  %6411 = vmatpush3.msra.mxu0 %v8224_v13  ;;  %v2462_v12 = vld [vmem:[#allocation4 + $0x58] sm:$0xff] }
 0x312   : > { %6355 = vmatprep.subr.mxu1 %v2465_v60  ;;  %6369 = vmatprep.mubr.msk.f32.mxu1 %vm2361_vm0, %v8228_v56  ;;  %v2765_v13 = vld [vmem:[#allocation4 + $0x118] sm:$0xff] }
 0x313   : > { %6412 = vmatprep.subr.mxu0 %v2768_v61  ;;  %6426 = vmatprep.mubr.msk.f32.mxu0 %vm2361_vm0, %v8228_v56 }
 0x314   : > { %6356 = vmatpush3.msra.mxu1 %v2465_v60  ;;  %6413 = vmatpush3.msra.mxu0 %v2768_v61  ;;  %v2646_v60 = vpop.permute.xlu0 %2645 }
 0x315   : > { %6357 = vmatprep.subr.mxu1 %v2464_v62  ;;  %6414 = vmatprep.subr.mxu0 %v2767_v63 }
 0x316   : > { %6358 = vmatpush3.msra.mxu1 %v2464_v62  ;;  %6415 = vmatpush3.msra.mxu0 %v2767_v63 }
 0x317   : > { %6359 = vmatprep.subr.mxu1 %v2463_v1  ;;  %6416 = vmatprep.subr.mxu0 %v2766_v3 }
 0x318   : > { %6360 = vmatpush3.msra.mxu1 %v2463_v1  ;;  %6417 = vmatpush3.msra.mxu0 %v2766_v3  ;;  %v2747_v63 = vpop.permute.xlu0 %2746 }
 0x319   : > { %6361 = vmatprep.subr.mxu1 %v2462_v12  ;;  %6418 = vmatprep.subr.mxu0 %v2765_v13 }
 0x31a   : > { %6362 = vmatpush3.msra.mxu1 %v2462_v12  ;;  %6419 = vmatpush3.msra.mxu0 %v2765_v13 }
 0x31b   : > { %6363 = vmatprep.subr.mxu1 %v2461_v4  ;;  %6420 = vmatprep.subr.mxu0 %v2764_v5 }
 0x31c   : > { %6364 = vmatpush3.msra.mxu1 %v2461_v4  ;;  %6421 = vmatpush3.msra.mxu0 %v2764_v5  ;;  %v2848_v13 = vpop.permute.xlu0 %2847 }
 0x31d   : > { %6365 = vmatprep.subr.mxu1 %v2460_v6  ;;  %6422 = vmatprep.subr.mxu0 %v2763_v7 }
 0x31e   : > { %6366 = vmatpush3.msra.mxu1 %v2460_v6  ;;  %6423 = vmatpush3.msra.mxu0 %v2763_v7 }
 0x31f   : > { %6367 = vmatprep.subr.mxu1 %v2459_v8  ;;  %6424 = vmatprep.subr.mxu0 %v2762_v9 }
 0x320   : > { %6368 = vmatpush3.msra.mxu1 %v2459_v8  ;;  %6425 = vmatpush3.msra.mxu0 %v2762_v9  ;;  %v2949_v9 = vpop.permute.xlu0 %2948 }
 0x321   : > { %6370 = vmatmul.mubr.msk.f32.vlgmr.msra.gmra.mxu1 %vm2361_vm0, %v8234_v59  ;;  %6391 = vmatprep.subr.mxu1 %v2668_v10 }
 0x322   : > { %6427 = vmatmul.mubr.msk.f32.vlgmr.msra.gmra.mxu0 %vm2361_vm0, %v8234_v59  ;;  %6448 = vmatprep.subr.mxu0 %v2971_v11 }
 0x323   : > { %6392 = vmatpush3.msra.mxu1 %v2668_v10  ;;  %6407 = vmatprep.mubr.msk.f32.mxu1 %vm2361_vm0, %v8228_v56 }
 0x324   : > { %6449 = vmatpush3.msra.mxu0 %v2971_v11  ;;  %6464 = vmatprep.mubr.msk.f32.mxu0 %vm2361_vm0, %v8228_v56 }
 0x325   : > { %6393 = vmatprep.subr.mxu1 %v2667_v14  ;;  %6450 = vmatprep.subr.mxu0 %v2970_v15 }
 0x326   : > { %6394 = vmatpush3.msra.mxu1 %v2667_v14  ;;  %6451 = vmatpush3.msra.mxu0 %v2970_v15 }
 0x327   : > { %6395 = vmatprep.subr.mxu1 %v2666_v16  ;;  %6452 = vmatprep.subr.mxu0 %v2969_v17 }
 0x328   : > { %6396 = vmatpush3.msra.mxu1 %v2666_v16  ;;  %6453 = vmatpush3.msra.mxu0 %v2969_v17 }
 0x329   : > { %6397 = vmatprep.subr.mxu1 %v2665_v18  ;;  %6454 = vmatprep.subr.mxu0 %v2968_v19 }
 0x32a   : > { %6398 = vmatpush3.msra.mxu1 %v2665_v18  ;;  %6455 = vmatpush3.msra.mxu0 %v2968_v19 }
 0x32b   : > { %6399 = vmatprep.subr.mxu1 %v2664_v20  ;;  %6456 = vmatprep.subr.mxu0 %v2967_v21 }
 0x32c   : > { %6400 = vmatpush3.msra.mxu1 %v2664_v20  ;;  %6457 = vmatpush3.msra.mxu0 %v2967_v21 }
 0x32d   : > { %6401 = vmatprep.subr.mxu1 %v2663_v22  ;;  %6458 = vmatprep.subr.mxu0 %v2966_v23 }
 0x32e   : > { %6402 = vmatpush3.msra.mxu1 %v2663_v22  ;;  %6459 = vmatpush3.msra.mxu0 %v2966_v23 }
 0x32f   : > { %6403 = vmatprep.subr.mxu1 %v2662_v24  ;;  %6460 = vmatprep.subr.mxu0 %v2965_v25 }
 0x330   : > { %6404 = vmatpush3.msra.mxu1 %v2662_v24  ;;  %6461 = vmatpush3.msra.mxu0 %v2965_v25  ;;  %v3050_v24 = vpop.permute.xlu0 %3049 }
 0x331   : > { %6405 = vmatprep.subr.mxu1 %v2661_v26  ;;  %6462 = vmatprep.subr.mxu0 %v2964_v27 }
 0x332   : > { %6406 = vmatpush3.msra.mxu1 %v2661_v26  ;;  %6463 = vmatpush3.msra.mxu0 %v2964_v27 }
 0x333   : > { %6408 = vmatmul.mubr.msk.f32.vlgmr.msra.gmra.mxu1 %vm2361_vm0, %v8234_v59  ;;  %6429 = vmatprep.subr.mxu1 %v2870_v28 }
 0x334   : > { %6465 = vmatmul.mubr.msk.f32.vlgmr.msra.gmra.mxu0 %vm2361_vm0, %v8234_v59  ;;  %6486 = vmatprep.subr.mxu0 %v3173_v29 }
 0x335   : > { %6430 = vmatpush3.msra.mxu1 %v2870_v28  ;;  %6445 = vmatprep.mubr.msk.f32.mxu1 %vm2361_vm0, %v8228_v56 }
 0x336   : > { %6487 = vmatpush3.msra.mxu0 %v3173_v29  ;;  %6502 = vmatprep.mubr.msk.f32.mxu0 %vm2361_vm0, %v8228_v56 }
 0x337   : > { %6431 = vmatprep.subr.mxu1 %v2869_v30  ;;  %6488 = vmatprep.subr.mxu0 %v3172_v31 }
 0x338   : > { %6432 = vmatpush3.msra.mxu1 %v2869_v30  ;;  %6489 = vmatpush3.msra.mxu0 %v3172_v31 }
 0x339   : > { %6433 = vmatprep.subr.mxu1 %v2868_v32  ;;  %6490 = vmatprep.subr.mxu0 %v3171_v33 }
 0x33a   : > { %6434 = vmatpush3.msra.mxu1 %v2868_v32  ;;  %6491 = vmatpush3.msra.mxu0 %v3171_v33 }
 0x33b   : > { %6435 = vmatprep.subr.mxu1 %v2867_v34  ;;  %6492 = vmatprep.subr.mxu0 %v3170_v35 }
 0x33c   : > { %6436 = vmatpush3.msra.mxu1 %v2867_v34  ;;  %6493 = vmatpush3.msra.mxu0 %v3170_v35 }
 0x33d   : > { %6437 = vmatprep.subr.mxu1 %v2866_v36  ;;  %6494 = vmatprep.subr.mxu0 %v3169_v37 }
 0x33e   : > { %6438 = vmatpush3.msra.mxu1 %v2866_v36  ;;  %6495 = vmatpush3.msra.mxu0 %v3169_v37  ;;  %v3151_v37 = vpop.permute.xlu0 %3150 }
 0x33f   : > { %6439 = vmatprep.subr.mxu1 %v2865_v38  ;;  %6496 = vmatprep.subr.mxu0 %v3168_v39 }
 0x340   : > { %6440 = vmatpush3.msra.mxu1 %v2865_v38  ;;  %6497 = vmatpush3.msra.mxu0 %v3168_v39 }
 0x341   : > { %6441 = vmatprep.subr.mxu1 %v2864_v40  ;;  %6498 = vmatprep.subr.mxu0 %v3167_v41 }
 0x342   : > { %6442 = vmatpush3.msra.mxu1 %v2864_v40  ;;  %6499 = vmatpush3.msra.mxu0 %v3167_v41 }
 0x343   : > { %6443 = vmatprep.subr.mxu1 %v2863_v42  ;;  %6500 = vmatprep.subr.mxu0 %v3166_v43 }
 0x344   : > { %6444 = vmatpush3.msra.mxu1 %v2863_v42  ;;  %6501 = vmatpush3.msra.mxu0 %v3166_v43 }
 0x345   : > { %6446 = vmatmul.mubr.msk.f32.vlgmr.msra.gmra.mxu1 %vm2361_vm0, %v8234_v59  ;;  %6467 = vmatprep.subr.mxu1 %v3072_v44 }
 0x346   : > { %6503 = vmatmul.mubr.msk.f32.vlgmr.msra.gmra.mxu0 %vm2361_vm0, %v8234_v59  ;;  %6468 = vmatpush3.msra.mxu1 %v3072_v44 }
 0x347   : > { %6483 = vmatprep.mubr.msk.f32.mxu1 %vm2361_vm0, %v8228_v56  ;;  %6469 = vmatprep.subr.mxu1 %v3071_v45  ;;  %v8272_v56 = vld [vmem:[#allocation6 + $0x88] sm:$0xff] }
 0x348   : > { %6470 = vmatpush3.msra.mxu1 %v3071_v45  ;;  %6547 = vmatprep.subr.mxu0 %v3855_v51 }
 0x349   : > { %6471 = vmatprep.subr.mxu1 %v3070_v46  ;;  %6548 = vmatpush3.msra.mxu0 %v3855_v51 }
 0x34a   : > { %6472 = vmatpush3.msra.mxu1 %v3070_v46  ;;  %6549 = vmatprep.subr.mxu0 %v3854_v53 }
 0x34b   : > { %6473 = vmatprep.subr.mxu1 %v3069_v47  ;;  %6550 = vmatpush3.msra.mxu0 %v3854_v53 }
 0x34c   : > { %6474 = vmatpush3.msra.mxu1 %v3069_v47  ;;  %6561 = vmatprep.subr.mxu0 %v8272_v56 }
 0x34d   : > { %6475 = vmatprep.subr.mxu1 %v3068_v55 }
 0x34e   : > { %6476 = vmatpush3.msra.mxu1 %v3068_v55 }
 0x34f   : > { %6477 = vmatprep.subr.mxu1 %v3067_v48 }
 0x350   : > { %6478 = vmatpush3.msra.mxu1 %v3067_v48  ;;  %v3252_v48 = vpop.permute.xlu0 %3251 }
 0x351   : > { %6479 = vmatprep.subr.mxu1 %v3066_v58 }
 0x352   : > { %6480 = vmatpush3.msra.mxu1 %v3066_v58 }
 0x353   : > { %6481 = vmatprep.subr.mxu1 %v3065_v49 }
 0x354   : > { %6482 = vmatpush3.msra.mxu1 %v3065_v49 }
 0x355   : > { %6484 = vmatmul.mubr.msk.f32.vlgmr.msra.gmra.mxu1 %vm2361_vm0, %v8234_v59  ;;  %6505 = vmatprep.subr.mxu1 %v3280_v50  ;;  %v2550_v59 = vpop.permute.xlu1 %2549 }
 0x356   : > { %6506 = vmatpush3.msra.mxu1 %v3280_v50 }
 0x357   : > { %6507 = vmatprep.subr.mxu1 %v3279_v52 }
 0x358   : > { %6508 = vmatpush3.msra.mxu1 %v3279_v52 }
 0x359   : > { %6512 = vmatprep.subr.mxu1 %v8270_v54  ;;  %v2651_v61 = vpop.permute.xlu1 %2650 }
 0x35d   : > { %v2752_v1 = vpop.permute.xlu1 %2751 }
 0x361   : > { %v2853_v4 = vpop.permute.xlu1 %2852 }
 0x365   : > { %v2954_v15 = vpop.permute.xlu1 %2953 }
 0x369   : > { %v3055_v29 = vpop.permute.xlu1 %3054 }
 0x36d   : > { %v3156_v42 = vpop.permute.xlu1 %3155 }
 0x371   : > { %v3257_v53 = vpop.permute.xlu1 %3256 }
 0x3d0   : > { %v6352_v62 = vpop.f32.mrf.mxu1  ;;  %v6390_v5 = vpop.f32.mrf.mxu0 }
 0x3d1   : > { %v2454_v10 = vmul.f32 %v6352_v62, %v2451_v2  ;;  %v2654_v20 = vmul.f32 %v6390_v5, %v2651_v61  ;;  %v4044_v5 = vld [vmem:[#allocation6 + $0x80] sm:$0xff] }
 0x3d2   : > { %v2434_v3 = vpop.f32.mrf.mxu1  ;;  %v2634_v14 = vpop.f32.mrf.mxu0 }
 0x3d3   : > { %v2453_v16 = vmul.f32 %v2446_v0, %v2434_v3  ;;  %v2653_v25 = vmul.f32 %v2646_v60, %v2634_v14  ;;  %v3273_v3 = vpop.permute.xlu1 %3272  ;;  %v3950_v14 = vld [vmem:[#allocation6 + $0x78] sm:$0xff] }
 0x3e1   : > { %v6371_v12 = vpop.f32.mrf.mxu1 }
 0x3e2   : > { %v2553_v7 = vmul.f32 %v6371_v12, %v2550_v59  ;;  %v6428_v18 = vpop.f32.mrf.mxu0 }
 0x3e3   : > { %v2533_v6 = vpop.f32.mrf.mxu1  ;;  %v2856_v34 = vmul.f32 %v6428_v18, %v2853_v4  ;;  %v3379_v4 = vld [vmem:[#allocation6 + $0x10] sm:$0xff]  ;;  %v3464_v18 = vpop.permute.xlu1 %3463 }
 0x3e4   : > { %v2552_v11 = vmul.f32 %v2545_v57, %v2533_v6  ;;  %v2555_v17 = vadd.f32 %v2553_v7, %v2454_v10  ;;  %v2836_v28 = vpop.f32.mrf.mxu0  ;;  %v3475_v6 = vld [vmem:[#allocation6 + $0x28] sm:$0xff]  ;;  %v3474_v7 = vld [vmem:[#allocation6 + $0x20] sm:$0xff]  ;;  %v3760_v10 = vld [vmem:[#allocation6 + $0x58] sm:$0xff] }
 0x3e5   : > { %v2855_v38 = vmul.f32 %v2848_v13, %v2836_v28 }
 0x3e6   : > { %v2554_v21 = vadd.f32 %v2552_v11, %v2453_v16  ;;  %v2656_v26 = vadd.f32 %v2654_v20, %v2555_v17  ;;  %v3759_v11 = vld [vmem:[#allocation6 + $0x50] sm:$0xff]  ;;  %v7667_v16 = vmov 0.0  }
 0x3e7   : > { %v3459_v20 = vpop.permute.xlu1 %3458 }
 0x3e8   : > { %v2655_v31 = vadd.f32 %v2653_v25, %v2554_v21 }
 0x3f3   : > { %v6409_v8 = vpop.f32.mrf.mxu1 }
 0x3f4   : > { %v2755_v22 = vmul.f32 %v6409_v8, %v2752_v1  ;;  %v6466_v32 = vpop.f32.mrf.mxu0  ;;  %v3268_v1 = vpop.permute.xlu0 %3267  ;;  %v3570_v8 = vld [vmem:[#allocation6 + $0x38] sm:$0xff] }
 0x3f5   : > { %v2735_v19 = vpop.f32.mrf.mxu1  ;;  %v3058_v46 = vmul.f32 %v6466_v32, %v3055_v29 }
 0x3f6   : > { %v2754_v27 = vmul.f32 %v2747_v63, %v2735_v19  ;;  %v2757_v30 = vadd.f32 %v2755_v22, %v2656_v26  ;;  %v3038_v41 = vpop.f32.mrf.mxu0  ;;  %v3554_v22 = vpop.permute.xlu1 %3553 }
 0x3f7   : > { %v3057_v58 = vmul.f32 %v3050_v24, %v3038_v41 }
 0x3f8   : > { %v2756_v35 = vadd.f32 %v2754_v27, %v2655_v31  ;;  %v2858_v39 = vadd.f32 %v2856_v34, %v2757_v30  ;;  %v3371_v17 = vpop.permute.xlu0 %3370 }
 0x3fa   : > { %v2857_v44 = vadd.f32 %v2855_v38, %v2756_v35  ;;  %v3649_v24 = vpop.permute.xlu1 %3648 }
 0x3fc   : > { %v3366_v19 = vpop.permute.xlu0 %3365 }
 0x3fe   : > { %v3744_v27 = vpop.permute.xlu1 %3743 }
 0x400   : > { %v3559_v21 = vpop.permute.xlu0 %3558 }
 0x402   : > { %v3839_v32 = vpop.permute.xlu1 %3838 }
 0x405   : > { %v6447_v23 = vpop.f32.mrf.mxu1 }
 0x406   : > { %v2957_v36 = vmul.f32 %v6447_v23, %v2954_v15  ;;  %v6504_v45 = vpop.f32.mrf.mxu0  ;;  %v3949_v15 = vld [vmem:[#allocation6 + $0x70] sm:$0xff]  ;;  %v3654_v23 = vpop.permute.xlu0 %3653 }
 0x407   : > { %v2937_v33 = vpop.f32.mrf.mxu1  ;;  %v3260_v59 = vmul.f32 %v6504_v45, %v3257_v53  ;;  %v3934_v38 = vpop.permute.xlu1 %3933 }
 0x408   : > { %v2956_v40 = vmul.f32 %v2949_v9, %v2937_v33  ;;  %v2959_v43 = vadd.f32 %v2957_v36, %v2858_v39  ;;  %v3240_v51 = vpop.f32.mrf.mxu0  ;;  %v3664_v9 = vld [vmem:[#allocation6 + $0x40] sm:$0xff] }
 0x409   : > { %v3259_v60 = vmul.f32 %v3252_v48, %v3240_v51 }
 0x40a   : > { %v2958_v47 = vadd.f32 %v2956_v40, %v2857_v44  ;;  %v3060_v49 = vadd.f32 %v3058_v46, %v2959_v43  ;;  %v3749_v25 = vpop.permute.xlu0 %3748 }
 0x40c   : > { %v3059_v57 = vadd.f32 %v3057_v58, %v2958_v47 }
 0x40e   : > { %v3844_v30 = vpop.permute.xlu0 %3843 }
 0x412   : > { %v3939_v35 = vpop.permute.xlu0 %3938 }
 0x415   : > { %v6485_v55 = vpop.f32.mrf.mxu1 }
 0x416   : > { %v3159_v50 = vmul.f32 %v6485_v55, %v3156_v42  ;;  %v4034_v48 = vpop.permute.xlu0 %4033 }
 0x417   : > { %v3139_v52 = vpop.f32.mrf.mxu1 }
 0x418   : > { %v3161_v0 = vadd.f32 %v3159_v50, %v3060_v49  ;;  %v3158_v2 = vmul.f32 %v3151_v37, %v3139_v52 }
 0x41a   : > { %v3160_v61 = vadd.f32 %v3158_v2, %v3059_v57  ;;  %v3262_v62 = vadd.f32 %v3260_v59, %v3161_v0  ;;  %v4029_v0 = vpop.permute.xlu1 %4028 }
 0x41c   : > { %v3261_v63 = vadd.f32 %v3259_v60, %v3160_v61  ;;  %v3276_v13 = vadd.f32 %v3273_v3, %v3262_v62 }
 0x41e   : > { %v3275_v12 = vadd.f32 %v3268_v1, %v3261_v63 }
 0x420   : > { %6509 = vmatprep.mubr.msk.f32.mxu1 %vm3281_vm1, %v3275_v12  ;;  %6551 = vmatprep.mubr.msk.f32.mxu0 %vm3281_vm1, %v3275_v12 }
 0x421   : > { %6510 = vmatmul.mubr.msk.f32.vlgmr.msra.gmra.mxu1 %vm3281_vm1, %v3276_v13  ;;  %6552 = vmatmul.mubr.msk.f32.vlgmr.msra.gmra.mxu0 %vm3281_vm1, %v3276_v13 }
 0x422   : > { %6513 = vmatpush3.msra.mxu1 %v8270_v54  ;;  %6516 = vmatprep.mubr.msk.f32.mxu1 %vm3281_vm1, %v3275_v12  ;;  %v3569_v54 = vld [vmem:[#allocation6 + $0x30] sm:$0xff] }
 0x423   : > { %6562 = vmatpush3.msra.mxu0 %v8272_v56  ;;  %6565 = vmatprep.mubr.msk.f32.mxu0 %vm3281_vm1, %v3275_v12  ;;  %v3665_v56 = vld [vmem:[#allocation6 + $0x48] sm:$0xff] }
 0x424   : > { %6514 = vmatprep.subr.mxu1 %v3379_v4  ;;  %6563 = vmatprep.subr.mxu0 %v4044_v5 }
 0x425   : > { %6515 = vmatpush3.msra.mxu1 %v3379_v4  ;;  %6564 = vmatpush3.msra.mxu0 %v4044_v5 }
 0x426   : > { %6517 = vmatmul.mubr.msk.f32.vlgmr.msra.gmra.mxu1 %vm3281_vm1, %v3276_v13  ;;  %6519 = vmatprep.subr.mxu1 %v3475_v6 }
 0x427   : > { %6566 = vmatmul.mubr.msk.f32.vlgmr.msra.gmra.mxu0 %vm3281_vm1, %v3276_v13  ;;  %6520 = vmatpush3.msra.mxu1 %v3475_v6  ;;  %v4129_v6 = vpop.permute.xlu0 %4128 }
 0x428   : > { %6523 = vmatprep.mubr.msk.f32.mxu1 %vm3281_vm1, %v3275_v12  ;;  %6521 = vmatprep.subr.mxu1 %v3474_v7 }
 0x429   : > { %6522 = vmatpush3.msra.mxu1 %v3474_v7  ;;  %6581 = vmatprep.subr.mxu0 %v7667_v16 }
 0x42a   : > { %6524 = vmatmul.mubr.msk.f32.vlgmr.msra.gmra.mxu1 %vm3281_vm1, %v3276_v13  ;;  %6526 = vmatprep.subr.mxu1 %v3570_v8 }
 0x42b   : > { %6527 = vmatpush3.msra.mxu1 %v3570_v8  ;;  %6530 = vmatprep.mubr.msk.f32.mxu1 %vm3281_vm1, %v3275_v12  ;;  %v4124_v8 = vpop.permute.xlu1 %4123 }
 0x42c   : > { %6528 = vmatprep.subr.mxu1 %v3569_v54  ;;  %6583 = vmatprep.mubr.msk.f32.mxu0 %vm7668_vm2, %v7667_v16 }
 0x42d   : > { %6529 = vmatpush3.msra.mxu1 %v3569_v54 }
 0x42e   : > { %6531 = vmatmul.mubr.msk.f32.vlgmr.msra.gmra.mxu1 %vm3281_vm1, %v3276_v13  ;;  %6533 = vmatprep.subr.mxu1 %v3665_v56 }
 0x42f   : > { %6534 = vmatpush3.msra.mxu1 %v3665_v56  ;;  %6537 = vmatprep.mubr.msk.f32.mxu1 %vm3281_vm1, %v3275_v12 }
 0x430   : > { %6535 = vmatprep.subr.mxu1 %v3664_v9 }
 0x431   : > { %6536 = vmatpush3.msra.mxu1 %v3664_v9 }
 0x432   : > { %6538 = vmatmul.mubr.msk.f32.vlgmr.msra.gmra.mxu1 %vm3281_vm1, %v3276_v13  ;;  %6540 = vmatprep.subr.mxu1 %v3760_v10 }
 0x433   : > { %6541 = vmatpush3.msra.mxu1 %v3760_v10  ;;  %6544 = vmatprep.mubr.msk.f32.mxu1 %vm3281_vm1, %v3275_v12 }
 0x434   : > { %6542 = vmatprep.subr.mxu1 %v3759_v11 }
 0x435   : > { %6543 = vmatpush3.msra.mxu1 %v3759_v11 }
 0x436   : > { %6545 = vmatmul.mubr.msk.f32.vlgmr.msra.gmra.mxu1 %vm3281_vm1, %v3276_v13  ;;  %6554 = vmatprep.subr.mxu1 %v3950_v14 }
 0x437   : > { %6555 = vmatpush3.msra.mxu1 %v3950_v14  ;;  %6558 = vmatprep.mubr.msk.f32.mxu1 %vm3281_vm1, %v3275_v12 }
 0x438   : > { %6556 = vmatprep.subr.mxu1 %v3949_v15 }
 0x439   : > { %6557 = vmatpush3.msra.mxu1 %v3949_v15 }
 0x43a   : > { %6559 = vmatmul.mubr.msk.f32.vlgmr.msra.gmra.mxu1 %vm3281_vm1, %v3276_v13  ;;  %6568 = vmatprep.subr.mxu1 %v7667_v16 }
 0x43b   : > { %6572 = vmatprep.mubr.msk.f32.mxu1 %vm7668_vm2, %v7667_v16 }
 0x4e1   : > { %v6511_v26 = vpop.f32.mrf.mxu1  ;;  %v6553_v42 = vpop.f32.mrf.mxu0 }
 0x4e2   : > { %v3374_v39 = vmul.f32 %v6511_v26, %v3371_v17  ;;  %v3942_v12 = vmul.f32 %v6553_v42, %v3939_v35  ;;  %v4140_v26 = vpop.permute.xlu1 %4139 }
 0x4e3   : > { %v3354_v28 = vpop.f32.mrf.mxu1  ;;  %v3922_v52 = vpop.f32.mrf.mxu0 }
 0x4e4   : > { %v3373_v44 = vmul.f32 %v3366_v19, %v3354_v28  ;;  %v3941_v54 = vmul.f32 %v3934_v38, %v3922_v52  ;;  %v4149_v28 = vld [vmem:[#allocation16] sm:$0xff] }
 0x4e6   : > { %v6518_v29 = vpop.f32.mrf.mxu1 }
 0x4e7   : > { %v3467_v36 = vmul.f32 %v6518_v29, %v3464_v18  ;;  %v6567_v1 = vpop.f32.mrf.mxu0  ;;  %v4150_v29 = vld [vmem:[#allocation16 + $0x8] sm:$0xff] }
 0x4e8   : > { %v3447_v31 = vpop.f32.mrf.mxu1  ;;  %v4132_v15 = vmul.f32 %v6567_v1, %v4129_v6  ;;  %v4429_v1 = vld [vmem:[#allocation19] sm:$0xff] }
 0x4e9   : > { %v3466_v40 = vmul.f32 %v3459_v20, %v3447_v31  ;;  %v3469_v45 = vadd.f32 %v3467_v36, %v3374_v39  ;;  %v4112_v11 = vpop.f32.mrf.mxu0  ;;  %v4163_v39 = vpop.permute.xlu1 %4162 }
 0x4ea   : > { %v6525_v33 = vpop.f32.mrf.mxu1  ;;  %v4131_v20 = vmul.f32 %v4124_v8, %v4112_v11  ;;  %v4510_v8 = vld [vmem:[#allocation22 + $0x8] sm:$0xff]  ;;  %v8345_v11 = vld [vmem:[%s8172_s30] sm:$0xff] }
 0x4eb   : > { %v3562_v41 = vmul.f32 %v6525_v33, %v3559_v21  ;;  %v3468_v58 = vadd.f32 %v3466_v40, %v3373_v44 }
 0x4ec   : > { %v3542_v34 = vpop.f32.mrf.mxu1 }
 0x4ed   : > { %v3561_v46 = vmul.f32 %v3554_v22, %v3542_v34  ;;  %v3564_v49 = vadd.f32 %v3562_v41, %v3469_v45 }
 0x4ee   : > { %v6532_v37 = vpop.f32.mrf.mxu1 }
 0x4ef   : > { %v3657_v47 = vmul.f32 %v6532_v37, %v3654_v23  ;;  %v3563_v57 = vadd.f32 %v3561_v46, %v3468_v58  ;;  %v4145_v23 = vpop.permute.xlu0 %4144 }
 0x4f0   : > { %v3637_v43 = vpop.f32.mrf.mxu1 }
 0x4f1   : > { %v3656_v50 = vmul.f32 %v3649_v24, %v3637_v43  ;;  %v3659_v2 = vadd.f32 %v3657_v47, %v3564_v49 }
 0x4f2   : > { %v6539_v55 = vpop.f32.mrf.mxu1 }
 0x4f3   : > { %v3752_v51 = vmul.f32 %v6539_v55, %v3749_v25  ;;  %v3658_v61 = vadd.f32 %v3656_v50, %v3563_v57  ;;  %v4168_v34 = vpop.permute.xlu0 %4167 }
 0x4f4   : > { %v3732_v53 = vpop.f32.mrf.mxu1 }
 0x4f5   : > { %v3751_v59 = vmul.f32 %v3744_v27, %v3732_v53  ;;  %v3754_v62 = vadd.f32 %v3752_v51, %v3659_v2 }
 0x4f6   : > { %v6546_v60 = vpop.f32.mrf.mxu1 }
 0x4f7   : > { %v3847_v63 = vmul.f32 %v6546_v60, %v3844_v30  ;;  %v3753_v13 = vadd.f32 %v3751_v59, %v3658_v61  ;;  %v4151_v30 = vld [vmem:[#allocation16 + $0x10] sm:$0xff]  ;;  %v4158_v40 = vpop.permute.xlu0 %4157 }
 0x4f8   : > { %v3827_v3 = vpop.f32.mrf.mxu1 }
 0x4f9   : > { %v3849_v4 = vadd.f32 %v3847_v63, %v3754_v62  ;;  %v3846_v5 = vmul.f32 %v3839_v32, %v3827_v3 }
 0x4fa   : > { %v6560_v7 = vpop.f32.mrf.mxu1 }
 0x4fb   : > { %v3848_v56 = vadd.f32 %v3846_v5, %v3753_v13  ;;  %v3944_v9 = vadd.f32 %v3942_v12, %v3849_v4  ;;  %v4037_v10 = vmul.f32 %v6560_v7, %v4034_v48  ;;  %v4509_v13 = vld [vmem:[#allocation22] sm:$0xff]  ;;  %v4434_v4 = vpop.permute.xlu1 %4433 }
 0x4fc   : > { %v4017_v14 = vpop.f32.mrf.mxu1 }
 0x4fd   : > { %v4039_v17 = vadd.f32 %v4037_v10, %v3944_v9  ;;  %v3943_v18 = vadd.f32 %v3941_v54, %v3848_v56  ;;  %v4036_v19 = vmul.f32 %v4029_v0, %v4017_v14  ;;  %v8332_v54 = vld [vmem:[%s8172_s30 + $0x18] sm:$0xff]  ;;  %v8336_v56 = vld [vmem:[%s8172_s30 + $0x10] sm:$0xff]  ;;  %v8341_v10 = vld [vmem:[%s8172_s30 + $0x8] sm:$0xff] }
 0x4fe   : > { %v4707_v9 = vld [vmem:[#allocation25] sm:$0xff]  ;;  %v4708_v14 = vld [vmem:[#allocation25 + $0x8] sm:$0xf] }
 0x4ff   : > { %v4134_v21 = vadd.f32 %v4132_v15, %v4039_v17  ;;  %v4038_v22 = vadd.f32 %v4036_v19, %v3943_v18  ;;  %v4608_v15 = vld [vmem:[%s8422_s16] sm:$0xff]  ;;  %v4874_v18 = vld [vmem:[#allocation28] sm:$0xf] }
 0x500   : > { %v4610_v17 = vcombine.high %v4608_v15, %v4608_v15 }
 0x501   : > { %v8302_v24 = vadd.f32 %v4145_v23, %v4134_v21  ;;  %v4133_v25 = vadd.f32 %v4131_v20, %v4038_v22  ;;  %v4516_v20 = vpop.permute.xlu0 %4515  ;;  %v4521_v21 = vpop.permute.xlu1 %4520 }
 0x503   : > { %v8304_v27 = vadd.f32 %v4140_v26, %v4133_v25  ;;  %6569 = vmatpush3.msra.mxu1 %v8302_v24 }
 0x504   : > { %6570 = vmatprep.subr.mxu1 %v7667_v16 }
 0x505   : > { %6571 = vmatpush3.msra.mxu1 %v8304_v27 }
 0x506   : > { %6573 = vmatmul.mubr.msk.f32.vlgmr.msra.gmra.mxu1 %vm3281_vm1, %v4149_v28 }
 0x507   : > { %6575 = vmatprep.mubr.msk.f32.mxu1 %vm7668_vm2, %v7667_v16 }
 0x50a   : > { %6576 = vmatmul.mubr.msk.f32.gmra.mxu1 %vm3281_vm1, %v4150_v29 }
 0x50b   : > { %6578 = vmatprep.mubr.msk.f32.mxu1 %vm7668_vm2, %v7667_v16 }
 0x50e   : > { %6579 = vmatmul.mubr.msk.f32.gmra.mxu1 %vm3281_vm1, %v4151_v30 }
 0x50f   : > { %6598 = vmatprep.mubr.msk.f32.mxu1 %vm4336_vm4, %v4509_v13  ;;  %v5224_v13 = vld [vmem:[#allocation37] sm:$0xff] }
 0x5c6   : > { %v4245_v31 = vpop.f32.mrf.mxu1 }
 0x5c7   : > { %v4246_v42 = vadd.f32 %v4245_v31, %v4158_v40 }
 0x5c8   : > { %v6574_v32 = vpop.f32.mrf.mxu1 }
 0x5ca   : > { %v4250_v33 = vpop.f32.mrf.mxu1 }
 0x5cb   : > { %v4251_v41 = vadd.f32 %v4250_v33, %v4163_v39  ;;  %v4719_v33 = vpop.permute.xlu0 %4718 }
 0x5cc   : > { %v6577_v35 = vpop.f32.mrf.mxu1 }
 0x5ce   : > { %v4255_v36 = vpop.f32.mrf.mxu1 }
 0x5cf   : > { %v4256_v37 = vadd.f32 %v4255_v36, %v4168_v34 }
 0x5d0   : > { %v6580_v38 = vpop.f32.mrf.mxu1 }
 0x5d1   : > { %6582 = vmatpush3.xpose.msk.msra.mxu0 %vm4259_vm3, %v4256_v37  ;;  %v4714_v37 = vpop.permute.xlu1 %4713 }
 0x5d2   : > { %6586 = vmatprep.subr.mxu0 %v7667_v16 }
 0x5d4   : > { %6584 = vmatmul.mubr.msk.f32.vlgmr.msra.gmra.mxu0 %vm4259_vm3, %v4251_v41 }
 0x5d5   : > { %6587 = vmatpush3.msra.mxu0 %v4246_v42  ;;  %6588 = vmatprep.mubr.msk.f32.mxu0 %vm7668_vm2, %v7667_v16 }
 0x5d6   : > { %6591 = vmatprep.subr.mxu0 %v7667_v16 }
 0x694   : > { %v4332_v43 = vpop.f32.mrf.mxu0 }
 0x695   : > { %v4337_v44 = vsel %vm4336_vm4, %v4332_v43, -inf }
 0x696   : > { %v4338_v45 = vrot.slane %v4337_v44, 4  ;;  %v6585_v46 = vpop.f32.mrf.mxu0 }
 0x698   : > { %v4339_v47 = vmax.f32 %v4337_v44, %v4338_v45  ;;  %v5831_v45 = vld [vmem:[#allocation30] ss:$0 sm:$0xff] }
 0x69a   : > { %v4340_v55 = vrot.slane %v4339_v47, 2 }
 0x69c   : > { %v4341_v48 = vmax.f32 %v4339_v47, %v4340_v55 }
 0x69e   : > { %v4342_v58 = vrot.slane %v4341_v48, 1 }
 0x6a0   : > { %v4343_v49 = vmax.f32 %v4341_v48, %v4342_v58  ;;  %v4959_v58 = vld [vmem:[#allocation31] sm:$0xff] }
 0x6a2   : > { %v4344_v50 = vsub.f32 %v4332_v43, %v4343_v49  ;;  %v4964_v49 = vpop.permute.xlu0 %4963 }
 0x6a4   : > { %v4345_v51 = vmul.f32 1.442695, %v4344_v50 }
 0x6a6   : > { %6888 = vpow2.f32 %v4345_v51 }
 0x6b3   : > { %v6889_v52 = vpop.eup %6888 }
 0x6b4   : > { %v4347_v53 = vsel %vm4336_vm4, %v6889_v52, 0.0 }
 0x6b5   : > { %v4348_v0 = vrot.slane %v4347_v53, 4 }
 0x6b7   : > { %v4349_v57 = vadd.f32 %v4348_v0, %v4347_v53 }
 0x6b9   : > { %v4350_v2 = vrot.slane %v4349_v57, 2 }
 0x6bb   : > { %v4351_v59 = vadd.f32 %v4350_v2, %v4349_v57 }
 0x6bd   : > { %v4352_v60 = vrot.slane %v4351_v59, 1 }
 0x6bf   : > { %v4353_v61 = vadd.f32 %v4352_v60, %v4351_v59 }
 0x6c1   : > { %6890 = vrcp.f32 %v4353_v61  ;;  %v5119_v61 = vld [vmem:[#allocation34] sm:$0xff] }
 0x6ce   : > { %v6891_v62 = vpop.eup %6890 }
 0x6cf   : > { %v4355_v63 = vmul.f32 %v6891_v62, %v6889_v52 }
 0x6d1   : > { %6589 = vmatmul.mubr.msk.f32.vlgmr.msra.gmra.mxu0 %vm4336_vm4, %v4355_v63 }
 0x6d2   : > { %6593 = vmatprep.mubr.msk.f32.mxu0 %vm7668_vm2, %v7667_v16 }
 0x791   : > { %v4425_v3 = vpop.f32.mrf.mxu0 }
 0x792   : > { %6592 = vmatpush3.msra.mxu0 %v4425_v3 }
 0x793   : > { %v6590_v12 = vpop.f32.mrf.mxu0  ;;  %6594 = vmatmul.mubr.msk.f32.vlgmr.msra.gmra.mxu0 %vm4336_vm4, %v4429_v1  ;;  %5825 = vmatprep.subr.msk.mxu0 %vm4617_vm5, %v4610_v17 }
 0x794   : > { %4686 = vmatprep.mubr.f32.mxu0 %v7667_v16  ;;  %5826 = vmatpush1.msk.msra.mxu0 %vm4617_vm5, %v4608_v15  ;;  %v5120_v12 = vld [vmem:[#allocation34 + $0x8] sm:$0xff] }
 0x853   : > { %v4505_v5 = vpop.f32.mrf.mxu0 }
 0x854   : > { %v4506_v6 = vadd.f32 %v4505_v5, %v4434_v4  ;;  %v5225_v4 = vld [vmem:[#allocation37 + $0x8] sm:$0xff] }
 0x855   : > { %v6595_v7 = vpop.f32.mrf.mxu0 }
 0x856   : > { %6596 = vmatprep.subr.mxu1 %v4506_v6  ;;  %v5126_v7 = vpop.permute.xlu0 %5125 }
 0x857   : > { %6597 = vmatpush3.msra.mxu1 %v4506_v6 }
 0x858   : > { %6599 = vmatmul.mubr.msk.f32.vlgmr.msra.gmra.mxu1 %vm4336_vm4, %v4510_v8  ;;  %4755 = vmatprep.subr.mxu1 %v8332_v54  ;;  %v5131_v8 = vpop.permute.xlu1 %5130 }
 0x859   : > { %4756 = vmatpush1.msra.mxu1 %v8336_v56  ;;  %4791 = vmatprep.mubr.f32.mxu1 %v7667_v16 }
 0x85a   : > { %4757 = vmatprep.subr.mxu1 %v8341_v10 }
 0x85b   : > { %4758 = vmatpush1.msra.mxu1 %v8345_v11 }
 0x85c   : > { %5829 = vmatmul.mubr.msk.f32.vlgmr.msra.gmra.mxu1 %vm3281_vm1, %v4707_v9  ;;  %6601 = vmatprep.subr.mxu1 %v7667_v16 }
 0x85d   : > { %4797 = vmatprep.mubr.f32.mxu1 %v7667_v16  ;;  %6602 = vmatpush3.msk.msra.mxu1 %vm4617_vm5, %v4874_v18 }
 0x860   : > { %5830 = vmatmul.mubr.msk.f32.gmra.mxu1 %vm3281_vm1, %v4708_v14 }
 0x861   : > { %6603 = vmatprep.mubr.msk.f32.mxu1 %vm7668_vm2, %v7667_v16 }
 0x918   : > { %v6600_v19 = vpop.f32.mrf.mxu1 }
 0x919   : > { %v4601_v23 = vadd.f32 %v6600_v19, %v4521_v21 }
 0x91a   : > { %v4595_v22 = vpop.f32.mrf.mxu1 }
 0x91b   : > { %v4596_v25 = vadd.f32 %v4595_v22, %v4516_v20  ;;  %v4605_v30 = vadd.f32 %v4601_v23, %v8302_v24 }
 0x91c   : > { %v4793_v26 = vpop.f32.mrf.mxu1 }
 0x91d   : > { %v4604_v28 = vadd.f32 %v4596_v25, %v8304_v27  ;;  %v4607_v35 = vmax.f32 %v4605_v30, 0.0  ;;  %v4794_v24 = vadd.f32 %v4793_v26, %v4714_v37  ;;  %v5226_v30 = vld [vmem:[#allocation39] sm:$0xff] }
 0x91e   : > { %v4795_v29 = vpop.f32.mrf.mxu1 }
 0x91f   : > { %v4606_v31 = vmax.f32 %v4604_v28, 0.0  ;;  %v4796_v39 = vadd.f32 %v4795_v29, %v4714_v37 }
 0x920   : > { %v4799_v32 = vpop.f32.mrf.mxu1 }
 0x921   : > { %5827 = vmatmul.mubr.msk.f32.vlgmr.msra.gmra.mxu0 %vm4259_vm3, %v4606_v31  ;;  %v4800_v38 = vadd.f32 %v4799_v32, %v4719_v33  ;;  %v5399_v31 = vpop.permute.xlu1 %5398 }
 0x922   : > { %v4801_v34 = vpop.f32.mrf.mxu1  ;;  %4692 = vmatprep.mubr.f32.mxu0 %v7667_v16 }
 0x923   : > { %v4802_v36 = vadd.f32 %v4801_v34, %v4719_v33 }
 0x925   : > { %5828 = vmatmul.mubr.msk.f32.gmra.mxu0 %vm4259_vm3, %v4607_v35  ;;  %4834 = vmatprep.subr.mxu0 %v4802_v36 }
 0x926   : > { %5835 = vmatprep.subr.msk.mxu1 %vm4617_vm5, %v4802_v36  ;;  %4835 = vmatpush1.xpose.msra.mxu0 %v4800_v38 }
 0x927   : > { %4868 = vmatprep.mubr.f32.mxu0 %v4796_v39  ;;  %6606 = vmatprep.subr.mxu0 %v7667_v16 }
 0x929   : > { %4869 = vmatmul.mubr.f32.vlgmr.msra.gmra.mxu0 %v4794_v24 }
 0x92a   : > { %6608 = vmatprep.mubr.msk.f32.mxu0 %vm7668_vm2, %v7667_v16 }
 0x9e1   : > { %v4688_v27 = vpop.f32.mrf.mxu0 }
 0x9e2   : > { %v4699_v59 = vmul.f32 %v8345_v11, %v4688_v27 }
 0x9e3   : > { %v4690_v40 = vpop.f32.mrf.mxu0 }
 0x9e4   : > { %v4700_v2 = vmul.f32 %v8341_v10, %v4690_v40  ;;  %v4703_v3 = vadd.f32 %v8345_v11, %v4699_v59 }
 0x9e5   : > { %v4694_v41 = vpop.f32.mrf.mxu0 }
 0x9e6   : > { %v4701_v0 = vmul.f32 %v8336_v56, %v4694_v41  ;;  %v4704_v1 = vadd.f32 %v8341_v10, %v4700_v2 }
 0x9e7   : > { %v4696_v42 = vpop.f32.mrf.mxu0 }
 0x9e8   : > { %v4702_v53 = vmul.f32 %v8332_v54, %v4696_v42  ;;  %v4705_v63 = vadd.f32 %v8336_v56, %v4701_v0 }
 0x9e9   : > { %v4870_v43 = vpop.f32.mrf.mxu0 }
 0x9ea   : > { %6604 = vmatmul.mubr.msk.f32.vlgmr.msra.gmra.mxu1 %vm4259_vm3, %v4870_v43  ;;  %v4706_v62 = vadd.f32 %v8332_v54, %v4702_v53 }
 0x9eb   : > { %5836 = vmatpush1.msk.msra.mxu1 %vm4617_vm5, %v4800_v38  ;;  %v4872_v44 = vpop.f32.mrf.mxu0  ;;  %5112 = vmatprep.mubr.f32.mxu1 %v7667_v16  ;;  %v5404_v38 = vpop.permute.xlu0 %5403 }
 0xaaa   : > { %v4954_v46 = vpop.f32.mrf.mxu1 }
 0xaab   : > { %v4955_v47 = vadd.f32 %v5831_v45, %v4954_v46 }
 0xaac   : > { %v6605_v55 = vpop.f32.mrf.mxu1 }
 0xaad   : > { %v4958_v48 = vadd.f32 %v4955_v47, %v4870_v43 }
 0xaaf   : > { %6607 = vmatpush3.msra.mxu0 %v4958_v48 }
 0xab0   : > { %6609 = vmatmul.mubr.msk.f32.vlgmr.msra.gmra.mxu0 %vm4336_vm4, %v4959_v58 }
 0xab1   : > { %5203 = vmatprep.mubr.f32.mxu0 %v7667_v16 }
 0xb70   : > { %v5035_v50 = vpop.f32.mrf.mxu0 }
 0xb71   : > { %v5036_v51 = vadd.f32 %v5035_v50, %v4964_v49 }
 0xb72   : > { %v6610_v52 = vpop.f32.mrf.mxu0 }
 0xb73   : > { %5837 = vmatmul.mubr.msk.f32.vlgmr.msra.gmra.mxu1 %vm4259_vm3, %v5036_v51 }
 0xb74   : > { %5298 = vmatprep.mubr.f32.mxu1 %v7667_v16 }
 0xc33   : > { %v5114_v57 = vpop.f32.mrf.mxu1 }
 0xc35   : > { %v5116_v60 = vpop.f32.mrf.mxu1 }
 0xc36   : > { %5169 = vmatprep.subr.mxu0 %v5116_v60 }
 0xc37   : > { %5170 = vmatpush1.msra.mxu0 %v5114_v57 }
 0xc38   : > { %5838 = vmatmul.mubr.msk.f32.vlgmr.msra.gmra.mxu0 %vm4336_vm4, %v5119_v61  ;;  %5345 = vmatprep.subr.mxu0 %v4706_v62 }
 0xc39   : > { %5346 = vmatpush1.msra.mxu0 %v4705_v63  ;;  %5209 = vmatprep.mubr.f32.mxu0 %v7667_v16 }
 0xc3a   : > { %5347 = vmatprep.subr.mxu0 %v4704_v1 }
 0xc3b   : > { %5348 = vmatpush1.msra.mxu0 %v4703_v3 }
 0xc3c   : > { %5839 = vmatmul.mubr.msk.f32.gmra.mxu0 %vm4336_vm4, %v5120_v12 }
 0xc3d   : > { %5381 = vmatprep.mubr.f32.mxu0 %v7667_v16 }
 0xc40   : > { %5842 = vmatmul.mubr.msk.f32.vlgmr.msra.gmra.mxu0 %vm3281_vm1, %v5224_v13 }
 0xc41   : > { %5387 = vmatprep.mubr.f32.mxu0 %v7667_v16 }
 0xc44   : > { %5843 = vmatmul.mubr.msk.f32.gmra.mxu0 %vm3281_vm1, %v5225_v4 }
 0xcf8   : > { %v5205_v5 = vpop.f32.mrf.mxu0 }
 0xcf9   : > { %v5206_v17 = vadd.f32 %v5205_v5, %v5126_v7 }
 0xcfa   : > { %v5207_v6 = vpop.f32.mrf.mxu0 }
 0xcfb   : > { %v5208_v14 = vadd.f32 %v5207_v6, %v5126_v7  ;;  %v5216_v23 = vadd.f32 %v8345_v11, %v5206_v17 }
 0xcfc   : > { %v5211_v9 = vpop.f32.mrf.mxu0 }
 0xcfd   : > { %v5212_v15 = vadd.f32 %v5211_v9, %v5131_v8  ;;  %v5217_v21 = vadd.f32 %v8341_v10, %v5208_v14  ;;  %v5220_v29 = vmax.f32 %v5216_v23, 0.0 }
 0xcfe   : > { %v5213_v18 = vpop.f32.mrf.mxu0 }
 0xcff   : > { %v5214_v19 = vadd.f32 %v5213_v18, %v5131_v8  ;;  %v5218_v20 = vadd.f32 %v8336_v56, %v5212_v15  ;;  %v5221_v28 = vmax.f32 %v5217_v21, 0.0  ;;  %v5227_v56 = vld [vmem:[#allocation39 + $0x8] sm:$0xff] }
 0xd01   : > { %v5219_v22 = vadd.f32 %v8332_v54, %v5214_v19  ;;  %v5222_v26 = vmax.f32 %v5218_v20, 0.0  ;;  %v5383_v54 = vpop.f32.mrf.mxu0 }
 0xd03   : > { %v5223_v25 = vmax.f32 %v5219_v22, 0.0  ;;  %v5385_v10 = vpop.f32.mrf.mxu0 }
 0xd05   : > { %5262 = vmatprep.subr.mxu1 %v5223_v25  ;;  %v5389_v34 = vpop.f32.mrf.mxu0 }
 0xd06   : > { %5263 = vmatpush1.msra.mxu1 %v5222_v26 }
 0xd07   : > { %5264 = vmatprep.subr.mxu1 %v5221_v28  ;;  %v5391_v27 = vpop.f32.mrf.mxu0 }
 0xd08   : > { %5265 = vmatpush1.msra.mxu1 %v5220_v29 }
 0xd09   : > { %5840 = vmatmul.mubr.msk.f32.vlgmr.msra.gmra.mxu1 %vm3281_vm1, %v5226_v30 }
 0xd0a   : > { %5304 = vmatprep.mubr.f32.mxu1 %v7667_v16 }
 0xd0d   : > { %5841 = vmatmul.mubr.msk.f32.gmra.mxu1 %vm3281_vm1, %v5227_v56 }
 0xdc9   : > { %v5300_v11 = vpop.f32.mrf.mxu1 }
 0xdca   : > { %v5384_v32 = vadd.f32 %v5383_v54, %v5300_v11 }
 0xdcb   : > { %v5302_v33 = vpop.f32.mrf.mxu1 }
 0xdcc   : > { %v5406_v35 = vadd.f32 %v5399_v31, %v5384_v32  ;;  %v5386_v36 = vadd.f32 %v5385_v10, %v5302_v33 }
 0xdcd   : > { %v5306_v37 = vpop.f32.mrf.mxu1 }
 0xdce   : > { %5410 = vst [vmem:[%s1211_s2] sm:$0xff] %v5406_v35  ;;  %v5407_v16 = vadd.f32 %v5399_v31, %v5386_v36  ;;  %v5390_v39 = vadd.f32 %v5389_v34, %v5306_v37 }
 0xdcf   : > { %v5308_v24 = vpop.f32.mrf.mxu1 }
 0xdd0   : > { %5411 = vst [vmem:[%s1211_s2 + $0x8] sm:$0xff] %v5407_v16  ;;  %v5408_v40 = vadd.f32 %v5404_v38, %v5390_v39  ;;  %v5392_v41 = vadd.f32 %v5391_v27, %v5308_v24 }
 0xdd2   : > { %5412 = vst [vmem:[%s1211_s2 + $0x10] sm:$0xff] %v5408_v40  ;;  %v5409_v42 = vadd.f32 %v5404_v38, %v5392_v41 }
 0xdd4   : > { %5413 = vst [vmem:[%s1211_s2 + $0x18] sm:$0xff] %v5409_v42 }
 0xdd5 PF: > { %s8498_s5 = sld [smem:[#allocation56_spill]] }
 0xddb   : > { %s52_s8 = sadd.s32 1, %s8498_s5  }
 0xddc   : > { %p49_p3 = scmp.ge.s32.totalorder %s52_s8, 4  }
 0xdde   :  { %51 = sbr.rel (!%p49_p3) target bundleno = 29 (0x1d), region = 315 }
 0xde3   :  { %5435 = vsyncpa [#allocation3], 1 }
 0xde4   :  { %5437 = vsyncpa [#allocation3 + $0x1], 1 }
 0xde5   :  { %5438 = vsyncpa [#allocation5], 1 }
 0xde6   :  { %5439 = vsyncpa [#allocation8], 1 }
 0xde7   :  { %5440 = vsyncpa [#allocation11], 1 }
 0xde8   :  { %5441 = vsyncpa [#allocation14], 1 }
 0xde9   :  { %5442 = vsyncpa [#allocation17], 1 }
 0xdea   :  { %5443 = vsyncpa [#allocation20], 1 }
 0xdeb   :  { %5444 = vsyncpa [#allocation23], 1 }
 0xdec   :  { %5445 = vsyncpa [#allocation26], 1 }
 0xded   :  { %5446 = vsyncpa [#allocation29], 1 }
 0xdee   :  { %5447 = vsyncpa [#allocation32], 1 }
 0xdef   :  { %5448 = vsyncpa [#allocation35], 1 }
 0xdf0   :  { %5449 = vsyncpa [#allocation38], 1 }
 0xdf1   :  { %5450 = vsyncpa [#allocation41], 1 }

</bundles_post_ra>
